<compile_context>
chip_gen: v6e
topology: v6e:2x2x1
jax: 0.10.0
libtpu: 0.0.40
codegen_flags: <defaults>
</compile_context>

<pallas_src>
import functools
import numpy as np

import jax
import jax.numpy as jnp
from jax.experimental import pallas as pl
from jax.experimental.pallas import tpu as pltpu

K = 5            # conv kernel size
PAD = K - 1      # causal left padding (F.pad(x, [4, 0]))
HID = 256        # hidden channel width of the PostNet stack
LANE = 128
BN_EPS = 1e-5


def _round_up(n, m):
    return (n + m - 1) // m * m


# ----------------------------- Pallas kernel -------------------------------

def _postnet_kernel(x_ref, w0_ref, wmid_ref, w4_ref,
                    sc_ref, sh_ref, sc4_ref, sh4_ref, o_ref, *, T):
    """Fused 5-layer causal Conv1d(k=5) + folded BatchNorm(eval) [+ tanh].

    One grid step == one batch element.  All intermediate activations stay in
    VMEM/vregs; each conv is K tap-matmuls on the MXU (bf16 in, f32 acc).
    """

    def conv_taps(xp, get_w, scale, shift):
        # xp: [T+PAD, Cin] bf16 (causally padded), get_w(k): [Cin, Cout] bf16
        acc = jnp.dot(xp[0:T], get_w(0), preferred_element_type=jnp.float32)
        for k in range(1, K):
            acc = acc + jnp.dot(xp[k:k + T], get_w(k),
                                preferred_element_type=jnp.float32)
        return acc * scale + shift                      # f32 elementwise

    zeros_pad = jnp.zeros((PAD, HID), jnp.bfloat16)

    # layer 0: Cin_pad -> 256, tanh
    x0 = x_ref[0]                                       # [T+PAD, Cin_pad] bf16
    y = jnp.tanh(conv_taps(x0, lambda k: w0_ref[k],
                           sc_ref[0:1, :], sh_ref[0:1, :]))

    # layers 1..3: 256 -> 256, tanh
    for li in range(3):
        xl = jnp.concatenate([zeros_pad, y.astype(jnp.bfloat16)], axis=0)
        y = jnp.tanh(conv_taps(xl, lambda k, li=li: wmid_ref[li, k],
                               sc_ref[li + 1:li + 2, :],
                               sh_ref[li + 1:li + 2, :]))

    # layer 4: 256 -> Cout_pad, no tanh
    xl = jnp.concatenate([zeros_pad, y.astype(jnp.bfloat16)], axis=0)
    o_ref[0] = conv_taps(xl, lambda k: w4_ref[k], sc4_ref[...], sh4_ref[...])


# ------------------------------ host wrapper --------------------------------

def _fold_bn(p):
    """Eval-mode BatchNorm folded with the conv bias into scale/shift."""
    scale = p["gamma"] / jnp.sqrt(p["var"] + BN_EPS)
    shift = scale * (p["b"] - p["mean"]) + p["beta"]
    return scale.astype(jnp.float32), shift.astype(jnp.float32)


def postnet_pallas(x, params):
    """x: [B, T, C] f32.  params: list of 5 layer dicts (w, b, gamma, beta, mean, var)."""
    B, T, C = x.shape
    Cin_pad = _round_up(C, LANE)
    Cout_pad = _round_up(C, LANE)

    # Causal time padding + channel padding to a lane-dense width, cast bf16.
    xp = jnp.pad(x, ((0, 0), (PAD, 0), (0, Cin_pad - C))).astype(jnp.bfloat16)

    # Weights: [K, Cin, Cout] per layer, padded and cast to bf16.
    w0 = jnp.pad(params[0]["w"],
                 ((0, 0), (0, Cin_pad - C), (0, 0))).astype(jnp.bfloat16)
    wmid = jnp.stack([params[i]["w"] for i in (1, 2, 3)],
                     axis=0).astype(jnp.bfloat16)                 # [3,K,256,256]
    w4 = jnp.pad(params[4]["w"],
                 ((0, 0), (0, 0), (0, Cout_pad - C))).astype(jnp.bfloat16)

    scs, shs = zip(*[_fold_bn(params[i]) for i in range(4)])
    sc = jnp.stack(scs, axis=0)                                   # [4, 256]
    sh = jnp.stack(shs, axis=0)                                   # [4, 256]
    s4, sh4 = _fold_bn(params[4])
    sc4 = jnp.pad(s4, (0, Cout_pad - C), constant_values=1.0).reshape(1, Cout_pad)
    sh4 = jnp.pad(sh4, (0, Cout_pad - C)).reshape(1, Cout_pad)

    out = pl.pallas_call(
        functools.partial(_postnet_kernel, T=T),
        out_shape=jax.ShapeDtypeStruct((B, T, Cout_pad), jnp.float32),
        grid=(B,),
        in_specs=[
            pl.BlockSpec((1, T + PAD, Cin_pad), lambda b: (b, 0, 0)),
            pl.BlockSpec((K, Cin_pad, HID), lambda b: (0, 0, 0)),
            pl.BlockSpec((3, K, HID, HID), lambda b: (0, 0, 0, 0)),
            pl.BlockSpec((K, HID, Cout_pad), lambda b: (0, 0, 0)),
            pl.BlockSpec((4, HID), lambda b: (0, 0)),
            pl.BlockSpec((4, HID), lambda b: (0, 0)),
            pl.BlockSpec((1, Cout_pad), lambda b: (0, 0)),
            pl.BlockSpec((1, Cout_pad), lambda b: (0, 0)),
        ],
        out_specs=pl.BlockSpec((1, T, Cout_pad), lambda b: (b, 0, 0)),
        compiler_params=pltpu.CompilerParams(
            dimension_semantics=("parallel",),
            vmem_limit_bytes=32 * 1024 * 1024),
    )(xp, w0, wmid, w4, sc, sh, sc4, sh4)

    return out[:, :, :C]


# ------------------------- pure-JAX reference (f32) --------------------------

def postnet_ref(x, params):
    B, T, C = x.shape
    h = x
    for li, p in enumerate(params):
        hp = jnp.pad(h, ((0, 0), (PAD, 0), (0, 0)))               # causal pad
        taps = jnp.stack([hp[:, k:k + T, :] for k in range(K)], axis=2)
        y = jnp.einsum("btkc,kcd->btd", taps, p["w"]) + p["b"]
        y = (y - p["mean"]) / jnp.sqrt(p["var"] + BN_EPS) * p["gamma"] + p["beta"]
        if li < len(params) - 1:
            y = jnp.tanh(y)
        h = y                                                     # dropout: eval no-op
    return h


# ----------------------------- parameter init --------------------------------

def init_params(key, mel_channels):
    mapping = [mel_channels, HID, HID, HID, HID, mel_channels]
    params = []
    for i in range(len(mapping) - 1):
        key, kw, kb, kg, kbe, km, kv = jax.random.split(key, 7)
        cin, cout = mapping[i], mapping[i + 1]
        params.append({
            "w": jax.random.normal(kw, (K, cin, cout), jnp.float32) * 0.05,
            "b": jax.random.normal(kb, (cout,), jnp.float32) * 0.05,
            "gamma": 1.0 + 0.1 * jax.random.normal(kg, (cout,), jnp.float32),
            "beta": 0.1 * jax.random.normal(kbe, (cout,), jnp.float32),
            "mean": 0.1 * jax.random.normal(km, (cout,), jnp.float32),
            "var": jax.random.uniform(kv, (cout,), jnp.float32, minval=0.5, maxval=1.5),
        })
    return params


# ----------------------------------- main ------------------------------------

if __name__ == "__main__":
    B, T, MEL = 2, 16, 80

    key = jax.random.PRNGKey(0)
    pkey, xkey = jax.random.split(key)
    params = init_params(pkey, MEL)
    x = jax.random.normal(xkey, (B, T, MEL), jnp.float32)

    out = jax.block_until_ready(postnet_pallas(x, params))
    ref = jax.block_until_ready(postnet_ref(x, params))

    assert out.shape == (B, T, MEL)
    err = float(jnp.max(jnp.abs(out - ref)))
    assert np.isfinite(err) and err < 7.5e-2, f"max abs error too large: {err}"
    print("KERNEL_OK")
</pallas_src>

<mosaic_0001>
module attributes {stable_mosaic.version = 11 : i64} {
  func.func @_postnet_kernel(%arg0: i32, %arg1: memref<1x20x128xbf16, #tpu.memory_space<vmem>>, %arg2: memref<5x128x256xbf16, #tpu.memory_space<vmem>>, %arg3: memref<3x5x256x256xbf16, #tpu.memory_space<vmem>>, %arg4: memref<5x256x128xbf16, #tpu.memory_space<vmem>>, %arg5: memref<4x256xf32, #tpu.memory_space<vmem>>, %arg6: memref<4x256xf32, #tpu.memory_space<vmem>>, %arg7: memref<1x128xf32, #tpu.memory_space<vmem>>, %arg8: memref<1x128xf32, #tpu.memory_space<vmem>>, %arg9: memref<1x16x128xf32, #tpu.memory_space<vmem>>) attributes {dimension_semantics = [#tpu.dimension_semantics<parallel>], iteration_bounds = array<i64: 2>, scalar_prefetch = 0 : i64, scratch_operands = 0 : i64, tpu.core_type = #tpu.core_type<tc>, window_params = [{transform_indices = @transform_0, window_bounds = array<i64: 1, 20, 128>}, {pipeline_mode = #tpu.pipeline_mode<synchronous>, transform_indices = @transform_1, window_bounds = array<i64: 5, 128, 256>}, {pipeline_mode = #tpu.pipeline_mode<synchronous>, transform_indices = @transform_2, window_bounds = array<i64: 3, 5, 256, 256>}, {pipeline_mode = #tpu.pipeline_mode<synchronous>, transform_indices = @transform_3, window_bounds = array<i64: 5, 256, 128>}, {pipeline_mode = #tpu.pipeline_mode<synchronous>, transform_indices = @transform_4, window_bounds = array<i64: 4, 256>}, {pipeline_mode = #tpu.pipeline_mode<synchronous>, transform_indices = @transform_5, window_bounds = array<i64: 4, 256>}, {pipeline_mode = #tpu.pipeline_mode<synchronous>, transform_indices = @transform_6, window_bounds = array<i64: 1, 128>}, {pipeline_mode = #tpu.pipeline_mode<synchronous>, transform_indices = @transform_7, window_bounds = array<i64: 1, 128>}, {transform_indices = @transform_8, window_bounds = array<i64: 1, 16, 128>}]} {
    %cst = arith.constant 0.000000e+00 : bf16
    %0 = vector.broadcast %cst : bf16 to vector<4x256xbf16>
    %c0 = arith.constant 0 : index
    %c0_0 = arith.constant 0 : index
    %c0_1 = arith.constant 0 : index
    %1 = vector.load %arg1[%c0, %c0_0, %c0_1] : memref<1x20x128xbf16, #tpu.memory_space<vmem>>, vector<1x20x128xbf16>
    %2 = vector.shape_cast %1 : vector<1x20x128xbf16> to vector<20x128xbf16>
    %c0_2 = arith.constant 0 : index
    %c0_3 = arith.constant 0 : index
    %3 = vector.load %arg5[%c0_2, %c0_3] : memref<4x256xf32, #tpu.memory_space<vmem>>, vector<1x256xf32>
    %c0_4 = arith.constant 0 : index
    %c0_5 = arith.constant 0 : index
    %4 = vector.load %arg6[%c0_4, %c0_5] : memref<4x256xf32, #tpu.memory_space<vmem>>, vector<1x256xf32>
    %5 = vector.extract_strided_slice %2 {offsets = [0, 0], sizes = [16, 128], strides = [1, 1]} : vector<20x128xbf16> to vector<16x128xbf16>
    %c0_6 = arith.constant 0 : index
    %c0_7 = arith.constant 0 : index
    %c0_8 = arith.constant 0 : index
    %6 = vector.load %arg2[%c0_6, %c0_7, %c0_8] : memref<5x128x256xbf16, #tpu.memory_space<vmem>>, vector<1x128x256xbf16>
    %7 = vector.shape_cast %6 : vector<1x128x256xbf16> to vector<128x256xbf16>
    %cst_9 = arith.constant dense<0.000000e+00> : vector<16x256xf32>
    %8 = tpu.matmul %5, %7, %cst_9 {dimension_numbers = #tpu.dot_dimension_numbers<[1], [0], [0], [1], [0, 0, 1, 1], [], []>} : vector<16x128xbf16>, vector<128x256xbf16>, vector<16x256xf32> -> vector<16x256xf32>
    %9 = vector.extract_strided_slice %2 {offsets = [1, 0], sizes = [16, 128], strides = [1, 1]} : vector<20x128xbf16> to vector<16x128xbf16>
    %c1 = arith.constant 1 : index
    %c0_10 = arith.constant 0 : index
    %c0_11 = arith.constant 0 : index
    %10 = vector.load %arg2[%c1, %c0_10, %c0_11] : memref<5x128x256xbf16, #tpu.memory_space<vmem>>, vector<1x128x256xbf16>
    %11 = vector.shape_cast %10 : vector<1x128x256xbf16> to vector<128x256xbf16>
    %cst_12 = arith.constant dense<0.000000e+00> : vector<16x256xf32>
    %12 = tpu.matmul %9, %11, %cst_12 {dimension_numbers = #tpu.dot_dimension_numbers<[1], [0], [0], [1], [0, 0, 1, 1], [], []>} : vector<16x128xbf16>, vector<128x256xbf16>, vector<16x256xf32> -> vector<16x256xf32>
    %13 = arith.addf %8, %12 : vector<16x256xf32>
    %14 = vector.extract_strided_slice %2 {offsets = [2, 0], sizes = [16, 128], strides = [1, 1]} : vector<20x128xbf16> to vector<16x128xbf16>
    %c2 = arith.constant 2 : index
    %c0_13 = arith.constant 0 : index
    %c0_14 = arith.constant 0 : index
    %15 = vector.load %arg2[%c2, %c0_13, %c0_14] : memref<5x128x256xbf16, #tpu.memory_space<vmem>>, vector<1x128x256xbf16>
    %16 = vector.shape_cast %15 : vector<1x128x256xbf16> to vector<128x256xbf16>
    %cst_15 = arith.constant dense<0.000000e+00> : vector<16x256xf32>
    %17 = tpu.matmul %14, %16, %cst_15 {dimension_numbers = #tpu.dot_dimension_numbers<[1], [0], [0], [1], [0, 0, 1, 1], [], []>} : vector<16x128xbf16>, vector<128x256xbf16>, vector<16x256xf32> -> vector<16x256xf32>
    %18 = arith.addf %13, %17 : vector<16x256xf32>
    %19 = vector.extract_strided_slice %2 {offsets = [3, 0], sizes = [16, 128], strides = [1, 1]} : vector<20x128xbf16> to vector<16x128xbf16>
    %c3 = arith.constant 3 : index
    %c0_16 = arith.constant 0 : index
    %c0_17 = arith.constant 0 : index
    %20 = vector.load %arg2[%c3, %c0_16, %c0_17] : memref<5x128x256xbf16, #tpu.memory_space<vmem>>, vector<1x128x256xbf16>
    %21 = vector.shape_cast %20 : vector<1x128x256xbf16> to vector<128x256xbf16>
    %cst_18 = arith.constant dense<0.000000e+00> : vector<16x256xf32>
    %22 = tpu.matmul %19, %21, %cst_18 {dimension_numbers = #tpu.dot_dimension_numbers<[1], [0], [0], [1], [0, 0, 1, 1], [], []>} : vector<16x128xbf16>, vector<128x256xbf16>, vector<16x256xf32> -> vector<16x256xf32>
    %23 = arith.addf %18, %22 : vector<16x256xf32>
    %24 = vector.extract_strided_slice %2 {offsets = [4, 0], sizes = [16, 128], strides = [1, 1]} : vector<20x128xbf16> to vector<16x128xbf16>
    %c4 = arith.constant 4 : index
    %c0_19 = arith.constant 0 : index
    %c0_20 = arith.constant 0 : index
    %25 = vector.load %arg2[%c4, %c0_19, %c0_20] : memref<5x128x256xbf16, #tpu.memory_space<vmem>>, vector<1x128x256xbf16>
    %26 = vector.shape_cast %25 : vector<1x128x256xbf16> to vector<128x256xbf16>
    %cst_21 = arith.constant dense<0.000000e+00> : vector<16x256xf32>
    %27 = tpu.matmul %24, %26, %cst_21 {dimension_numbers = #tpu.dot_dimension_numbers<[1], [0], [0], [1], [0, 0, 1, 1], [], []>} : vector<16x128xbf16>, vector<128x256xbf16>, vector<16x256xf32> -> vector<16x256xf32>
    %28 = arith.addf %23, %27 : vector<16x256xf32>
    %29 = vector.broadcast %3 : vector<1x256xf32> to vector<16x256xf32>
    %30 = arith.mulf %28, %29 : vector<16x256xf32>
    %31 = vector.broadcast %4 : vector<1x256xf32> to vector<16x256xf32>
    %32 = arith.addf %30, %31 : vector<16x256xf32>
    %33 = math.tanh %32 : vector<16x256xf32>
    %34 = arith.truncf %33 : vector<16x256xf32> to vector<16x256xbf16>
    %35 = tpu.concatenate %0, %34 in 0 : vector<4x256xbf16>, vector<16x256xbf16> -> vector<20x256xbf16>
    %c1_22 = arith.constant 1 : index
    %c0_23 = arith.constant 0 : index
    %36 = vector.load %arg5[%c1_22, %c0_23] : memref<4x256xf32, #tpu.memory_space<vmem>>, vector<1x256xf32>
    %c1_24 = arith.constant 1 : index
    %c0_25 = arith.constant 0 : index
    %37 = vector.load %arg6[%c1_24, %c0_25] : memref<4x256xf32, #tpu.memory_space<vmem>>, vector<1x256xf32>
    %38 = vector.extract_strided_slice %35 {offsets = [0, 0], sizes = [16, 256], strides = [1, 1]} : vector<20x256xbf16> to vector<16x256xbf16>
    %c0_26 = arith.constant 0 : index
    %c0_27 = arith.constant 0 : index
    %c0_28 = arith.constant 0 : index
    %c0_29 = arith.constant 0 : index
    %39 = vector.load %arg3[%c0_26, %c0_27, %c0_28, %c0_29] : memref<3x5x256x256xbf16, #tpu.memory_space<vmem>>, vector<1x1x256x256xbf16>
    %40 = vector.shape_cast %39 : vector<1x1x256x256xbf16> to vector<256x256xbf16>
    %cst_30 = arith.constant dense<0.000000e+00> : vector<16x256xf32>
    %41 = tpu.matmul %38, %40, %cst_30 {dimension_numbers = #tpu.dot_dimension_numbers<[1], [0], [0], [1], [0, 0, 1, 1], [], []>} : vector<16x256xbf16>, vector<256x256xbf16>, vector<16x256xf32> -> vector<16x256xf32>
    %42 = vector.extract_strided_slice %35 {offsets = [1, 0], sizes = [16, 256], strides = [1, 1]} : vector<20x256xbf16> to vector<16x256xbf16>
    %c0_31 = arith.constant 0 : index
    %c1_32 = arith.constant 1 : index
    %c0_33 = arith.constant 0 : index
    %c0_34 = arith.constant 0 : index
    %43 = vector.load %arg3[%c0_31, %c1_32, %c0_33, %c0_34] : memref<3x5x256x256xbf16, #tpu.memory_space<vmem>>, vector<1x1x256x256xbf16>
    %44 = vector.shape_cast %43 : vector<1x1x256x256xbf16> to vector<256x256xbf16>
    %cst_35 = arith.constant dense<0.000000e+00> : vector<16x256xf32>
    %45 = tpu.matmul %42, %44, %cst_35 {dimension_numbers = #tpu.dot_dimension_numbers<[1], [0], [0], [1], [0, 0, 1, 1], [], []>} : vector<16x256xbf16>, vector<256x256xbf16>, vector<16x256xf32> -> vector<16x256xf32>
    %46 = arith.addf %41, %45 : vector<16x256xf32>
    %47 = vector.extract_strided_slice %35 {offsets = [2, 0], sizes = [16, 256], strides = [1, 1]} : vector<20x256xbf16> to vector<16x256xbf16>
    %c0_36 = arith.constant 0 : index
    %c2_37 = arith.constant 2 : index
    %c0_38 = arith.constant 0 : index
    %c0_39 = arith.constant 0 : index
    %48 = vector.load %arg3[%c0_36, %c2_37, %c0_38, %c0_39] : memref<3x5x256x256xbf16, #tpu.memory_space<vmem>>, vector<1x1x256x256xbf16>
    %49 = vector.shape_cast %48 : vector<1x1x256x256xbf16> to vector<256x256xbf16>
    %cst_40 = arith.constant dense<0.000000e+00> : vector<16x256xf32>
    %50 = tpu.matmul %47, %49, %cst_40 {dimension_numbers = #tpu.dot_dimension_numbers<[1], [0], [0], [1], [0, 0, 1, 1], [], []>} : vector<16x256xbf16>, vector<256x256xbf16>, vector<16x256xf32> -> vector<16x256xf32>
    %51 = arith.addf %46, %50 : vector<16x256xf32>
    %52 = vector.extract_strided_slice %35 {offsets = [3, 0], sizes = [16, 256], strides = [1, 1]} : vector<20x256xbf16> to vector<16x256xbf16>
    %c0_41 = arith.constant 0 : index
    %c3_42 = arith.constant 3 : index
    %c0_43 = arith.constant 0 : index
    %c0_44 = arith.constant 0 : index
    %53 = vector.load %arg3[%c0_41, %c3_42, %c0_43, %c0_44] : memref<3x5x256x256xbf16, #tpu.memory_space<vmem>>, vector<1x1x256x256xbf16>
    %54 = vector.shape_cast %53 : vector<1x1x256x256xbf16> to vector<256x256xbf16>
    %cst_45 = arith.constant dense<0.000000e+00> : vector<16x256xf32>
    %55 = tpu.matmul %52, %54, %cst_45 {dimension_numbers = #tpu.dot_dimension_numbers<[1], [0], [0], [1], [0, 0, 1, 1], [], []>} : vector<16x256xbf16>, vector<256x256xbf16>, vector<16x256xf32> -> vector<16x256xf32>
    %56 = arith.addf %51, %55 : vector<16x256xf32>
    %57 = vector.extract_strided_slice %35 {offsets = [4, 0], sizes = [16, 256], strides = [1, 1]} : vector<20x256xbf16> to vector<16x256xbf16>
    %c0_46 = arith.constant 0 : index
    %c4_47 = arith.constant 4 : index
    %c0_48 = arith.constant 0 : index
    %c0_49 = arith.constant 0 : index
    %58 = vector.load %arg3[%c0_46, %c4_47, %c0_48, %c0_49] : memref<3x5x256x256xbf16, #tpu.memory_space<vmem>>, vector<1x1x256x256xbf16>
    %59 = vector.shape_cast %58 : vector<1x1x256x256xbf16> to vector<256x256xbf16>
    %cst_50 = arith.constant dense<0.000000e+00> : vector<16x256xf32>
    %60 = tpu.matmul %57, %59, %cst_50 {dimension_numbers = #tpu.dot_dimension_numbers<[1], [0], [0], [1], [0, 0, 1, 1], [], []>} : vector<16x256xbf16>, vector<256x256xbf16>, vector<16x256xf32> -> vector<16x256xf32>
    %61 = arith.addf %56, %60 : vector<16x256xf32>
    %62 = vector.broadcast %36 : vector<1x256xf32> to vector<16x256xf32>
    %63 = arith.mulf %61, %62 : vector<16x256xf32>
    %64 = vector.broadcast %37 : vector<1x256xf32> to vector<16x256xf32>
    %65 = arith.addf %63, %64 : vector<16x256xf32>
    %66 = math.tanh %65 : vector<16x256xf32>
    %67 = arith.truncf %66 : vector<16x256xf32> to vector<16x256xbf16>
    %68 = tpu.concatenate %0, %67 in 0 : vector<4x256xbf16>, vector<16x256xbf16> -> vector<20x256xbf16>
    %c2_51 = arith.constant 2 : index
    %c0_52 = arith.constant 0 : index
    %69 = vector.load %arg5[%c2_51, %c0_52] : memref<4x256xf32, #tpu.memory_space<vmem>>, vector<1x256xf32>
    %c2_53 = arith.constant 2 : index
    %c0_54 = arith.constant 0 : index
    %70 = vector.load %arg6[%c2_53, %c0_54] : memref<4x256xf32, #tpu.memory_space<vmem>>, vector<1x256xf32>
    %71 = vector.extract_strided_slice %68 {offsets = [0, 0], sizes = [16, 256], strides = [1, 1]} : vector<20x256xbf16> to vector<16x256xbf16>
    %c1_55 = arith.constant 1 : index
    %c0_56 = arith.constant 0 : index
    %c0_57 = arith.constant 0 : index
    %c0_58 = arith.constant 0 : index
    %72 = vector.load %arg3[%c1_55, %c0_56, %c0_57, %c0_58] : memref<3x5x256x256xbf16, #tpu.memory_space<vmem>>, vector<1x1x256x256xbf16>
    %73 = vector.shape_cast %72 : vector<1x1x256x256xbf16> to vector<256x256xbf16>
    %cst_59 = arith.constant dense<0.000000e+00> : vector<16x256xf32>
    %74 = tpu.matmul %71, %73, %cst_59 {dimension_numbers = #tpu.dot_dimension_numbers<[1], [0], [0], [1], [0, 0, 1, 1], [], []>} : vector<16x256xbf16>, vector<256x256xbf16>, vector<16x256xf32> -> vector<16x256xf32>
    %75 = vector.extract_strided_slice %68 {offsets = [1, 0], sizes = [16, 256], strides = [1, 1]} : vector<20x256xbf16> to vector<16x256xbf16>
    %c1_60 = arith.constant 1 : index
    %c1_61 = arith.constant 1 : index
    %c0_62 = arith.constant 0 : index
    %c0_63 = arith.constant 0 : index
    %76 = vector.load %arg3[%c1_60, %c1_61, %c0_62, %c0_63] : memref<3x5x256x256xbf16, #tpu.memory_space<vmem>>, vector<1x1x256x256xbf16>
    %77 = vector.shape_cast %76 : vector<1x1x256x256xbf16> to vector<256x256xbf16>
    %cst_64 = arith.constant dense<0.000000e+00> : vector<16x256xf32>
    %78 = tpu.matmul %75, %77, %cst_64 {dimension_numbers = #tpu.dot_dimension_numbers<[1], [0], [0], [1], [0, 0, 1, 1], [], []>} : vector<16x256xbf16>, vector<256x256xbf16>, vector<16x256xf32> -> vector<16x256xf32>
    %79 = arith.addf %74, %78 : vector<16x256xf32>
    %80 = vector.extract_strided_slice %68 {offsets = [2, 0], sizes = [16, 256], strides = [1, 1]} : vector<20x256xbf16> to vector<16x256xbf16>
    %c1_65 = arith.constant 1 : index
    %c2_66 = arith.constant 2 : index
    %c0_67 = arith.constant 0 : index
    %c0_68 = arith.constant 0 : index
    %81 = vector.load %arg3[%c1_65, %c2_66, %c0_67, %c0_68] : memref<3x5x256x256xbf16, #tpu.memory_space<vmem>>, vector<1x1x256x256xbf16>
    %82 = vector.shape_cast %81 : vector<1x1x256x256xbf16> to vector<256x256xbf16>
    %cst_69 = arith.constant dense<0.000000e+00> : vector<16x256xf32>
    %83 = tpu.matmul %80, %82, %cst_69 {dimension_numbers = #tpu.dot_dimension_numbers<[1], [0], [0], [1], [0, 0, 1, 1], [], []>} : vector<16x256xbf16>, vector<256x256xbf16>, vector<16x256xf32> -> vector<16x256xf32>
    %84 = arith.addf %79, %83 : vector<16x256xf32>
    %85 = vector.extract_strided_slice %68 {offsets = [3, 0], sizes = [16, 256], strides = [1, 1]} : vector<20x256xbf16> to vector<16x256xbf16>
    %c1_70 = arith.constant 1 : index
    %c3_71 = arith.constant 3 : index
    %c0_72 = arith.constant 0 : index
    %c0_73 = arith.constant 0 : index
    %86 = vector.load %arg3[%c1_70, %c3_71, %c0_72, %c0_73] : memref<3x5x256x256xbf16, #tpu.memory_space<vmem>>, vector<1x1x256x256xbf16>
    %87 = vector.shape_cast %86 : vector<1x1x256x256xbf16> to vector<256x256xbf16>
    %cst_74 = arith.constant dense<0.000000e+00> : vector<16x256xf32>
    %88 = tpu.matmul %85, %87, %cst_74 {dimension_numbers = #tpu.dot_dimension_numbers<[1], [0], [0], [1], [0, 0, 1, 1], [], []>} : vector<16x256xbf16>, vector<256x256xbf16>, vector<16x256xf32> -> vector<16x256xf32>
    %89 = arith.addf %84, %88 : vector<16x256xf32>
    %90 = vector.extract_strided_slice %68 {offsets = [4, 0], sizes = [16, 256], strides = [1, 1]} : vector<20x256xbf16> to vector<16x256xbf16>
    %c1_75 = arith.constant 1 : index
    %c4_76 = arith.constant 4 : index
    %c0_77 = arith.constant 0 : index
    %c0_78 = arith.constant 0 : index
    %91 = vector.load %arg3[%c1_75, %c4_76, %c0_77, %c0_78] : memref<3x5x256x256xbf16, #tpu.memory_space<vmem>>, vector<1x1x256x256xbf16>
    %92 = vector.shape_cast %91 : vector<1x1x256x256xbf16> to vector<256x256xbf16>
    %cst_79 = arith.constant dense<0.000000e+00> : vector<16x256xf32>
    %93 = tpu.matmul %90, %92, %cst_79 {dimension_numbers = #tpu.dot_dimension_numbers<[1], [0], [0], [1], [0, 0, 1, 1], [], []>} : vector<16x256xbf16>, vector<256x256xbf16>, vector<16x256xf32> -> vector<16x256xf32>
    %94 = arith.addf %89, %93 : vector<16x256xf32>
    %95 = vector.broadcast %69 : vector<1x256xf32> to vector<16x256xf32>
    %96 = arith.mulf %94, %95 : vector<16x256xf32>
    %97 = vector.broadcast %70 : vector<1x256xf32> to vector<16x256xf32>
    %98 = arith.addf %96, %97 : vector<16x256xf32>
    %99 = math.tanh %98 : vector<16x256xf32>
    %100 = arith.truncf %99 : vector<16x256xf32> to vector<16x256xbf16>
    %101 = tpu.concatenate %0, %100 in 0 : vector<4x256xbf16>, vector<16x256xbf16> -> vector<20x256xbf16>
    %c3_80 = arith.constant 3 : index
    %c0_81 = arith.constant 0 : index
    %102 = vector.load %arg5[%c3_80, %c0_81] : memref<4x256xf32, #tpu.memory_space<vmem>>, vector<1x256xf32>
    %c3_82 = arith.constant 3 : index
    %c0_83 = arith.constant 0 : index
    %103 = vector.load %arg6[%c3_82, %c0_83] : memref<4x256xf32, #tpu.memory_space<vmem>>, vector<1x256xf32>
    %104 = vector.extract_strided_slice %101 {offsets = [0, 0], sizes = [16, 256], strides = [1, 1]} : vector<20x256xbf16> to vector<16x256xbf16>
    %c2_84 = arith.constant 2 : index
    %c0_85 = arith.constant 0 : index
    %c0_86 = arith.constant 0 : index
    %c0_87 = arith.constant 0 : index
    %105 = vector.load %arg3[%c2_84, %c0_85, %c0_86, %c0_87] : memref<3x5x256x256xbf16, #tpu.memory_space<vmem>>, vector<1x1x256x256xbf16>
    %106 = vector.shape_cast %105 : vector<1x1x256x256xbf16> to vector<256x256xbf16>
    %cst_88 = arith.constant dense<0.000000e+00> : vector<16x256xf32>
    %107 = tpu.matmul %104, %106, %cst_88 {dimension_numbers = #tpu.dot_dimension_numbers<[1], [0], [0], [1], [0, 0, 1, 1], [], []>} : vector<16x256xbf16>, vector<256x256xbf16>, vector<16x256xf32> -> vector<16x256xf32>
    %108 = vector.extract_strided_slice %101 {offsets = [1, 0], sizes = [16, 256], strides = [1, 1]} : vector<20x256xbf16> to vector<16x256xbf16>
    %c2_89 = arith.constant 2 : index
    %c1_90 = arith.constant 1 : index
    %c0_91 = arith.constant 0 : index
    %c0_92 = arith.constant 0 : index
    %109 = vector.load %arg3[%c2_89, %c1_90, %c0_91, %c0_92] : memref<3x5x256x256xbf16, #tpu.memory_space<vmem>>, vector<1x1x256x256xbf16>
    %110 = vector.shape_cast %109 : vector<1x1x256x256xbf16> to vector<256x256xbf16>
    %cst_93 = arith.constant dense<0.000000e+00> : vector<16x256xf32>
    %111 = tpu.matmul %108, %110, %cst_93 {dimension_numbers = #tpu.dot_dimension_numbers<[1], [0], [0], [1], [0, 0, 1, 1], [], []>} : vector<16x256xbf16>, vector<256x256xbf16>, vector<16x256xf32> -> vector<16x256xf32>
    %112 = arith.addf %107, %111 : vector<16x256xf32>
    %113 = vector.extract_strided_slice %101 {offsets = [2, 0], sizes = [16, 256], strides = [1, 1]} : vector<20x256xbf16> to vector<16x256xbf16>
    %c2_94 = arith.constant 2 : index
    %c2_95 = arith.constant 2 : index
    %c0_96 = arith.constant 0 : index
    %c0_97 = arith.constant 0 : index
    %114 = vector.load %arg3[%c2_94, %c2_95, %c0_96, %c0_97] : memref<3x5x256x256xbf16, #tpu.memory_space<vmem>>, vector<1x1x256x256xbf16>
    %115 = vector.shape_cast %114 : vector<1x1x256x256xbf16> to vector<256x256xbf16>
    %cst_98 = arith.constant dense<0.000000e+00> : vector<16x256xf32>
    %116 = tpu.matmul %113, %115, %cst_98 {dimension_numbers = #tpu.dot_dimension_numbers<[1], [0], [0], [1], [0, 0, 1, 1], [], []>} : vector<16x256xbf16>, vector<256x256xbf16>, vector<16x256xf32> -> vector<16x256xf32>
    %117 = arith.addf %112, %116 : vector<16x256xf32>
    %118 = vector.extract_strided_slice %101 {offsets = [3, 0], sizes = [16, 256], strides = [1, 1]} : vector<20x256xbf16> to vector<16x256xbf16>
    %c2_99 = arith.constant 2 : index
    %c3_100 = arith.constant 3 : index
    %c0_101 = arith.constant 0 : index
    %c0_102 = arith.constant 0 : index
    %119 = vector.load %arg3[%c2_99, %c3_100, %c0_101, %c0_102] : memref<3x5x256x256xbf16, #tpu.memory_space<vmem>>, vector<1x1x256x256xbf16>
    %120 = vector.shape_cast %119 : vector<1x1x256x256xbf16> to vector<256x256xbf16>
    %cst_103 = arith.constant dense<0.000000e+00> : vector<16x256xf32>
    %121 = tpu.matmul %118, %120, %cst_103 {dimension_numbers = #tpu.dot_dimension_numbers<[1], [0], [0], [1], [0, 0, 1, 1], [], []>} : vector<16x256xbf16>, vector<256x256xbf16>, vector<16x256xf32> -> vector<16x256xf32>
    %122 = arith.addf %117, %121 : vector<16x256xf32>
    %123 = vector.extract_strided_slice %101 {offsets = [4, 0], sizes = [16, 256], strides = [1, 1]} : vector<20x256xbf16> to vector<16x256xbf16>
    %c2_104 = arith.constant 2 : index
    %c4_105 = arith.constant 4 : index
    %c0_106 = arith.constant 0 : index
    %c0_107 = arith.constant 0 : index
    %124 = vector.load %arg3[%c2_104, %c4_105, %c0_106, %c0_107] : memref<3x5x256x256xbf16, #tpu.memory_space<vmem>>, vector<1x1x256x256xbf16>
    %125 = vector.shape_cast %124 : vector<1x1x256x256xbf16> to vector<256x256xbf16>
    %cst_108 = arith.constant dense<0.000000e+00> : vector<16x256xf32>
    %126 = tpu.matmul %123, %125, %cst_108 {dimension_numbers = #tpu.dot_dimension_numbers<[1], [0], [0], [1], [0, 0, 1, 1], [], []>} : vector<16x256xbf16>, vector<256x256xbf16>, vector<16x256xf32> -> vector<16x256xf32>
    %127 = arith.addf %122, %126 : vector<16x256xf32>
    %128 = vector.broadcast %102 : vector<1x256xf32> to vector<16x256xf32>
    %129 = arith.mulf %127, %128 : vector<16x256xf32>
    %130 = vector.broadcast %103 : vector<1x256xf32> to vector<16x256xf32>
    %131 = arith.addf %129, %130 : vector<16x256xf32>
    %132 = math.tanh %131 : vector<16x256xf32>
    %133 = arith.truncf %132 : vector<16x256xf32> to vector<16x256xbf16>
    %134 = tpu.concatenate %0, %133 in 0 : vector<4x256xbf16>, vector<16x256xbf16> -> vector<20x256xbf16>
    %c0_109 = arith.constant 0 : index
    %c0_110 = arith.constant 0 : index
    %135 = vector.load %arg7[%c0_109, %c0_110] : memref<1x128xf32, #tpu.memory_space<vmem>>, vector<1x128xf32>
    %c0_111 = arith.constant 0 : index
    %c0_112 = arith.constant 0 : index
    %136 = vector.load %arg8[%c0_111, %c0_112] : memref<1x128xf32, #tpu.memory_space<vmem>>, vector<1x128xf32>
    %137 = vector.extract_strided_slice %134 {offsets = [0, 0], sizes = [16, 256], strides = [1, 1]} : vector<20x256xbf16> to vector<16x256xbf16>
    %c0_113 = arith.constant 0 : index
    %c0_114 = arith.constant 0 : index
    %c0_115 = arith.constant 0 : index
    %138 = vector.load %arg4[%c0_113, %c0_114, %c0_115] : memref<5x256x128xbf16, #tpu.memory_space<vmem>>, vector<1x256x128xbf16>
    %139 = vector.shape_cast %138 : vector<1x256x128xbf16> to vector<256x128xbf16>
    %cst_116 = arith.constant dense<0.000000e+00> : vector<16x128xf32>
    %140 = tpu.matmul %137, %139, %cst_116 {dimension_numbers = #tpu.dot_dimension_numbers<[1], [0], [0], [1], [0, 0, 1, 1], [], []>} : vector<16x256xbf16>, vector<256x128xbf16>, vector<16x128xf32> -> vector<16x128xf32>
    %141 = vector.extract_strided_slice %134 {offsets = [1, 0], sizes = [16, 256], strides = [1, 1]} : vector<20x256xbf16> to vector<16x256xbf16>
    %c1_117 = arith.constant 1 : index
    %c0_118 = arith.constant 0 : index
    %c0_119 = arith.constant 0 : index
    %142 = vector.load %arg4[%c1_117, %c0_118, %c0_119] : memref<5x256x128xbf16, #tpu.memory_space<vmem>>, vector<1x256x128xbf16>
    %143 = vector.shape_cast %142 : vector<1x256x128xbf16> to vector<256x128xbf16>
    %cst_120 = arith.constant dense<0.000000e+00> : vector<16x128xf32>
    %144 = tpu.matmul %141, %143, %cst_120 {dimension_numbers = #tpu.dot_dimension_numbers<[1], [0], [0], [1], [0, 0, 1, 1], [], []>} : vector<16x256xbf16>, vector<256x128xbf16>, vector<16x128xf32> -> vector<16x128xf32>
    %145 = arith.addf %140, %144 : vector<16x128xf32>
    %146 = vector.extract_strided_slice %134 {offsets = [2, 0], sizes = [16, 256], strides = [1, 1]} : vector<20x256xbf16> to vector<16x256xbf16>
    %c2_121 = arith.constant 2 : index
    %c0_122 = arith.constant 0 : index
    %c0_123 = arith.constant 0 : index
    %147 = vector.load %arg4[%c2_121, %c0_122, %c0_123] : memref<5x256x128xbf16, #tpu.memory_space<vmem>>, vector<1x256x128xbf16>
    %148 = vector.shape_cast %147 : vector<1x256x128xbf16> to vector<256x128xbf16>
    %cst_124 = arith.constant dense<0.000000e+00> : vector<16x128xf32>
    %149 = tpu.matmul %146, %148, %cst_124 {dimension_numbers = #tpu.dot_dimension_numbers<[1], [0], [0], [1], [0, 0, 1, 1], [], []>} : vector<16x256xbf16>, vector<256x128xbf16>, vector<16x128xf32> -> vector<16x128xf32>
    %150 = arith.addf %145, %149 : vector<16x128xf32>
    %151 = vector.extract_strided_slice %134 {offsets = [3, 0], sizes = [16, 256], strides = [1, 1]} : vector<20x256xbf16> to vector<16x256xbf16>
    %c3_125 = arith.constant 3 : index
    %c0_126 = arith.constant 0 : index
    %c0_127 = arith.constant 0 : index
    %152 = vector.load %arg4[%c3_125, %c0_126, %c0_127] : memref<5x256x128xbf16, #tpu.memory_space<vmem>>, vector<1x256x128xbf16>
    %153 = vector.shape_cast %152 : vector<1x256x128xbf16> to vector<256x128xbf16>
    %cst_128 = arith.constant dense<0.000000e+00> : vector<16x128xf32>
    %154 = tpu.matmul %151, %153, %cst_128 {dimension_numbers = #tpu.dot_dimension_numbers<[1], [0], [0], [1], [0, 0, 1, 1], [], []>} : vector<16x256xbf16>, vector<256x128xbf16>, vector<16x128xf32> -> vector<16x128xf32>
    %155 = arith.addf %150, %154 : vector<16x128xf32>
    %156 = vector.extract_strided_slice %134 {offsets = [4, 0], sizes = [16, 256], strides = [1, 1]} : vector<20x256xbf16> to vector<16x256xbf16>
    %c4_129 = arith.constant 4 : index
    %c0_130 = arith.constant 0 : index
    %c0_131 = arith.constant 0 : index
    %157 = vector.load %arg4[%c4_129, %c0_130, %c0_131] : memref<5x256x128xbf16, #tpu.memory_space<vmem>>, vector<1x256x128xbf16>
    %158 = vector.shape_cast %157 : vector<1x256x128xbf16> to vector<256x128xbf16>
    %cst_132 = arith.constant dense<0.000000e+00> : vector<16x128xf32>
    %159 = tpu.matmul %156, %158, %cst_132 {dimension_numbers = #tpu.dot_dimension_numbers<[1], [0], [0], [1], [0, 0, 1, 1], [], []>} : vector<16x256xbf16>, vector<256x128xbf16>, vector<16x128xf32> -> vector<16x128xf32>
    %160 = arith.addf %155, %159 : vector<16x128xf32>
    %161 = vector.broadcast %135 : vector<1x128xf32> to vector<16x128xf32>
    %162 = arith.mulf %160, %161 : vector<16x128xf32>
    %163 = vector.broadcast %136 : vector<1x128xf32> to vector<16x128xf32>
    %164 = arith.addf %162, %163 : vector<16x128xf32>
    %c0_133 = arith.constant 0 : index
    %c0_134 = arith.constant 0 : index
    %c0_135 = arith.constant 0 : index
    %165 = vector.load %arg9[%c0_133, %c0_134, %c0_135] : memref<1x16x128xf32, #tpu.memory_space<vmem>>, vector<1x16x128xf32>
    %166 = vector.shape_cast %165 : vector<1x16x128xf32> to vector<16x128xf32>
    %167 = vector.shape_cast %164 : vector<16x128xf32> to vector<1x16x128xf32>
    tpu.vector_store %arg9[%c0_133, %c0_134, %c0_135], %167 {strides = array<i32>} : memref<1x16x128xf32, #tpu.memory_space<vmem>>, vector<1x16x128xf32>,
    return
  }
  func.func @transform_0(%arg0: i32) -> (i32, i32, i32) {
    %c0_i32 = arith.constant 0 : i32
    %c0_i32_0 = arith.constant 0 : i32
    %c0_i32_1 = arith.constant 0 : i32
    return %arg0, %c0_i32, %c0_i32_0 : i32, i32, i32
  }
  func.func @transform_1(%arg0: i32) -> (i32, i32, i32) {
    %c0_i32 = arith.constant 0 : i32
    %c0_i32_0 = arith.constant 0 : i32
    %c0_i32_1 = arith.constant 0 : i32
    %c0_i32_2 = arith.constant 0 : i32
    return %c0_i32, %c0_i32_0, %c0_i32_1 : i32, i32, i32
  }
  func.func @transform_2(%arg0: i32) -> (i32, i32, i32, i32) {
    %c0_i32 = arith.constant 0 : i32
    %c0_i32_0 = arith.constant 0 : i32
    %c0_i32_1 = arith.constant 0 : i32
    %c0_i32_2 = arith.constant 0 : i32
    %c0_i32_3 = arith.constant 0 : i32
    return %c0_i32, %c0_i32_0, %c0_i32_1, %c0_i32_2 : i32, i32, i32, i32
  }
  func.func @transform_3(%arg0: i32) -> (i32, i32, i32) {
    %c0_i32 = arith.constant 0 : i32
    %c0_i32_0 = arith.constant 0 : i32
    %c0_i32_1 = arith.constant 0 : i32
    %c0_i32_2 = arith.constant 0 : i32
    return %c0_i32, %c0_i32_0, %c0_i32_1 : i32, i32, i32
  }
  func.func @transform_4(%arg0: i32) -> (i32, i32) {
    %c0_i32 = arith.constant 0 : i32
    %c0_i32_0 = arith.constant 0 : i32
    %c0_i32_1 = arith.constant 0 : i32
    return %c0_i32, %c0_i32_0 : i32, i32
  }
  func.func @transform_5(%arg0: i32) -> (i32, i32) {
    %c0_i32 = arith.constant 0 : i32
    %c0_i32_0 = arith.constant 0 : i32
    %c0_i32_1 = arith.constant 0 : i32
    return %c0_i32, %c0_i32_0 : i32, i32
  }
  func.func @transform_6(%arg0: i32) -> (i32, i32) {
    %c0_i32 = arith.constant 0 : i32
    %c0_i32_0 = arith.constant 0 : i32
    %c0_i32_1 = arith.constant 0 : i32
    return %c0_i32, %c0_i32_0 : i32, i32
  }
  func.func @transform_7(%arg0: i32) -> (i32, i32) {
    %c0_i32 = arith.constant 0 : i32
    %c0_i32_0 = arith.constant 0 : i32
    %c0_i32_1 = arith.constant 0 : i32
    return %c0_i32, %c0_i32_0 : i32, i32
  }
  func.func @transform_8(%arg0: i32) -> (i32, i32, i32) {
    %c0_i32 = arith.constant 0 : i32
    %c0_i32_0 = arith.constant 0 : i32
    %c0_i32_1 = arith.constant 0 : i32
    return %arg0, %c0_i32, %c0_i32_0 : i32, i32, i32
  }
}

</mosaic_0001>

<bundles_post_ra>
// kernel: tpu_custom_call.1
= control target key start
LH: loop header
LB: loop body
LE: loop exit
PB: predicated region body
PF: predicated region fallthrough
CT: control target
= control target key end

     0   :  { %s8840_s0 = inlined_call_operand.vmem [shape: bf16[2,20,128], index: 0, kind: input, shape index: {}]   ;;  %s8841_s1 = inlined_call_operand.hbm [shape: bf16[5,128,256], index: 1, kind: input, shape index: {}]   ;;  %s8842_s2 = inlined_call_operand.hbm [shape: bf16[3,5,256,256], index: 2, kind: input, shape index: {}]   ;;  %s8843_s3 = inlined_call_operand.hbm [shape: bf16[5,256,128], index: 3, kind: input, shape index: {}]   ;;  %s8844_s4 = inlined_call_operand.hbm [shape: f32[4,256], index: 4, kind: input, shape index: {}]   ;;  %s8845_s5 = inlined_call_operand.hbm [shape: f32[4,256], index: 5, kind: input, shape index: {}]   ;;  %s8846_s6 = inlined_call_operand.hbm [shape: f32[1,128], index: 6, kind: input, shape index: {}]   ;;  %s8847_s7 = inlined_call_operand.hbm [shape: f32[1,128], index: 7, kind: input, shape index: {}]   ;;  %s8848_s8 = inlined_call_operand.hbm [shape: f32[2,16,128], index: 8, kind: output, shape index: {}]  }
   0x1   :  { %8853 = sst [smem:[#allocation20_spill]] %s8841_s1 }
   0x2   :  { %13 = vsyncpa [#allocation3], 0 }
   0x3   :  { %14 = vsyncpa [#allocation6], 0 }
   0x4   :  { %15 = vsyncpa [#allocation9], 0 }
   0x5   :  { %16 = vsyncpa [#allocation12], 0 }
   0x6   :  { %17 = vsyncpa [#allocation4], 0 }
   0x7   :  { %19 = vsyncpa [#allocation4 + $0x1], 0  ;;  %s8380_s27 = smov 0   ;;  %s8382_s28 = smov 0  }
   0x8   :  { %s8384_s29 = smov 0   ;;  %s8386_s30 = smov 0  }
   0x9 LB: > { %s8401_s9 = sadd.s32 4294967295, %s8318_s30   ;;  %s6192_s10 = sadd.s32 4294967294, %s8318_s30   ;;  %s8318_s30 = sphi %s8386_s30, %s8877_s30   ;;  %s8314_s29 = sphi %s8384_s29, %s8876_s29   ;;  %s8310_s28 = sphi %s8382_s28, %s8875_s28   ;;  %s8306_s27 = sphi %s8380_s27, %s8874_s27  }
   0xa   : > { %s8405_s11 = sadd.s32 1, %s8318_s30   ;;  %s205_s12 = sadd.s32 1, %s8314_s29 }
   0xb   : > { %s202_s13 = ssub.s32 %s8318_s30, %s8405_s11  ;;  %p215_p0 = scmp.ne.s32.totalorder %s8314_s29, %s8310_s28 }
   0xc   : > { %p203_p1 = scmp.eq.s32.totalorder %s202_s13, 0  ;;  %p216_p2 = scmp.eq.s32.totalorder %s8401_s9, 1 }
   0xd   : > { %p221_p3 = scmp.ne.s32.totalorder %s8310_s28, %s8306_s27  ;;  %p222_p4 = scmp.eq.s32.totalorder %s6192_s10, 1 }
   0xe   : > { %s8416_s14 = scalar_select %p203_p1, %s8314_s29, %s205_s12  }
   0xf   : > { %p8418_p5 = por %p216_p2, %p215_p0  ;;  %p8422_p6 = por %p222_p4, %p221_p3 }
  0x10   : > { %p6193_p7 = scmp.ge.s32.totalorder %s8318_s30, 1  ;;  %p229_p8 = scmp.lt.s32.totalorder %s8318_s30, 3 }
  0x11   : > { %s8854_s15 = scalar_select %p8418_p5, 1, 0 }
  0x12   : > { %s8855_s16 = scalar_select %p8422_p6, 1, 0 }
  0x13   : > { %p8849_p9 = scmp.eq.s32.totalorder %s8401_s9, 0  ;;  %p8429_p10 = pnand %p6193_p7, %p229_p8 }
  0x14   : > { %s8320_s18 = smov [#allocation5]   ;;  %s8321_s21 = smov [#allocation8]  }
  0x15   : > { %p7019_p11 = pneg %p8429_p10  ;;  %s254_s19 = sshll.u32 %s8320_s18, 4  ;;  %s255_s19 = int_to_ptr.vmem [resolvable:$true] %s254_s19 }
  0x16   : > { %s281_s22 = sshll.u32 %s8321_s21, 4  ;;  %s8322_s23 = smov [#allocation11]   ;;  %s282_s22 = int_to_ptr.vmem [resolvable:$true] %s281_s22 }
  0x17   : > { %p8437_p12 = pnand %p8849_p9, %p7019_p11  ;;  %s303_s24 = sshll.u32 %s8322_s23, 4  ;;  %s304_s24 = int_to_ptr.vmem [resolvable:$true] %s303_s24 }
  0x18   : > { %s8071_s26 = scalar_lea.vmem %s255_s19, 61440  ;;  %p8079_p3 = scmp.lt.s32.totalorder %s255_s19, %s255_s19 }
  0x19   : > { %p8443_p13 = pneg %p8437_p12  ;;  %p8072_p0 = scmp.ne.s32.totalorder %s255_s19, %s8071_s26 }
  0x1a   : > { %p8080_p4 = scmp.lt.s32.totalorder %s8071_s26, %s8071_s26 }
  0x1b   : > { %p8074_p1 = pnand %p8072_p0, %p8443_p13 }
  0x1c   : > { %p8081_p7 = por %p8080_p4, %p8079_p3 }
  0x1d   : > { %p8075_p2 = pneg %p8074_p1 }
  0x1f   : > { %p8082_p8 = pnand %p8081_p7, %p8075_p2 }
  0x21   : > { %8085 = shalt.err (!%p8082_p8)
}
  0x22   : > { %s8851_s10 = smov 128   ;;  %s8852_s12 = smov 8  }
  0x23   : > { %7025 = dma.hbm_to_vmem [thread:$0]  (!%p8437_p12), %s8842_s2, 61440, %s255_s19, [#allocation6], %s8851_s10, %s8851_s10, %s8852_s12  }
  0x24   : > { %s8097_s21 = scalar_lea.vmem %s282_s22, 128  ;;  %p8105_p3 = scmp.lt.s32.totalorder %s282_s22, %s282_s22 }
  0x25   : > { %p8098_p11 = scmp.ne.s32.totalorder %s282_s22, %s8097_s21  ;;  %p8106_p2 = scmp.lt.s32.totalorder %s8097_s21, %s8097_s21 }
  0x27   : > { %p8100_p0 = pnand %p8098_p11, %p8443_p13  ;;  %p8107_p4 = por %p8106_p2, %p8105_p3 }
  0x29   : > { %p8101_p1 = pneg %p8100_p0 }
  0x2b   : > { %p8108_p7 = pnand %p8107_p4, %p8101_p1 }
  0x2d   : > { %8111 = shalt.err (!%p8108_p7)
}
  0x2e   : > { %7031 = dma.hbm_to_vmem [thread:$0]  (!%p8437_p12), %s8844_s4, 128, %s282_s22, [#allocation9]  }
  0x2f   : > { %s8123_s13 = scalar_lea.vmem %s304_s24, 16  ;;  %s8130_s19 = scalar_lea.vmem %s304_s24, 32 }
  0x30   : > { %p8124_p8 = scmp.ne.s32.totalorder %s304_s24, %s8123_s13  ;;  %p8131_p11 = scmp.lt.s32.totalorder %s304_s24, %s304_s24 }
  0x31   : > { %p8132_p0 = scmp.lt.s32.totalorder %s8130_s19, %s8123_s13 }
  0x32   : > { %p8126_p9 = pnand %p8124_p8, %p8443_p13 }
  0x33   : > { %p8133_p5 = por %p8132_p0, %p8131_p11 }
  0x34   : > { %p8127_p6 = pneg %p8126_p9 }
  0x36   : > { %p8134_p3 = pnand %p8133_p5, %p8127_p6 }
  0x38   : > { %8137 = shalt.err (!%p8134_p3)
}
  0x39   : > { %7037 = dma.hbm_to_vmem [thread:$0]  (!%p8437_p12), %s8846_s6, 16, %s304_s24, [#allocation12]  }
  0x3a   : > { %s8325_s22 = smov [#allocation2]   ;;  %s8326_s26 = smov [#allocation7]  }
  0x3b   : > { %s241_s23 = sshll.u32 %s8325_s22, 4  ;;  %s267_s10 = sshll.u32 %s8326_s26, 4  ;;  %s242_s23 = int_to_ptr.vmem [resolvable:$true] %s241_s23  ;;  %s268_s10 = int_to_ptr.vmem [resolvable:$true] %s267_s10 }
  0x3c   : > { %s8149_s12 = scalar_lea.vmem %s242_s23, 10240  ;;  %p8157_p4 = scmp.lt.s32.totalorder %s242_s23, %s242_s23 }
  0x3d   : > { %p8150_p9 = scmp.ne.s32.totalorder %s242_s23, %s8149_s12  ;;  %p8158_p5 = scmp.lt.s32.totalorder %s8149_s12, %s8149_s12 }
  0x3f   : > { %p8152_p1 = pnand %p8150_p9, %p8443_p13  ;;  %p8159_p6 = por %p8158_p5, %p8157_p4 }
  0x41   : > { %p8153_p2 = pneg %p8152_p1 }
  0x43   : > { %p8160_p7 = pnand %p8159_p6, %p8153_p2 }
  0x45   : > { %8163 = shalt.err (!%p8160_p7)
}
  0x46   : > { %s8859_s13 = smov 8   ;;  %s8860_s19 = smov 128  }
  0x47   : > { %s8861_s1 = sld [smem:[#allocation20_spill]]  ;;  %s8175_s21 = scalar_lea.vmem %s268_s10, 10240 }
  0x48   : > { %p8176_p8 = scmp.ne.s32.totalorder %s268_s10, %s8175_s21  ;;  %p8183_p3 = scmp.lt.s32.totalorder %s268_s10, %s268_s10 }
  0x49   : > { %p8184_p9 = scmp.lt.s32.totalorder %s8175_s21, %s8175_s21 }
  0x4a   : > { %p8178_p11 = pnand %p8176_p8, %p8443_p13 }
  0x4b   : > { %p8185_p1 = por %p8184_p9, %p8183_p3 }
  0x4c   : > { %p8179_p0 = pneg %p8178_p11 }
  0x4d   : > { %7022 = dma.hbm_to_vmem [thread:$0]  (!%p8437_p12), %s8861_s1, 10240, %s242_s23, [#allocation3], %s8860_s19, %s8860_s19, %s8859_s13  }
  0x4e   : > { %p8186_p2 = pnand %p8185_p1, %p8179_p0 }
  0x50   : > { %8189 = shalt.err (!%p8186_p2)
}
  0x51   : > { %s8327_s12 = smov 64   ;;  %s8328_s22 = smov 4  }
  0x52   : > { %7028 = dma.hbm_to_vmem [thread:$0]  (!%p8437_p12), %s8843_s3, 10240, %s268_s10, [#allocation6], %s8327_s12, %s8327_s12, %s8328_s22  }
  0x53   : > { %s8329_s23 = smov [#allocation10]   ;;  %s8330_s19 = smov [#allocation13]  }
  0x54   : > { %s292_s13 = sshll.u32 %s8329_s23, 4  ;;  %s314_s18 = sshll.u32 %s8330_s19, 4  ;;  %s293_s13 = int_to_ptr.vmem [resolvable:$true] %s292_s13  ;;  %s315_s18 = int_to_ptr.vmem [resolvable:$true] %s314_s18 }
  0x55   : > { %s8201_s1 = scalar_lea.vmem %s293_s13, 128  ;;  %p8209_p7 = scmp.lt.s32.totalorder %s293_s13, %s293_s13 }
  0x56   : > { %p8202_p4 = scmp.ne.s32.totalorder %s293_s13, %s8201_s1  ;;  %p8210_p8 = scmp.lt.s32.totalorder %s8201_s1, %s8201_s1 }
  0x58   : > { %p8204_p5 = pnand %p8202_p4, %p8443_p13  ;;  %p8211_p11 = por %p8210_p8, %p8209_p7 }
  0x5a   : > { %p8205_p6 = pneg %p8204_p5 }
  0x5c   : > { %p8212_p0 = pnand %p8211_p11, %p8205_p6 }
  0x5e   : > { %8215 = shalt.err (!%p8212_p0)
}
  0x5f   : > { %7034 = dma.hbm_to_vmem [thread:$0]  (!%p8437_p12), %s8845_s5, 128, %s293_s13, [#allocation9]  }
  0x60   : > { %s8227_s10 = scalar_lea.vmem %s315_s18, 16  ;;  %s8234_s12 = scalar_lea.vmem %s315_s18, 32 }
  0x61   : > { %p8228_p3 = scmp.ne.s32.totalorder %s315_s18, %s8227_s10  ;;  %p8235_p2 = scmp.lt.s32.totalorder %s315_s18, %s315_s18 }
  0x62   : > { %p8236_p4 = scmp.lt.s32.totalorder %s8234_s12, %s8227_s10 }
  0x63   : > { %p8230_p9 = pnand %p8228_p3, %p8443_p13 }
  0x64   : > { %p8237_p5 = por %p8236_p4, %p8235_p2 }
  0x65   : > { %p8231_p1 = pneg %p8230_p9 }
  0x67   : > { %p8238_p7 = pnand %p8237_p5, %p8231_p1 }
  0x69   : > { %8241 = shalt.err (!%p8238_p7)
}
  0x6a   : > { %7040 = dma.hbm_to_vmem [thread:$0]  (!%p8437_p12), %s8847_s7, 16, %s315_s18, [#allocation12]  }
  0x6b   : > { %335 = sbr.rel (%p8429_p10) target bundleno = 1819 (0x71b), region = 52  ;;  %p8862_p6 = scmp.eq.s32.totalorder (!%p8429_p10), %s8401_s9, 0 }
  0x70   : > { %8285 = dma.done.wait (%p8862_p6), [#allocation3], 10240   ;;  %p8863_p13 = pmov %p8862_p6 }
  0x71   : > { %p8864_p8 = pmov %p8862_p6 }
  0x72   : > { %8287 = vsyncadd (%p8863_p13), [#allocation3], 4294957056 }
  0x73   : > { %8289 = dma.done.wait (%p8864_p8), [#allocation6], 71680   ;;  %p8865_p11 = pmov %p8862_p6 }
  0x74   : > { %p8866_p0 = pmov %p8862_p6 }
  0x75   : > { %8291 = vsyncadd (%p8865_p11), [#allocation6], 4294895616 }
  0x76   : > { %8293 = dma.done.wait (%p8866_p0), [#allocation9], 256   ;;  %p8867_p12 = pmov %p8866_p0 }
  0x77   : > { %p8868_p10 = pmov %p8866_p0 }
  0x78   : > { %8295 = vsyncadd (%p8867_p12), [#allocation9], 4294967040 }
  0x79   : > { %8297 = dma.done.wait (%p8868_p10), [#allocation12], 32   ;;  %p8869_p3 = pmov %p8866_p0 }
  0x7a   : > { %v8331_v0 = vmov 0   ;;  %v7106_v1 = vld [vmem:[#allocation2 + $0xf4] ss:$8 sps:$4 sm:$0xff]   ;;  %v7110_v3 = vld [vmem:[#allocation2 + $0xf0] ss:$8 sps:$4 sm:$0xff]   ;;  %p393_p9 = scmp.lt.s32.totalorder %s8401_s9, 1 }
  0x7b   : > { %8299 = vsyncadd (%p8869_p3), [#allocation12], 4294967264  ;;  %571 = vmatprep.mubr.bf16.mxu0 %v8331_v0  ;;  %695 = vmatprep.mubr.bf16.mxu1 %v8331_v0  ;;  %v7108_v2 = vld [vmem:[#allocation2 + $0x74] ss:$8 sps:$4 sm:$0xff]   ;;  %v7111_v4 = vld [vmem:[#allocation2 + $0x70] ss:$8 sps:$4 sm:$0xff]  }
  0x7c   : > { %539 = vmatprep.subr.bf16.mxu0 %v7106_v1  ;;  %663 = vmatprep.subr.bf16.mxu1 %v7108_v2  ;;  %v7112_v5 = vld [vmem:[#allocation2 + $0xe4] ss:$8 sps:$4 sm:$0xff]   ;;  %v7116_v7 = vld [vmem:[#allocation2 + $0xe0] ss:$8 sps:$4 sm:$0xff]   ;;  %v7118_v9 = vld [vmem:[#allocation2 + $0xd4] ss:$8 sps:$4 sm:$0xff]  }
  0x7d   : > { %540 = vmatpush1.bf16.msra.mxu0 %v7110_v3  ;;  %664 = vmatpush1.bf16.msra.mxu1 %v7111_v4  ;;  %v7114_v6 = vld [vmem:[#allocation2 + $0x64] ss:$8 sps:$4 sm:$0xff]   ;;  %v7117_v8 = vld [vmem:[#allocation2 + $0x60] ss:$8 sps:$4 sm:$0xff]   ;;  %v7120_v10 = vld [vmem:[#allocation2 + $0x54] ss:$8 sps:$4 sm:$0xff]  }
  0x7e   : > { %541 = vmatprep.subr.bf16.mxu0 %v7112_v5  ;;  %665 = vmatprep.subr.bf16.mxu1 %v7114_v6  ;;  %v7122_v11 = vld [vmem:[#allocation2 + $0xd0] ss:$8 sps:$4 sm:$0xff]   ;;  %v7124_v13 = vld [vmem:[#allocation2 + $0xc4] ss:$8 sps:$4 sm:$0xff]   ;;  %v7128_v15 = vld [vmem:[#allocation2 + $0xc0] ss:$8 sps:$4 sm:$0xff]  }
  0x7f   : > { %v7123_v12 = vld [vmem:[#allocation2 + $0x50] ss:$8 sps:$4 sm:$0xff]   ;;  %v7126_v14 = vld [vmem:[#allocation2 + $0x44] ss:$8 sps:$4 sm:$0xff]   ;;  %s394_s17 = scalar_select %p393_p9, %s8401_s9, 1  ;;  %vm1027_vm1 = vcmask 1045504  }
  0x80   : > { %v7129_v16 = vld [vmem:[#allocation2 + $0x40] ss:$8 sps:$4 sm:$0xff]   ;;  %v7130_v17 = vld [vmem:[#allocation2 + $0xb4] ss:$8 sps:$4 sm:$0xff]   ;;  %v7134_v19 = vld [vmem:[#allocation2 + $0xb0] ss:$8 sps:$4 sm:$0xff]  }
  0x81   : > { %542 = vmatpush1.bf16.msra.mxu0 %v7116_v7  ;;  %666 = vmatpush1.bf16.msra.mxu1 %v7117_v8  ;;  %v7132_v18 = vld [vmem:[#allocation2 + $0x34] ss:$8 sps:$4 sm:$0xff]   ;;  %v7135_v20 = vld [vmem:[#allocation2 + $0x30] ss:$8 sps:$4 sm:$0xff]   ;;  %s6988_s20 = smul.u32 12, %s394_s17  ;;  %vm723_vm2 = vcmask 1046528  }
  0x82   : > { %543 = vmatprep.subr.bf16.mxu0 %v7118_v9  ;;  %667 = vmatprep.subr.bf16.mxu1 %v7120_v10  ;;  %v7136_v21 = vld [vmem:[#allocation2 + $0xa4] ss:$8 sps:$4 sm:$0xff]   ;;  %v7140_v23 = vld [vmem:[#allocation2 + $0xa0] ss:$8 sps:$4 sm:$0xff]   ;;  %v7142_v25 = vld [vmem:[#allocation2 + $0x94] ss:$8 sps:$4 sm:$0xff]  }
  0x83   : > { %v7138_v22 = vld [vmem:[#allocation2 + $0x24] ss:$8 sps:$4 sm:$0xff]   ;;  %s397_s23 = scalar_lea.vmem %s8840_s0, %s6988_s20  ;;  %v7141_v24 = vld [vmem:[#allocation2 + $0x20] ss:$8 sps:$4 sm:$0xff]   ;;  %v7144_v26 = vld [vmem:[#allocation2 + $0x14] ss:$8 sps:$4 sm:$0xff]  }
  0x84   : > { %v8527_v27 = vld [vmem:[%s397_s23] sm:$0xff]   ;;  %v8529_v28 = vld [vmem:[%s397_s23 + $0x8] ss:$0 sps:$4 sm:$0x33]   ;;  %v7146_v29 = vld [vmem:[#allocation2 + $0x90] ss:$8 sps:$4 sm:$0xff]  }
  0x85   : > { %544 = vmatpush1.bf16.msra.mxu0 %v7122_v11  ;;  %668 = vmatpush1.bf16.msra.mxu1 %v7123_v12  ;;  %v7147_v30 = vld [vmem:[#allocation2 + $0x10] ss:$8 sps:$4 sm:$0xff]   ;;  %v447_v31 = vshrl.u32 %v8527_v27, 16  ;;  %v449_v32 = vshll.u32 %v8527_v27, 16  ;;  %v454_v33 = vshll.u32 %v8529_v28, 16  ;;  %v1028_v43 = vrot.slane %v8527_v27, 2 }
  0x86   : > { %545 = vmatprep.subr.bf16.mxu0 %v7124_v13  ;;  %669 = vmatprep.subr.bf16.mxu1 %v7126_v14  ;;  %v7148_v34 = vld [vmem:[#allocation2 + $0x84] ss:$8 sps:$4 sm:$0xff]   ;;  %vm445_vm0 = vsmask.f32 7424  ;;  %v7152_v37 = vld [vmem:[#allocation2 + $0x80] ss:$8 sps:$4 sm:$0xff]  }
  0x87   : > { %v7150_v35 = vld [vmem:[#allocation2 + $0x4] ss:$8 sps:$4 sm:$0xff]   ;;  %v451_v36 = vrot.slane %v449_v32, 1  ;;  %v7153_v38 = vld [vmem:[#allocation2] ss:$8 sps:$4 sm:$0xff]   ;;  %v456_v40 = vrot.slane %v454_v33, 1 }
  0x88   : > { %v7158_v41 = vld [vmem:[#allocation2 + $0x174] ss:$8 sps:$4 sm:$0xff]   ;;  %v1029_v44 = vrot.slane %v8529_v28, 2  ;;  %v7156_v46 = vld [vmem:[#allocation2 + $0x170] ss:$8 sps:$4 sm:$0xff]   ;;  %v876_v6 = vshrl.u32 %v8529_v28, 16 }
  0x89   : > { %546 = vmatpush1.bf16.msra.mxu0 %v7128_v15  ;;  %670 = vmatpush1.bf16.msra.mxu1 %v7129_v16  ;;  %v452_v39 = vor.u32 %v451_v36, %v447_v31  ;;  %v7161_v42 = vld [vmem:[#allocation2 + $0x1f4] ss:$8 sps:$4 sm:$0xff]   ;;  %v7159_v47 = vld [vmem:[#allocation2 + $0x1f0] ss:$8 sps:$4 sm:$0xff]   ;;  %v7164_v48 = vld [vmem:[#allocation2 + $0x164] ss:$8 sps:$4 sm:$0xff]  }
  0x8a   : > { %547 = vmatprep.subr.bf16.mxu0 %v7130_v17  ;;  %671 = vmatprep.subr.bf16.mxu1 %v7132_v18  ;;  %v7167_v49 = vld [vmem:[#allocation2 + $0x1e4] ss:$8 sps:$4 sm:$0xff]   ;;  %v8544_v50 = vsel %vm1027_vm1, %v1028_v43, %v1029_v44  ;;  %v7162_v51 = vld [vmem:[#allocation2 + $0x160] ss:$8 sps:$4 sm:$0xff]   ;;  %v7170_v53 = vld [vmem:[#allocation2 + $0x154] ss:$8 sps:$4 sm:$0xff]  }
  0x8b   : > { %v457_v45 = vsel %vm445_vm0, %v452_v39, %v456_v40  ;;  %v7165_v52 = vld [vmem:[#allocation2 + $0x1e0] ss:$8 sps:$4 sm:$0xff]   ;;  %v7173_v54 = vld [vmem:[#allocation2 + $0x1d4] ss:$8 sps:$4 sm:$0xff]   ;;  %v7168_v55 = vld [vmem:[#allocation2 + $0x150] ss:$8 sps:$4 sm:$0xff]  }
  0x8c   : > { %v7171_v56 = vld [vmem:[#allocation2 + $0x1d0] ss:$8 sps:$4 sm:$0xff]   ;;  %v7176_v57 = vld [vmem:[#allocation2 + $0x144] ss:$8 sps:$4 sm:$0xff]   ;;  %v7174_v59 = vld [vmem:[#allocation2 + $0x140] ss:$8 sps:$4 sm:$0xff]  }
  0x8d   : > { %548 = vmatpush1.bf16.msra.mxu0 %v7134_v19  ;;  %672 = vmatpush1.bf16.msra.mxu1 %v7135_v20  ;;  %v7179_v58 = vld [vmem:[#allocation2 + $0x1c4] ss:$8 sps:$4 sm:$0xff]   ;;  %v7177_v60 = vld [vmem:[#allocation2 + $0x1c0] ss:$8 sps:$4 sm:$0xff]   ;;  %v7182_v61 = vld [vmem:[#allocation2 + $0x134] ss:$8 sps:$4 sm:$0xff]  }
  0x8e   : > { %549 = vmatprep.subr.bf16.mxu0 %v7136_v21  ;;  %673 = vmatprep.subr.bf16.mxu1 %v7138_v22  ;;  %v7185_v62 = vld [vmem:[#allocation2 + $0x1b4] ss:$8 sps:$4 sm:$0xff]   ;;  %v7180_v63 = vld [vmem:[#allocation2 + $0x130] ss:$8 sps:$4 sm:$0xff]   ;;  %v7188_v2 = vld [vmem:[#allocation2 + $0x124] ss:$8 sps:$4 sm:$0xff]  }
  0x8f   : > { %v7183_v1 = vld [vmem:[#allocation2 + $0x1b0] ss:$8 sps:$4 sm:$0xff]   ;;  %v7191_v3 = vld [vmem:[#allocation2 + $0x1a4] ss:$8 sps:$4 sm:$0xff]   ;;  %v7186_v4 = vld [vmem:[#allocation2 + $0x120] ss:$8 sps:$4 sm:$0xff]  }
  0x90   : > { %v7189_v5 = vld [vmem:[#allocation2 + $0x1a0] ss:$8 sps:$4 sm:$0xff]   ;;  %v7194_v7 = vld [vmem:[#allocation2 + $0x114] ss:$8 sps:$4 sm:$0xff]   ;;  %v7192_v9 = vld [vmem:[#allocation2 + $0x110] ss:$8 sps:$4 sm:$0xff]  }
  0x91   : > { %550 = vmatpush1.bf16.msra.mxu0 %v7140_v23  ;;  %674 = vmatpush1.bf16.msra.mxu1 %v7141_v24  ;;  %v7197_v8 = vld [vmem:[#allocation2 + $0x194] ss:$8 sps:$4 sm:$0xff]   ;;  %v7195_v10 = vld [vmem:[#allocation2 + $0x190] ss:$8 sps:$4 sm:$0xff]   ;;  %v7200_v11 = vld [vmem:[#allocation2 + $0x104] ss:$8 sps:$4 sm:$0xff]  }
  0x92   : > { %551 = vmatprep.subr.bf16.mxu0 %v7142_v25  ;;  %675 = vmatprep.subr.bf16.mxu1 %v7144_v26  ;;  %v7203_v12 = vld [vmem:[#allocation2 + $0x184] ss:$8 sps:$4 sm:$0xff]   ;;  %v873_v13 = vrot.slane %v447_v31, 1  ;;  %v874_v14 = vrot.slane %v449_v32, 2  ;;  %v878_v15 = vrot.slane %v876_v6, 1  ;;  %v879_v16 = vrot.slane %v454_v33, 2 }
  0x93   : > { %v7198_v17 = vld [vmem:[#allocation2 + $0x100] ss:$8 sps:$4 sm:$0xff]   ;;  %v7206_v19 = vld [vmem:[#allocation2 + $0x274] ss:$8 sps:$4 sm:$0xff]   ;;  %v724_v20 = vrot.slane %v8527_v27, 1  ;;  %v725_v21 = vrot.slane %v8529_v28, 1 }
  0x94   : > { %v7201_v18 = vld [vmem:[#allocation2 + $0x180] ss:$8 sps:$4 sm:$0xff]   ;;  %v875_v22 = vor.u32 %v874_v14, %v873_v13  ;;  %v880_v23 = vor.u32 %v879_v16, %v878_v15  ;;  %vm872_vm3 = vsmask.f32 6400  ;;  %v7204_v24 = vld [vmem:[#allocation2 + $0x270] ss:$8 sps:$4 sm:$0xff]  }
  0x95   : > { %552 = vmatpush1.bf16.msra.mxu0 %v7146_v29  ;;  %676 = vmatpush1.bf16.msra.mxu1 %v7147_v30  ;;  %v7209_v25 = vld [vmem:[#allocation2 + $0x264] ss:$8 sps:$4 sm:$0xff]   ;;  %v726_v26 = vsel %vm723_vm2, %v724_v20, %v725_v21  ;;  %v7207_v30 = vld [vmem:[#allocation2 + $0x260] ss:$8 sps:$4 sm:$0xff]   ;;  %v7210_v28 = vld [vmem:[#allocation2 + $0x250] ss:$8 sps:$4 sm:$0xff]  }
  0x96   : > { %553 = vmatprep.subr.bf16.mxu0 %v7148_v34  ;;  %677 = vmatprep.subr.bf16.mxu1 %v7150_v35  ;;  %v881_v29 = vsel %vm872_vm3, %v875_v22, %v880_v23  ;;  %v7215_v31 = vld [vmem:[#allocation2 + $0x244] ss:$8 sps:$4 sm:$0xff]   ;;  %v7213_v32 = vld [vmem:[#allocation2 + $0x240] ss:$8 sps:$4 sm:$0xff]   ;;  %v7218_v33 = vld [vmem:[#allocation2 + $0x234] ss:$8 sps:$4 sm:$0xff]  }
  0x97   : > { %v7216_v34 = vld [vmem:[#allocation2 + $0x230] ss:$8 sps:$4 sm:$0xff]   ;;  %v7221_v35 = vld [vmem:[#allocation2 + $0x224] ss:$8 sps:$4 sm:$0xff]   ;;  %v7219_v36 = vld [vmem:[#allocation2 + $0x220] ss:$8 sps:$4 sm:$0xff]  }
  0x98   : > { %v7227_v39 = vld [vmem:[#allocation2 + $0x204] ss:$8 sps:$4 sm:$0xff]   ;;  %v7228_v40 = vld [vmem:[#allocation5 + $0x70] ss:$8 sps:$4 sm:$0xff]   ;;  %v7231_v43 = vld [vmem:[#allocation5 + $0x60] ss:$8 sps:$4 sm:$0xff]  }
  0x99   : > { %554 = vmatpush1.bf16.msra.mxu0 %v7152_v37  ;;  %678 = vmatpush1.bf16.msra.mxu1 %v7153_v38  ;;  %v7224_v37 = vld [vmem:[#allocation2 + $0x214] ss:$8 sps:$4 sm:$0xff]   ;;  %v7222_v38 = vld [vmem:[#allocation2 + $0x210] ss:$8 sps:$4 sm:$0xff]   ;;  %v7291_v20 = vld [vmem:[#allocation5 + $0xc0] ss:$8 sps:$4 sm:$0xff]  }
  0x9a   : > { %808 = vmatprep.subr.bf16.mxu0 %v7158_v41  ;;  %963 = vmatprep.subr.bf16.mxu1 %v7161_v42  ;;  %v7230_v41 = vld [vmem:[#allocation5 + $0x74] ss:$8 sps:$4 sm:$0xff]   ;;  %v7233_v42 = vld [vmem:[#allocation5 + $0x64] ss:$8 sps:$4 sm:$0xff]   ;;  %v7282_v15 = vld [vmem:[#allocation5 + $0x1f0] ss:$8 sps:$4 sm:$0xff]  }
  0x9b   : > { %v7236_v44 = vld [vmem:[#allocation5 + $0x174] ss:$8 sps:$4 sm:$0xff]   ;;  %v7285_v16 = vld [vmem:[#allocation5 + $0xd0] ss:$8 sps:$4 sm:$0xff]   ;;  %vm1199_vm4 = vcmask 1041408   ;;  %s390_s13 = sand.u32 1, %s8310_s28  }
  0x9c   : > { %572 = vmatmul.mubr.bf16.vlgmr.msra.gmra.mxu0 %v457_v45  ;;  %696 = vmatmul.mubr.bf16.vlgmr.msra.gmra.mxu1 %v8527_v27  ;;  %v7212_v27 = vld [vmem:[#allocation2 + $0x254] ss:$8 sps:$4 sm:$0xff]   ;;  %v7294_v21 = vld [vmem:[#allocation5 + $0x1d0] ss:$8 sps:$4 sm:$0xff]   ;;  %vm8571_vm5 = vmneg %vm1199_vm4  ;;  %s6210_s19 = sshll.u32 %s390_s13, 4  ;;  %s6877_s18 = sshll.u32 %s8401_s9, 8 }
  0x9d   : > { %809 = vmatpush1.bf16.msra.mxu0 %v7156_v46  ;;  %964 = vmatpush1.bf16.msra.mxu1 %v7159_v47  ;;  %v7239_v45 = vld [vmem:[#allocation5 + $0x54] ss:$8 sps:$4 sm:$0xff]   ;;  %v7234_v46 = vld [vmem:[#allocation5 + $0x170] ss:$8 sps:$4 sm:$0xff]   ;;  %s392_s21 = scalar_lea.vmem [#allocation14], %s6210_s19  ;;  %s8796_s1 = scalar_lea.hbm %s8848_s8, %s6877_s18 }
  0x9e   : > { %810 = vmatprep.subr.bf16.mxu0 %v7164_v48  ;;  %965 = vmatprep.subr.bf16.mxu1 %v7167_v49  ;;  %v7237_v47 = vld [vmem:[#allocation5 + $0x50] ss:$8 sps:$4 sm:$0xff]   ;;  %v7240_v48 = vld [vmem:[#allocation5 + $0x160] ss:$8 sps:$4 sm:$0xff]   ;;  %v7242_v49 = vld [vmem:[#allocation5 + $0x164] ss:$8 sps:$4 sm:$0xff]  }
  0x9f   : > { %840 = vmatprep.mubr.bf16.mxu0 %v8331_v0  ;;  %995 = vmatprep.mubr.bf16.mxu1 %v8331_v0  ;;  %v7275_v6 = vld [vmem:[#allocation5 + $0xf4] ss:$8 sps:$4 sm:$0xff]   ;;  %v7297_v23 = vld [vmem:[#allocation5 + $0xb0] ss:$8 sps:$4 sm:$0xff]   ;;  %s6061_s26 = sshll.u32 %s392_s21, 4  ;;  %s8800_s22 = scalar_lea.sflag [#allocation4], %s390_s13  ;;  %s8798_s26 = int_to_ptr.vmem [resolvable:$true] %s6061_s26 }
  0xa0   : > { %v7284_v13 = vld [vmem:[#allocation5 + $0x1f4] ss:$8 sps:$4 sm:$0xff]   ;;  %s8242_s17 = scalar_lea.vmem %s8798_s26, 256  ;;  %p8872_p2 = scmp.ne.s32.totalorder %s8854_s15, 0 }
  0xa1   : > { %811 = vmatpush1.bf16.msra.mxu0 %v7162_v51  ;;  %966 = vmatpush1.bf16.msra.mxu1 %v7165_v52  ;;  %v7243_v51 = vld [vmem:[#allocation5 + $0x40] ss:$8 sps:$4 sm:$0xff]   ;;  %v7248_v52 = vld [vmem:[#allocation5 + $0x154] ss:$8 sps:$4 sm:$0xff]   ;;  %p8243_p1 = scmp.ne.s32.totalorder %s8798_s26, %s8242_s17  ;;  %s8332_s9 = smov [#allocation14]  }
  0xa2   : > { %812 = vmatprep.subr.bf16.mxu0 %v7170_v53  ;;  %967 = vmatprep.subr.bf16.mxu1 %v7173_v54  ;;  %v7251_v53 = vld [vmem:[#allocation5 + $0x34] ss:$8 sps:$4 sm:$0xff]   ;;  %v7246_v54 = vld [vmem:[#allocation5 + $0x150] ss:$8 sps:$4 sm:$0xff]   ;;  %s8246_s20 = sshll.u32 %s8332_s9, 4  ;;  %s8247_s20 = int_to_ptr.vmem [resolvable:$false] %s8246_s20 }
  0xa3   : > { %v7287_v14 = vld [vmem:[#allocation5 + $0xd4] ss:$8 sps:$4 sm:$0xff]   ;;  %p8244_p4 = pnand %p8243_p1, %p8872_p2  ;;  %s8248_s25 = scalar_lea.vmem %s8247_s20, 512 }
  0xa4   : > { %v7296_v22 = vld [vmem:[#allocation5 + $0x1d4] ss:$8 sps:$4 sm:$0xff]   ;;  %p8249_p7 = scmp.lt.s32.totalorder %s8798_s26, %s8247_s20  ;;  %p8250_p6 = scmp.lt.s32.totalorder %s8248_s25, %s8242_s17 }
  0xa5   : > { %813 = vmatpush1.bf16.msra.mxu0 %v7168_v55  ;;  %968 = vmatpush1.bf16.msra.mxu1 %v7171_v56  ;;  %v7249_v55 = vld [vmem:[#allocation5 + $0x30] ss:$8 sps:$4 sm:$0xff]   ;;  %v7254_v56 = vld [vmem:[#allocation5 + $0x144] ss:$8 sps:$4 sm:$0xff]   ;;  %p8245_p5 = pneg %p8244_p4 }
  0xa6   : > { %814 = vmatprep.subr.bf16.mxu0 %v7176_v57  ;;  %969 = vmatprep.subr.bf16.mxu1 %v7179_v58  ;;  %v7257_v57 = vld [vmem:[#allocation5 + $0x24] ss:$8 sps:$4 sm:$0xff]   ;;  %v7252_v58 = vld [vmem:[#allocation5 + $0x140] ss:$8 sps:$4 sm:$0xff]   ;;  %p8251_p13 = por %p8250_p6, %p8249_p7 }
  0xa8   : > { %p8252_p8 = pnand %p8251_p13, %p8245_p5 }
  0xa9   : > { %815 = vmatpush1.bf16.msra.mxu0 %v7174_v59  ;;  %970 = vmatpush1.bf16.msra.mxu1 %v7177_v60  ;;  %v7255_v59 = vld [vmem:[#allocation5 + $0x20] ss:$8 sps:$4 sm:$0xff]   ;;  %v7260_v60 = vld [vmem:[#allocation5 + $0x134] ss:$8 sps:$4 sm:$0xff]  }
  0xaa   : > { %816 = vmatprep.subr.bf16.mxu0 %v7182_v61  ;;  %971 = vmatprep.subr.bf16.mxu1 %v7185_v62  ;;  %v7263_v61 = vld [vmem:[#allocation5 + $0x14] ss:$8 sps:$4 sm:$0xff]   ;;  %v7258_v62 = vld [vmem:[#allocation5 + $0x130] ss:$8 sps:$4 sm:$0xff]  }
  0xad   : > { %817 = vmatpush1.bf16.msra.mxu0 %v7180_v63  ;;  %972 = vmatpush1.bf16.msra.mxu1 %v7183_v1  ;;  %v7261_v63 = vld [vmem:[#allocation5 + $0x10] ss:$8 sps:$4 sm:$0xff]   ;;  %v7266_v1 = vld [vmem:[#allocation5 + $0x124] ss:$8 sps:$4 sm:$0xff]  }
  0xae   : > { %818 = vmatprep.subr.bf16.mxu0 %v7188_v2  ;;  %973 = vmatprep.subr.bf16.mxu1 %v7191_v3  ;;  %v7269_v2 = vld [vmem:[#allocation5 + $0x4] ss:$8 sps:$4 sm:$0xff]   ;;  %v7264_v3 = vld [vmem:[#allocation5 + $0x120] ss:$8 sps:$4 sm:$0xff]  }
  0xb1   : > { %819 = vmatpush1.bf16.msra.mxu0 %v7186_v4  ;;  %974 = vmatpush1.bf16.msra.mxu1 %v7189_v5  ;;  %v7267_v4 = vld [vmem:[#allocation5] ss:$8 sps:$4 sm:$0xff]   ;;  %v7272_v5 = vld [vmem:[#allocation5 + $0x114] ss:$8 sps:$4 sm:$0xff]  }
  0xb2   : > { %820 = vmatprep.subr.bf16.mxu0 %v7194_v7  ;;  %975 = vmatprep.subr.bf16.mxu1 %v7197_v8  ;;  %v7270_v7 = vld [vmem:[#allocation5 + $0x110] ss:$8 sps:$4 sm:$0xff]  }
  0xb3   : > { %v7273_v8 = vld [vmem:[#allocation5 + $0xf0] ss:$8 sps:$4 sm:$0xff]  }
  0xb5   : > { %821 = vmatpush1.bf16.msra.mxu0 %v7192_v9  ;;  %976 = vmatpush1.bf16.msra.mxu1 %v7195_v10  ;;  %v7278_v9 = vld [vmem:[#allocation5 + $0x104] ss:$8 sps:$4 sm:$0xff]  }
  0xb6   : > { %822 = vmatprep.subr.bf16.mxu0 %v7200_v11  ;;  %977 = vmatprep.subr.bf16.mxu1 %v7203_v12  ;;  %v7281_v10 = vld [vmem:[#allocation5 + $0xe4] ss:$8 sps:$4 sm:$0xff]   ;;  %v7276_v11 = vld [vmem:[#allocation5 + $0x100] ss:$8 sps:$4 sm:$0xff]  }
  0xb7   : > { %v7279_v12 = vld [vmem:[#allocation5 + $0xe0] ss:$8 sps:$4 sm:$0xff]  }
  0xb9   : > { %823 = vmatpush1.bf16.msra.mxu0 %v7198_v17  ;;  %978 = vmatpush1.bf16.msra.mxu1 %v7201_v18  ;;  %v7290_v17 = vld [vmem:[#allocation5 + $0x1e4] ss:$8 sps:$4 sm:$0xff]  }
  0xba   : > { %1112 = vmatprep.subr.bf16.mxu0 %v7206_v19  ;;  %1458 = vmatprep.subr.bf16.mxu1 %v7236_v44  ;;  %v7293_v18 = vld [vmem:[#allocation5 + $0xc4] ss:$8 sps:$4 sm:$0xff]   ;;  %v7288_v19 = vld [vmem:[#allocation5 + $0x1e0] ss:$8 sps:$4 sm:$0xff]  }
  0xbc   : > { %841 = vmatmul.mubr.bf16.vlgmr.msra.gmra.mxu0 %v726_v26  ;;  %996 = vmatmul.mubr.bf16.vlgmr.msra.gmra.mxu1 %v881_v29  ;;  %v7305_v26 = vld [vmem:[#allocation5 + $0xa4] ss:$8 sps:$4 sm:$0xff]   ;;  %v7300_v29 = vld [vmem:[#allocation5 + $0x1c0] ss:$8 sps:$4 sm:$0xff]  }
  0xbd   : > { %1113 = vmatpush1.bf16.msra.mxu0 %v7204_v24  ;;  %1144 = vmatprep.mubr.bf16.mxu0 %v8331_v0  ;;  %v7225_v0 = vld [vmem:[#allocation2 + $0x200] ss:$8 sps:$4 sm:$0xff]   ;;  %v7299_v24 = vld [vmem:[#allocation5 + $0xb4] ss:$8 sps:$4 sm:$0xff]  }
  0xbe   : > { %1114 = vmatprep.subr.bf16.mxu0 %v7209_v25  ;;  %1459 = vmatpush1.bf16.msra.mxu1 %v7234_v46  ;;  %v7302_v25 = vld [vmem:[#allocation5 + $0x1c4] ss:$8 sps:$4 sm:$0xff]  }
  0xbf   : > { %1460 = vmatprep.subr.bf16.mxu1 %v7242_v49  ;;  %v1160_v49 = vlaneseq }
  0xc1   : > { %1115 = vmatpush1.bf16.msra.mxu0 %v7207_v30  ;;  %v7303_v30 = vld [vmem:[#allocation5 + $0xa0] ss:$8 sps:$4 sm:$0xff]  }
  0xc2   : > { %1116 = vmatprep.subr.bf16.mxu0 %v7212_v27  ;;  %1461 = vmatpush1.bf16.msra.mxu1 %v7240_v48  ;;  %v7308_v27 = vld [vmem:[#allocation5 + $0x1b4] ss:$8 sps:$4 sm:$0xff]  }
  0xc3   : > { %1462 = vmatprep.subr.bf16.mxu1 %v7248_v52  ;;  %v1161_v52 = vshrl.u32 %v1160_v49, 7 }
  0xc5   : > { %1117 = vmatpush1.bf16.msra.mxu0 %v7210_v28  ;;  %v7306_v28 = vld [vmem:[#allocation5 + $0x1b0] ss:$8 sps:$4 sm:$0xff]  }
  0xc6   : > { %1118 = vmatprep.subr.bf16.mxu0 %v7215_v31  ;;  %1463 = vmatpush1.bf16.msra.mxu1 %v7246_v54  ;;  %v7311_v31 = vld [vmem:[#allocation5 + $0x94] ss:$8 sps:$4 sm:$0xff]  }
  0xc7   : > { %1464 = vmatprep.subr.bf16.mxu1 %v7254_v56  ;;  %v8562_v56 = vsub.s32 0, %v1161_v52 }
  0xc9   : > { %1119 = vmatpush1.bf16.msra.mxu0 %v7213_v32  ;;  %v7309_v32 = vld [vmem:[#allocation5 + $0x90] ss:$8 sps:$4 sm:$0xff]  }
  0xca   : > { %1120 = vmatprep.subr.bf16.mxu0 %v7218_v33  ;;  %1465 = vmatpush1.bf16.msra.mxu1 %v7252_v58  ;;  %v7314_v33 = vld [vmem:[#allocation5 + $0x1a4] ss:$8 sps:$4 sm:$0xff]  }
  0xcb   : > { %1466 = vmatprep.subr.bf16.mxu1 %v7260_v60 }
  0xcd   : > { %1121 = vmatpush1.bf16.msra.mxu0 %v7216_v34  ;;  %v7317_v34 = vld [vmem:[#allocation5 + $0x84] ss:$8 sps:$4 sm:$0xff]  }
  0xce   : > { %1122 = vmatprep.subr.bf16.mxu0 %v7221_v35  ;;  %1467 = vmatpush1.bf16.msra.mxu1 %v7258_v62  ;;  %v7312_v35 = vld [vmem:[#allocation5 + $0x1a0] ss:$8 sps:$4 sm:$0xff]  }
  0xcf   : > { %1468 = vmatprep.subr.bf16.mxu1 %v7266_v1  ;;  %v403_v1 = vld [vmem:[#allocation10] ss:$4 sm:$0x3] }
  0xd1   : > { %1123 = vmatpush1.bf16.msra.mxu0 %v7219_v36  ;;  %v7315_v36 = vld [vmem:[#allocation5 + $0x80] ss:$8 sps:$4 sm:$0xff]  }
  0xd2   : > { %1124 = vmatprep.subr.bf16.mxu0 %v7224_v37  ;;  %1469 = vmatpush1.bf16.msra.mxu1 %v7264_v3  ;;  %v7320_v37 = vld [vmem:[#allocation5 + $0x194] ss:$8 sps:$4 sm:$0xff]  }
  0xd3   : > { %1470 = vmatprep.subr.bf16.mxu1 %v7272_v5 }
  0xd5   : > { %1125 = vmatpush1.bf16.msra.mxu0 %v7222_v38  ;;  %v7318_v38 = vld [vmem:[#allocation5 + $0x190] ss:$8 sps:$4 sm:$0xff]  }
  0xd6   : > { %1126 = vmatprep.subr.bf16.mxu0 %v7227_v39  ;;  %1471 = vmatpush1.bf16.msra.mxu1 %v7270_v7  ;;  %v7323_v39 = vld [vmem:[#allocation5 + $0x374] ss:$8 sps:$4 sm:$0xff]  }
  0xd7   : > { %1472 = vmatprep.subr.bf16.mxu1 %v7278_v9 }
  0xd9   : > { %1127 = vmatpush1.bf16.msra.mxu0 %v7225_v0  ;;  %v7324_v0 = vld [vmem:[#allocation5 + $0x180] ss:$8 sps:$4 sm:$0xff]  }
  0xda   : > { %1661 = vmatprep.subr.bf16.mxu0 %v7230_v41  ;;  %1473 = vmatpush1.bf16.msra.mxu1 %v7276_v11  ;;  %v7332_v41 = vld [vmem:[#allocation5 + $0x274] ss:$8 sps:$4 sm:$0xff]  }
  0xdb   : > { %1474 = vmatprep.subr.bf16.mxu1 %v7284_v13 }
  0xdc   : > { %1145 = vmatmul.mubr.bf16.vlgmr.msra.gmra.mxu0 %v8544_v50  ;;  %v7245_v50 = vld [vmem:[#allocation5 + $0x44] ss:$8 sps:$4 sm:$0xff]  }
  0xdd   : > { %1662 = vmatpush1.bf16.msra.mxu0 %v7228_v40  ;;  %v7326_v40 = vld [vmem:[#allocation5 + $0x184] ss:$8 sps:$4 sm:$0xff]  }
  0xde   : > { %1663 = vmatprep.subr.bf16.mxu0 %v7233_v42  ;;  %1475 = vmatpush2.bf16.msra.mxu1 %v7282_v15  ;;  %v1178_v15 = vrot.slane %v403_v1, %v8562_v56 }
  0xdf   : > { %1476 = vmatprep.subr.bf16.mxu1 %v7290_v17 }
  0xe1   : > { %1664 = vmatpush1.bf16.msra.mxu0 %v7231_v43 }
  0xe2   : > { %1665 = vmatprep.subr.bf16.mxu0 %v7239_v45  ;;  %1477 = vmatpush2.bf16.msra.mxu1 %v7288_v19 }
  0xe3   : > { %1478 = vmatprep.subr.bf16.mxu1 %v7296_v22 }
  0xe5   : > { %1666 = vmatpush1.bf16.msra.mxu0 %v7237_v47 }
  0xe6   : > { %1667 = vmatprep.subr.bf16.mxu0 %v7245_v50  ;;  %1479 = vmatpush2.bf16.msra.mxu1 %v7294_v21 }
  0xe7   : > { %1480 = vmatprep.subr.bf16.mxu1 %v7302_v25 }
  0xe9   : > { %1668 = vmatpush1.bf16.msra.mxu0 %v7243_v51 }
  0xea   : > { %1669 = vmatprep.subr.bf16.mxu0 %v7251_v53  ;;  %1481 = vmatpush2.bf16.msra.mxu1 %v7300_v29 }
  0xeb   : > { %1482 = vmatprep.subr.bf16.mxu1 %v7308_v27 }
  0xed   : > { %1670 = vmatpush1.bf16.msra.mxu0 %v7249_v55 }
  0xee   : > { %1671 = vmatprep.subr.bf16.mxu0 %v7257_v57  ;;  %1483 = vmatpush2.bf16.msra.mxu1 %v7306_v28 }
  0xef   : > { %1484 = vmatprep.subr.bf16.mxu1 %v7314_v33 }
  0xf1   : > { %1672 = vmatpush1.bf16.msra.mxu0 %v7255_v59  ;;  %v402_v59 = vld [vmem:[#allocation8] ss:$4 sm:$0x3] }
  0xf2   : > { %1673 = vmatprep.subr.bf16.mxu0 %v7263_v61  ;;  %1485 = vmatpush2.bf16.msra.mxu1 %v7312_v35 }
  0xf3   : > { %1486 = vmatprep.subr.bf16.mxu1 %v7320_v37 }
  0xf5   : > { %1674 = vmatpush1.bf16.msra.mxu0 %v7261_v63 }
  0xf6   : > { %1675 = vmatprep.subr.bf16.mxu0 %v7269_v2  ;;  %1487 = vmatpush2.bf16.msra.mxu1 %v7318_v38  ;;  %v8564_v2 = vsub.s32 1, %v1161_v52 }
  0xf7   : > { %1488 = vmatprep.subr.bf16.mxu1 %v7326_v40 }
  0xf8   : > { %v1167_v13 = vrot.slane %v402_v59, %v8564_v2 }
  0xf9   : > { %1676 = vmatpush1.bf16.msra.mxu0 %v7267_v4 }
  0xfa   : > { %1677 = vmatprep.subr.bf16.mxu0 %v7275_v6  ;;  %1489 = vmatpush2.bf16.msra.mxu1 %v7324_v0 }
  0xfb   : > { %1907 = vmatprep.subr.bf16.mxu1 %v7332_v41  ;;  %v7321_v41 = vld [vmem:[#allocation5 + $0x370] ss:$8 sps:$4 sm:$0xff]  }
  0xfd   : > { %1678 = vmatpush2.bf16.msra.mxu0 %v7273_v8  ;;  %v1163_v8 = vrot.slane %v402_v59, %v8562_v56 }
  0xfe   : > { %1679 = vmatprep.subr.bf16.mxu0 %v7281_v10 }
 0x101   : > { %1680 = vmatpush2.bf16.msra.mxu0 %v7279_v12 }
 0x102   : > { %1681 = vmatprep.subr.bf16.mxu0 %v7287_v14 }
 0x105   : > { %1682 = vmatpush2.bf16.msra.mxu0 %v7285_v16 }
 0x106   : > { %1683 = vmatprep.subr.bf16.mxu0 %v7293_v18 }
 0x109   : > { %1684 = vmatpush2.bf16.msra.mxu0 %v7291_v20  ;;  %v1182_v20 = vrot.slane %v403_v1, %v8564_v2  ;;  %v7333_v1 = vld [vmem:[#allocation5 + $0x350] ss:$8 sps:$4 sm:$0xff]  }
 0x10a   : > { %1685 = vmatprep.subr.bf16.mxu0 %v7299_v24 }
 0x10d   : > { %1686 = vmatpush2.bf16.msra.mxu0 %v7297_v23 }
 0x10e   : > { %1687 = vmatprep.subr.bf16.mxu0 %v7305_v26 }
 0x111   : > { %1688 = vmatpush2.bf16.msra.mxu0 %v7303_v30 }
 0x112   : > { %1689 = vmatprep.subr.bf16.mxu0 %v7311_v31 }
 0x115   : > { %1690 = vmatpush2.bf16.msra.mxu0 %v7309_v32 }
 0x116   : > { %1691 = vmatprep.subr.bf16.mxu0 %v7317_v34 }
 0x119   : > { %1692 = vmatpush2.bf16.msra.mxu0 %v7315_v36 }
 0x11a   : > { %2167 = vmatprep.subr.bf16.mxu0 %v7323_v39  ;;  %v8022_v39 = vld [vmem:[#allocation7 + $0x1d0] sm:$0xff]  }
 0x15c   : > { %v573_v42 = vpop.f32.mrf.mxu0  ;;  %v697_v43 = vpop.f32.mrf.mxu1 }
 0x15d   : > { %v698_v55 = vadd.f32 %v697_v43, %v573_v42  ;;  %v7329_v43 = vld [vmem:[#allocation5 + $0x364] ss:$8 sps:$4 sm:$0xff]  }
 0x15e   : > { %v575_v44 = vpop.f32.mrf.mxu0  ;;  %v699_v45 = vpop.f32.mrf.mxu1 }
 0x15f   : > { %v700_v60 = vadd.f32 %v699_v45, %v575_v44 }
 0x160   : > { %v577_v46 = vpop.f32.mrf.mxu0  ;;  %v701_v47 = vpop.f32.mrf.mxu1 }
 0x161   : > { %v702_v62 = vadd.f32 %v701_v47, %v577_v46 }
 0x162   : > { %v579_v48 = vpop.f32.mrf.mxu0  ;;  %v703_v50 = vpop.f32.mrf.mxu1 }
 0x163   : > { %v704_v5 = vadd.f32 %v703_v50, %v579_v48 }
 0x17c   : > { %v842_v51 = vpop.f32.mrf.mxu0  ;;  %v997_v54 = vpop.f32.mrf.mxu1 }
 0x17d   : > { %v851_v61 = vadd.f32 %v842_v51, %v698_v55 }
 0x17e   : > { %v844_v53 = vpop.f32.mrf.mxu0  ;;  %v999_v58 = vpop.f32.mrf.mxu1 }
 0x17f   : > { %v852_v63 = vadd.f32 %v844_v53, %v700_v60  ;;  %v1006_v6 = vadd.f32 %v997_v54, %v851_v61  ;;  %v7327_v53 = vld [vmem:[#allocation5 + $0x360] ss:$8 sps:$4 sm:$0xff]   ;;  %v7335_v60 = vld [vmem:[#allocation5 + $0x354] ss:$8 sps:$4 sm:$0xff]  }
 0x180   : > { %v846_v57 = vpop.f32.mrf.mxu0  ;;  %v1001_v4 = vpop.f32.mrf.mxu1 }
 0x181   : > { %v853_v7 = vadd.f32 %v846_v57, %v702_v62  ;;  %v1007_v10 = vadd.f32 %v999_v58, %v852_v63  ;;  %v7330_v63 = vld [vmem:[#allocation5 + $0x270] ss:$8 sps:$4 sm:$0xff]  }
 0x182   : > { %v848_v3 = vpop.f32.mrf.mxu0  ;;  %v1003_v14 = vpop.f32.mrf.mxu1 }
 0x183   : > { %v854_v11 = vadd.f32 %v848_v3, %v704_v5  ;;  %v1008_v17 = vadd.f32 %v1001_v4, %v853_v7 }
 0x185   : > { %v1009_v22 = vadd.f32 %v1003_v14, %v854_v11 }
 0x19c   : > { %v1146_v9 = vpop.f32.mrf.mxu0 }
 0x19d   : > { %v1155_v12 = vadd.f32 %v1146_v9, %v1006_v6 }
 0x19e   : > { %v1148_v16 = vpop.f32.mrf.mxu0 }
 0x19f   : > { %v1170_v18 = vmul.f32 %v1163_v8, %v1155_v12  ;;  %v1156_v19 = vadd.f32 %v1148_v16, %v1007_v10 }
 0x1a0   : > { %v1150_v21 = vpop.f32.mrf.mxu0 }
 0x1a1   : > { %v1171_v23 = vmul.f32 %v1167_v13, %v1156_v19  ;;  %v1157_v24 = vadd.f32 %v1150_v21, %v1008_v17  ;;  %v1185_v25 = vadd.f32 %v1178_v15, %v1170_v18  ;;  %v7341_v19 = vld [vmem:[#allocation5 + $0x344] ss:$8 sps:$4 sm:$0xff]  }
 0x1a2   : > { %v1152_v26 = vpop.f32.mrf.mxu0 }
 0x1a3   : > { %v1172_v29 = vmul.f32 %v1163_v8, %v1157_v24  ;;  %v1158_v30 = vadd.f32 %v1152_v26, %v1009_v22  ;;  %v1186_v27 = vadd.f32 %v1182_v20, %v1171_v23  ;;  %8028 = vtanh.f32 %v1185_v25  ;;  %v7336_v23 = vld [vmem:[#allocation5 + $0x260] ss:$8 sps:$4 sm:$0xff]   ;;  %v7344_v26 = vld [vmem:[#allocation5 + $0x254] ss:$8 sps:$4 sm:$0xff]  }
 0x1a4   : > { %v7339_v24 = vld [vmem:[#allocation5 + $0x340] ss:$8 sps:$4 sm:$0xff]  }
 0x1a5   : > { %v1187_v28 = vadd.f32 %v1178_v15, %v1172_v29  ;;  %v1173_v31 = vmul.f32 %v1167_v13, %v1158_v30  ;;  %v7338_v15 = vld [vmem:[#allocation5 + $0x264] ss:$8 sps:$4 sm:$0xff]   ;;  %v7347_v29 = vld [vmem:[#allocation5 + $0x334] ss:$8 sps:$4 sm:$0xff]   ;;  %v7342_v30 = vld [vmem:[#allocation5 + $0x250] ss:$8 sps:$4 sm:$0xff]  }
 0x1a7   : > { %8030 = vtanh.f32 %v1187_v28  ;;  %v1188_v32 = vadd.f32 %v1182_v20, %v1173_v31  ;;  %v7350_v28 = vld [vmem:[#allocation5 + $0x244] ss:$8 sps:$4 sm:$0xff]  }
 0x1a8   : > { %8032 = vtanh.f32 %v1186_v27  ;;  %v7345_v27 = vld [vmem:[#allocation5 + $0x330] ss:$8 sps:$4 sm:$0xff]   ;;  %v7353_v31 = vld [vmem:[#allocation5 + $0x324] ss:$8 sps:$4 sm:$0xff]  }
 0x1a9   : > { %8034 = vtanh.f32 %v1188_v32  ;;  %v7348_v32 = vld [vmem:[#allocation5 + $0x240] ss:$8 sps:$4 sm:$0xff]  }
 0x1b0   : > { %v8029_v33 = vpop.eup %8028 }
 0x1b4   : > { %v8031_v34 = vpop.eup %8030 }
 0x1b5   : > { %v8033_v35 = vpop.eup %8032  ;;  %v1193_v36 = vpack.c.bf16 %v8031_v34, %v8029_v33  ;;  %v7351_v33 = vld [vmem:[#allocation5 + $0x320] ss:$8 sps:$4 sm:$0xff]   ;;  %v7356_v34 = vld [vmem:[#allocation5 + $0x234] ss:$8 sps:$4 sm:$0xff]  }
 0x1b6   : > { %v8035_v37 = vpop.eup %8034 }
 0x1b7   : > { %v1194_v38 = vpack.c.bf16 %v8035_v37, %v8033_v35  ;;  %v8575_v0 = vrot.slane %v1193_v36, 6  ;;  %v7359_v35 = vld [vmem:[#allocation5 + $0x314] ss:$8 sps:$4 sm:$0xff]   ;;  %v7354_v36 = vld [vmem:[#allocation5 + $0x230] ss:$8 sps:$4 sm:$0xff]  }
 0x1b8   : > { %v7357_v37 = vld [vmem:[#allocation5 + $0x310] ss:$8 sps:$4 sm:$0xff]  }
 0x1b9   : > { %v1198_v40 = vrot.slane %v1194_v38, 6  ;;  %v8579_v42 = vsel %vm1199_vm4, 0, %v8575_v0  ;;  %v1282_v48 = vshll.u32 %v8575_v0, 16  ;;  %v1740_v58 = vrot.slane %v8575_v0, 1  ;;  %v7362_v38 = vld [vmem:[#allocation5 + $0x224] ss:$8 sps:$4 sm:$0xff]  }
 0x1ba   : > { %v1278_v44 = vshll.u32 %v8579_v42, 16  ;;  %v1276_v50 = vshrl.u32 %v8579_v42, 16  ;;  %v1739_v57 = vrot.slane %v8579_v42, 1  ;;  %v2247_v17 = vrot.slane %v8579_v42, 2 }
 0x1bb   : > { %6359 = vmatprep.mubr.msk.bf16.mxu0 %vm8571_vm5, %v1198_v40  ;;  %v1205_v45 = vsel %vm1199_vm4, 0, %v1198_v40  ;;  %v1292_v46 = vshll.u32 %v1198_v40, 16  ;;  %v1999_v47 = vshrl.u32 %v1198_v40, 16  ;;  %v1284_v8 = vrot.slane %v1282_v48, 1 }
 0x1bc   : > { %6361 = vmatmul.mubr.msk.bf16.vlgmr.msra.gmra.mxu0 %vm8571_vm5, %v8575_v0  ;;  %v1286_v49 = vshrl.u32 %v1205_v45, 16  ;;  %v1288_v51 = vshll.u32 %v1205_v45, 16  ;;  %v1280_v52 = vrot.slane %v1278_v44, 1  ;;  %v1742_v9 = vrot.slane %v1205_v45, 1 }
 0x1bd   : > { %2168 = vmatpush1.bf16.msra.mxu0 %v7321_v41  ;;  %v2001_v54 = vrot.slane %v1999_v47, 1  ;;  %v2002_v55 = vrot.slane %v1292_v46, 2  ;;  %v1294_v6 = vrot.slane %v1292_v46, 1  ;;  %v1743_v10 = vrot.slane %v1198_v40, 1  ;;  %v7360_v41 = vld [vmem:[#allocation5 + $0x220] ss:$8 sps:$4 sm:$0xff]  }
 0x1be   : > { %2169 = vmatprep.subr.bf16.mxu0 %v7329_v43  ;;  %v1290_v59 = vrot.slane %v1288_v51, 1  ;;  %v1996_v61 = vrot.slane %v1286_v49, 1  ;;  %v1997_v62 = vrot.slane %v1288_v51, 2  ;;  %v1281_v4 = vor.u32 %v1280_v52, %v1276_v50  ;;  %v7363_v43 = vld [vmem:[#allocation5 + $0x300] ss:$8 sps:$4 sm:$0xff]  }
 0x1bf   : > { %v2003_v3 = vor.u32 %v2002_v55, %v2001_v54  ;;  %v8599_v11 = vsel %vm723_vm2, %v1739_v57, %v1740_v58  ;;  %v2250_v12 = vrot.slane %v1205_v45, 2  ;;  %v2251_v16 = vrot.slane %v1198_v40, 2  ;;  %v7365_v40 = vld [vmem:[#allocation5 + $0x304] ss:$8 sps:$4 sm:$0xff]   ;;  %v7368_v45 = vld [vmem:[#allocation5 + $0x214] ss:$8 sps:$4 sm:$0xff]  }
 0x1c0   : > { %v1291_v5 = vor.u32 %v1290_v59, %v1286_v49  ;;  %v1998_v7 = vor.u32 %v1997_v62, %v1996_v61  ;;  %v1285_v18 = vsel %vm445_vm0, %v1281_v4, %v1284_v8  ;;  %v2248_v20 = vrot.slane %v8575_v0, 2  ;;  %v7371_v46 = vld [vmem:[#allocation5 + $0x3f4] ss:$8 sps:$4 sm:$0xff]   ;;  %v7366_v47 = vld [vmem:[#allocation5 + $0x210] ss:$8 sps:$4 sm:$0xff]  }
 0x1c1   : > { %2170 = vmatpush1.bf16.msra.mxu0 %v7327_v53  ;;  %v8607_v21 = vsel %vm1027_vm1, %v2250_v12, %v2251_v16  ;;  %v1744_v22 = vsel %vm723_vm2, %v1742_v9, %v1743_v10  ;;  %v7369_v49 = vld [vmem:[#allocation5 + $0x3f0] ss:$8 sps:$4 sm:$0xff]   ;;  %v7374_v51 = vld [vmem:[#allocation5 + $0x204] ss:$8 sps:$4 sm:$0xff]   ;;  %v7372_v53 = vld [vmem:[#allocation5 + $0x200] ss:$8 sps:$4 sm:$0xff]  }
 0x1c2   : > { %v1295_v13 = vsel %vm445_vm0, %v1291_v5, %v1294_v6  ;;  %2171 = vmatprep.subr.bf16.mxu0 %v7335_v60  ;;  %v2004_v14 = vsel %vm872_vm3, %v1998_v7, %v2003_v3  ;;  %v8611_v25 = vsel %vm1027_vm1, %v2247_v17, %v2248_v20  ;;  %v7377_v52 = vld [vmem:[#allocation5 + $0x3e4] ss:$8 sps:$4 sm:$0xff]   ;;  %v7375_v54 = vld [vmem:[#allocation5 + $0x3e0] ss:$8 sps:$4 sm:$0xff]   ;;  %v7380_v55 = vld [vmem:[#allocation5 + $0x2f4] ss:$8 sps:$4 sm:$0xff]  }
 0x1c3   : > { %1490 = vmatprep.mubr.bf16.mxu1 %v1295_v13  ;;  %2199 = vmatprep.mubr.bf16.mxu0 %v2004_v14  ;;  %v7383_v57 = vld [vmem:[#allocation5 + $0x3d4] ss:$8 sps:$4 sm:$0xff]   ;;  %v7378_v58 = vld [vmem:[#allocation5 + $0x2f0] ss:$8 sps:$4 sm:$0xff]   ;;  %v7386_v60 = vld [vmem:[#allocation5 + $0x2e4] ss:$8 sps:$4 sm:$0xff]  }
 0x1c4   : > { %1491 = vmatmul.mubr.bf16.vlgmr.msra.gmra.mxu1 %v1285_v18  ;;  %v7381_v59 = vld [vmem:[#allocation5 + $0x3d0] ss:$8 sps:$4 sm:$0xff]   ;;  %v7389_v61 = vld [vmem:[#allocation5 + $0x3c4] ss:$8 sps:$4 sm:$0xff]   ;;  %v7384_v62 = vld [vmem:[#allocation5 + $0x2e0] ss:$8 sps:$4 sm:$0xff]  }
 0x1c5   : > { %1908 = vmatpush1.bf16.msra.mxu1 %v7330_v63  ;;  %2172 = vmatpush1.bf16.msra.mxu0 %v7333_v1  ;;  %v7387_v63 = vld [vmem:[#allocation5 + $0x3c0] ss:$8 sps:$4 sm:$0xff]   ;;  %v7392_v1 = vld [vmem:[#allocation5 + $0x2d4] ss:$8 sps:$4 sm:$0xff]   ;;  %v7390_v4 = vld [vmem:[#allocation5 + $0x2d0] ss:$8 sps:$4 sm:$0xff]  }
 0x1c6   : > { %1939 = vmatprep.mubr.bf16.mxu1 %v1744_v22  ;;  %1909 = vmatprep.subr.bf16.mxu1 %v7338_v15  ;;  %v7395_v3 = vld [vmem:[#allocation5 + $0x3b4] ss:$8 sps:$4 sm:$0xff]   ;;  %v7393_v5 = vld [vmem:[#allocation5 + $0x3b0] ss:$8 sps:$4 sm:$0xff]   ;;  %v7398_v6 = vld [vmem:[#allocation5 + $0x2c4] ss:$8 sps:$4 sm:$0xff]  }
 0x1c7   : > { %2173 = vmatprep.subr.bf16.mxu0 %v7341_v19  ;;  %v7401_v7 = vld [vmem:[#allocation5 + $0x3a4] ss:$8 sps:$4 sm:$0xff]   ;;  %v7396_v8 = vld [vmem:[#allocation5 + $0x2c0] ss:$8 sps:$4 sm:$0xff]   ;;  %v7404_v10 = vld [vmem:[#allocation5 + $0x2b4] ss:$8 sps:$4 sm:$0xff]  }
 0x1c8   : > { %v7399_v9 = vld [vmem:[#allocation5 + $0x3a0] ss:$8 sps:$4 sm:$0xff]   ;;  %v7407_v12 = vld [vmem:[#allocation5 + $0x394] ss:$8 sps:$4 sm:$0xff]   ;;  %v1990_v13 = vshrl.u32 %v8575_v0, 16  ;;  %v1987_v18 = vrot.slane %v1276_v50, 1 }
 0x1c9   : > { %1910 = vmatpush1.bf16.msra.mxu1 %v7336_v23  ;;  %2174 = vmatpush1.bf16.msra.mxu0 %v7339_v24  ;;  %v7402_v14 = vld [vmem:[#allocation5 + $0x2b0] ss:$8 sps:$4 sm:$0xff]   ;;  %v7410_v16 = vld [vmem:[#allocation5 + $0x2a4] ss:$8 sps:$4 sm:$0xff]   ;;  %v1988_v19 = vrot.slane %v1278_v44, 2  ;;  %v1993_v22 = vrot.slane %v1282_v48, 2 }
 0x1ca   : > { %1911 = vmatprep.subr.bf16.mxu1 %v7344_v26  ;;  %2175 = vmatprep.subr.bf16.mxu0 %v7347_v29  ;;  %v7405_v15 = vld [vmem:[#allocation5 + $0x390] ss:$8 sps:$4 sm:$0xff]   ;;  %v7413_v17 = vld [vmem:[#allocation5 + $0x384] ss:$8 sps:$4 sm:$0xff]   ;;  %v1992_v20 = vrot.slane %v1990_v13, 1 }
 0x1cb   : > { %v7408_v23 = vld [vmem:[#allocation5 + $0x2a0] ss:$8 sps:$4 sm:$0xff]   ;;  %v7416_v26 = vld [vmem:[#allocation5 + $0x294] ss:$8 sps:$4 sm:$0xff]   ;;  %v1989_v29 = vor.u32 %v1988_v19, %v1987_v18  ;;  %v7419_v50 = vld [vmem:[#allocation5 + $0x284] ss:$8 sps:$4 sm:$0xff]  }
 0x1cc   : > { %v7411_v24 = vld [vmem:[#allocation5 + $0x380] ss:$8 sps:$4 sm:$0xff]   ;;  %v7422_v44 = vld [vmem:[#allocation5 + $0x474] ss:$8 sps:$4 sm:$0xff]   ;;  %v7420_v48 = vld [vmem:[#allocation5 + $0x470] ss:$8 sps:$4 sm:$0xff]  }
 0x1cd   : > { %1912 = vmatpush1.bf16.msra.mxu1 %v7342_v30  ;;  %2176 = vmatpush1.bf16.msra.mxu0 %v7345_v27  ;;  %v1994_v30 = vor.u32 %v1993_v22, %v1992_v20  ;;  %v7414_v27 = vld [vmem:[#allocation5 + $0x290] ss:$8 sps:$4 sm:$0xff]   ;;  %v7417_v0 = vld [vmem:[#allocation5 + $0x280] ss:$8 sps:$4 sm:$0xff]   ;;  %v7500_v19 = vld [vmem:[#allocation5 + $0x634] ss:$8 sps:$4 sm:$0xff]  }
 0x1ce   : > { %1913 = vmatprep.subr.bf16.mxu1 %v7350_v28  ;;  %2177 = vmatprep.subr.bf16.mxu0 %v7353_v31  ;;  %v7425_v28 = vld [vmem:[#allocation5 + $0x464] ss:$8 sps:$4 sm:$0xff]   ;;  %v7423_v31 = vld [vmem:[#allocation5 + $0x460] ss:$8 sps:$4 sm:$0xff]   ;;  %v7477_v13 = vld [vmem:[#allocation5 + $0x550] ss:$8 sps:$4 sm:$0xff]  }
 0x1cf   : > { %v1995_v42 = vsel %vm872_vm3, %v1989_v29, %v1994_v30  ;;  %v7492_v18 = vld [vmem:[#allocation5 + $0x640] ss:$8 sps:$4 sm:$0xff]   ;;  %v7489_v20 = vld [vmem:[#allocation5 + $0x530] ss:$8 sps:$4 sm:$0xff]   ;;  %v7497_v22 = vld [vmem:[#allocation5 + $0x524] ss:$8 sps:$4 sm:$0xff]  }
 0x1d0   : > { %v7503_v29 = vld [vmem:[#allocation5 + $0x514] ss:$8 sps:$4 sm:$0xff]   ;;  %v7504_v30 = vld [vmem:[#allocation5 + $0x620] ss:$8 sps:$4 sm:$0xff]  }
 0x1d1   : > { %1914 = vmatpush1.bf16.msra.mxu1 %v7348_v32  ;;  %2178 = vmatpush1.bf16.msra.mxu0 %v7351_v33  ;;  %v7428_v32 = vld [vmem:[#allocation5 + $0x454] ss:$8 sps:$4 sm:$0xff]   ;;  %v7426_v33 = vld [vmem:[#allocation5 + $0x450] ss:$8 sps:$4 sm:$0xff]  }
 0x1d2   : > { %1915 = vmatprep.subr.bf16.mxu1 %v7356_v34  ;;  %2179 = vmatprep.subr.bf16.mxu0 %v7359_v35  ;;  %v7431_v34 = vld [vmem:[#allocation5 + $0x444] ss:$8 sps:$4 sm:$0xff]   ;;  %v7429_v35 = vld [vmem:[#allocation5 + $0x440] ss:$8 sps:$4 sm:$0xff]  }
 0x1d5   : > { %1916 = vmatpush1.bf16.msra.mxu1 %v7354_v36  ;;  %2180 = vmatpush1.bf16.msra.mxu0 %v7357_v37  ;;  %v7434_v36 = vld [vmem:[#allocation5 + $0x434] ss:$8 sps:$4 sm:$0xff]   ;;  %v7432_v37 = vld [vmem:[#allocation5 + $0x430] ss:$8 sps:$4 sm:$0xff]  }
 0x1d6   : > { %1917 = vmatprep.subr.bf16.mxu1 %v7362_v38  ;;  %2181 = vmatprep.subr.bf16.mxu0 %v7365_v40  ;;  %v7437_v38 = vld [vmem:[#allocation5 + $0x424] ss:$8 sps:$4 sm:$0xff]   ;;  %v7440_v40 = vld [vmem:[#allocation5 + $0x414] ss:$8 sps:$4 sm:$0xff]  }
 0x1d9   : > { %1918 = vmatpush1.bf16.msra.mxu1 %v7360_v41  ;;  %2182 = vmatpush1.bf16.msra.mxu0 %v7363_v43  ;;  %v7443_v41 = vld [vmem:[#allocation5 + $0x404] ss:$8 sps:$4 sm:$0xff]   ;;  %v7441_v43 = vld [vmem:[#allocation5 + $0x400] ss:$8 sps:$4 sm:$0xff]  }
 0x1da   : > { %1919 = vmatprep.subr.bf16.mxu1 %v7368_v45  ;;  %2183 = vmatprep.subr.bf16.mxu0 %v7371_v46  ;;  %v7446_v45 = vld [vmem:[#allocation5 + $0x4f4] ss:$8 sps:$4 sm:$0xff]   ;;  %v7444_v46 = vld [vmem:[#allocation5 + $0x4f0] ss:$8 sps:$4 sm:$0xff]  }
 0x1dd   : > { %1920 = vmatpush1.bf16.msra.mxu1 %v7366_v47  ;;  %2184 = vmatpush2.bf16.msra.mxu0 %v7369_v49  ;;  %v7449_v47 = vld [vmem:[#allocation5 + $0x4e4] ss:$8 sps:$4 sm:$0xff]   ;;  %v7447_v49 = vld [vmem:[#allocation5 + $0x4e0] ss:$8 sps:$4 sm:$0xff]  }
 0x1de   : > { %1921 = vmatprep.subr.bf16.mxu1 %v7374_v51  ;;  %2185 = vmatprep.subr.bf16.mxu0 %v7377_v52  ;;  %v7452_v51 = vld [vmem:[#allocation5 + $0x4d4] ss:$8 sps:$4 sm:$0xff]   ;;  %v7450_v52 = vld [vmem:[#allocation5 + $0x4d0] ss:$8 sps:$4 sm:$0xff]  }
 0x1e1   : > { %1922 = vmatpush1.bf16.msra.mxu1 %v7372_v53  ;;  %2186 = vmatpush2.bf16.msra.mxu0 %v7375_v54  ;;  %v7455_v53 = vld [vmem:[#allocation5 + $0x4c4] ss:$8 sps:$4 sm:$0xff]   ;;  %v7453_v54 = vld [vmem:[#allocation5 + $0x4c0] ss:$8 sps:$4 sm:$0xff]  }
 0x1e2   : > { %1923 = vmatprep.subr.bf16.mxu1 %v7380_v55  ;;  %2187 = vmatprep.subr.bf16.mxu0 %v7383_v57  ;;  %v7458_v55 = vld [vmem:[#allocation5 + $0x4b4] ss:$8 sps:$4 sm:$0xff]   ;;  %v7456_v57 = vld [vmem:[#allocation5 + $0x4b0] ss:$8 sps:$4 sm:$0xff]  }
 0x1e5   : > { %1924 = vmatpush2.bf16.msra.mxu1 %v7378_v58  ;;  %2188 = vmatpush2.bf16.msra.mxu0 %v7381_v59  ;;  %v7461_v58 = vld [vmem:[#allocation5 + $0x4a4] ss:$8 sps:$4 sm:$0xff]   ;;  %v7459_v59 = vld [vmem:[#allocation5 + $0x4a0] ss:$8 sps:$4 sm:$0xff]  }
 0x1e6   : > { %1925 = vmatprep.subr.bf16.mxu1 %v7386_v60  ;;  %2189 = vmatprep.subr.bf16.mxu0 %v7389_v61  ;;  %v7464_v60 = vld [vmem:[#allocation5 + $0x494] ss:$8 sps:$4 sm:$0xff]   ;;  %v7462_v61 = vld [vmem:[#allocation5 + $0x490] ss:$8 sps:$4 sm:$0xff]  }
 0x1e9   : > { %1926 = vmatpush2.bf16.msra.mxu1 %v7384_v62  ;;  %2190 = vmatpush2.bf16.msra.mxu0 %v7387_v63  ;;  %v7467_v62 = vld [vmem:[#allocation5 + $0x484] ss:$8 sps:$4 sm:$0xff]   ;;  %v7465_v63 = vld [vmem:[#allocation5 + $0x480] ss:$8 sps:$4 sm:$0xff]  }
 0x1ea   : > { %1927 = vmatprep.subr.bf16.mxu1 %v7392_v1  ;;  %2191 = vmatprep.subr.bf16.mxu0 %v7395_v3  ;;  %v7468_v1 = vld [vmem:[#allocation5 + $0x570] ss:$8 sps:$4 sm:$0xff]   ;;  %v7470_v3 = vld [vmem:[#allocation5 + $0x574] ss:$8 sps:$4 sm:$0xff]  }
 0x1ed   : > { %1928 = vmatpush2.bf16.msra.mxu1 %v7390_v4  ;;  %2192 = vmatpush2.bf16.msra.mxu0 %v7393_v5  ;;  %v7473_v4 = vld [vmem:[#allocation5 + $0x564] ss:$8 sps:$4 sm:$0xff]   ;;  %v7474_v5 = vld [vmem:[#allocation5 + $0x670] ss:$8 sps:$4 sm:$0xff]  }
 0x1ee   : > { %1929 = vmatprep.subr.bf16.mxu1 %v7398_v6  ;;  %2193 = vmatprep.subr.bf16.mxu0 %v7401_v7  ;;  %v7476_v6 = vld [vmem:[#allocation5 + $0x674] ss:$8 sps:$4 sm:$0xff]   ;;  %v7471_v7 = vld [vmem:[#allocation5 + $0x560] ss:$8 sps:$4 sm:$0xff]  }
 0x1f1   : > { %1930 = vmatpush2.bf16.msra.mxu1 %v7396_v8  ;;  %2194 = vmatpush2.bf16.msra.mxu0 %v7399_v9  ;;  %v7482_v8 = vld [vmem:[#allocation5 + $0x664] ss:$8 sps:$4 sm:$0xff]   ;;  %v7479_v9 = vld [vmem:[#allocation5 + $0x554] ss:$8 sps:$4 sm:$0xff]  }
 0x1f2   : > { %1931 = vmatprep.subr.bf16.mxu1 %v7404_v10  ;;  %2195 = vmatprep.subr.bf16.mxu0 %v7407_v12  ;;  %v7480_v10 = vld [vmem:[#allocation5 + $0x660] ss:$8 sps:$4 sm:$0xff]   ;;  %v7488_v12 = vld [vmem:[#allocation5 + $0x654] ss:$8 sps:$4 sm:$0xff]  }
 0x1f5   : > { %1932 = vmatpush2.bf16.msra.mxu1 %v7402_v14  ;;  %2196 = vmatpush2.bf16.msra.mxu0 %v7405_v15  ;;  %v7486_v14 = vld [vmem:[#allocation5 + $0x650] ss:$8 sps:$4 sm:$0xff]   ;;  %v7494_v15 = vld [vmem:[#allocation5 + $0x644] ss:$8 sps:$4 sm:$0xff]  }
 0x1f6   : > { %1933 = vmatprep.subr.bf16.mxu1 %v7410_v16  ;;  %2197 = vmatprep.subr.bf16.mxu0 %v7413_v17  ;;  %v7483_v16 = vld [vmem:[#allocation5 + $0x540] ss:$8 sps:$4 sm:$0xff]   ;;  %v7491_v17 = vld [vmem:[#allocation5 + $0x534] ss:$8 sps:$4 sm:$0xff]  }
 0x1f9   : > { %1934 = vmatpush2.bf16.msra.mxu1 %v7408_v23  ;;  %2198 = vmatpush2.bf16.msra.mxu0 %v7411_v24  ;;  %v7498_v23 = vld [vmem:[#allocation5 + $0x630] ss:$8 sps:$4 sm:$0xff]   ;;  %v7506_v24 = vld [vmem:[#allocation5 + $0x624] ss:$8 sps:$4 sm:$0xff]  }
 0x1fa   : > { %1935 = vmatprep.subr.bf16.mxu1 %v7416_v26  ;;  %2760 = vmatprep.subr.bf16.mxu0 %v7476_v6  ;;  %v7495_v26 = vld [vmem:[#allocation5 + $0x520] ss:$8 sps:$4 sm:$0xff]   ;;  %v7572_v6 = vld [vmem:[#allocation5 + $0x774] ss:$8 sps:$4 sm:$0xff]  }
 0x1fc   : > { %2200 = vmatmul.mubr.bf16.vlgmr.msra.gmra.mxu0 %v1995_v42  ;;  %v7509_v42 = vld [vmem:[#allocation5 + $0x504] ss:$8 sps:$4 sm:$0xff]  }
 0x1fd   : > { %1936 = vmatpush2.bf16.msra.mxu1 %v7414_v27  ;;  %2761 = vmatpush1.bf16.msra.mxu0 %v7474_v5  ;;  %v7512_v27 = vld [vmem:[#allocation5 + $0x614] ss:$8 sps:$4 sm:$0xff]   ;;  %v7564_v5 = vld [vmem:[#allocation5 + $0x680] ss:$8 sps:$4 sm:$0xff]  }
 0x1fe   : > { %1937 = vmatprep.subr.bf16.mxu1 %v7419_v50  ;;  %2762 = vmatprep.subr.bf16.mxu0 %v7482_v8  ;;  %v7501_v50 = vld [vmem:[#allocation5 + $0x510] ss:$8 sps:$4 sm:$0xff]  }
 0x201   : > { %1938 = vmatpush2.bf16.msra.mxu1 %v7417_v0  ;;  %2763 = vmatpush1.bf16.msra.mxu0 %v7480_v10  ;;  %v7510_v0 = vld [vmem:[#allocation5 + $0x610] ss:$8 sps:$4 sm:$0xff]  }
 0x202   : > { %2415 = vmatprep.subr.bf16.mxu1 %v7422_v44  ;;  %2764 = vmatprep.subr.bf16.mxu0 %v7488_v12  ;;  %v7507_v44 = vld [vmem:[#allocation5 + $0x500] ss:$8 sps:$4 sm:$0xff]  }
 0x204   : > { %1940 = vmatmul.mubr.bf16.vlgmr.msra.gmra.mxu1 %v8599_v11  ;;  %v7435_v11 = vld [vmem:[#allocation5 + $0x420] ss:$8 sps:$4 sm:$0xff]  }
 0x205   : > { %2416 = vmatpush1.bf16.msra.mxu1 %v7420_v48  ;;  %2447 = vmatprep.mubr.bf16.mxu1 %v8607_v21  ;;  %v7438_v21 = vld [vmem:[#allocation5 + $0x410] ss:$8 sps:$4 sm:$0xff]   ;;  %v7515_v48 = vld [vmem:[#allocation5 + $0x5f4] ss:$8 sps:$4 sm:$0xff]  }
 0x206   : > { %2417 = vmatprep.subr.bf16.mxu1 %v7425_v28  ;;  %2765 = vmatpush1.bf16.msra.mxu0 %v7486_v14  ;;  %v7513_v28 = vld [vmem:[#allocation5 + $0x5f0] ss:$8 sps:$4 sm:$0xff]  }
 0x207   : > { %2766 = vmatprep.subr.bf16.mxu0 %v7494_v15 }
 0x209   : > { %2418 = vmatpush1.bf16.msra.mxu1 %v7423_v31  ;;  %v7516_v31 = vld [vmem:[#allocation5 + $0x600] ss:$8 sps:$4 sm:$0xff]  }
 0x20a   : > { %2419 = vmatprep.subr.bf16.mxu1 %v7428_v32  ;;  %2767 = vmatpush1.bf16.msra.mxu0 %v7492_v18  ;;  %v7518_v32 = vld [vmem:[#allocation5 + $0x604] ss:$8 sps:$4 sm:$0xff]  }
 0x20b   : > { %2768 = vmatprep.subr.bf16.mxu0 %v7500_v19 }
 0x20d   : > { %2420 = vmatpush1.bf16.msra.mxu1 %v7426_v33  ;;  %v7519_v33 = vld [vmem:[#allocation5 + $0x5e0] ss:$8 sps:$4 sm:$0xff]  }
 0x20e   : > { %2421 = vmatprep.subr.bf16.mxu1 %v7431_v34  ;;  %2769 = vmatpush1.bf16.msra.mxu0 %v7498_v23  ;;  %v7521_v34 = vld [vmem:[#allocation5 + $0x5e4] ss:$8 sps:$4 sm:$0xff]  }
 0x20f   : > { %2770 = vmatprep.subr.bf16.mxu0 %v7506_v24  ;;  %v1208_v24 = vld [vmem:[#allocation8 + $0x1] ss:$4 sm:$0x3] }
 0x211   : > { %2422 = vmatpush1.bf16.msra.mxu1 %v7429_v35  ;;  %v7522_v35 = vld [vmem:[#allocation5 + $0x6f0] ss:$8 sps:$4 sm:$0xff]  }
 0x212   : > { %2423 = vmatprep.subr.bf16.mxu1 %v7434_v36  ;;  %2771 = vmatpush1.bf16.msra.mxu0 %v7504_v30  ;;  %v7524_v36 = vld [vmem:[#allocation5 + $0x6f4] ss:$8 sps:$4 sm:$0xff]  }
 0x213   : > { %2772 = vmatprep.subr.bf16.mxu0 %v7512_v27 }
 0x215   : > { %2424 = vmatpush1.bf16.msra.mxu1 %v7432_v37  ;;  %v7525_v37 = vld [vmem:[#allocation5 + $0x5d0] ss:$8 sps:$4 sm:$0xff]  }
 0x216   : > { %2425 = vmatprep.subr.bf16.mxu1 %v7437_v38  ;;  %2773 = vmatpush1.bf16.msra.mxu0 %v7510_v0  ;;  %v7527_v38 = vld [vmem:[#allocation5 + $0x5d4] ss:$8 sps:$4 sm:$0xff]  }
 0x217   : > { %2774 = vmatprep.subr.bf16.mxu0 %v7518_v32 }
 0x219   : > { %2426 = vmatpush1.bf16.msra.mxu1 %v7435_v11  ;;  %v7530_v11 = vld [vmem:[#allocation5 + $0x6e4] ss:$8 sps:$4 sm:$0xff]  }
 0x21a   : > { %2427 = vmatprep.subr.bf16.mxu1 %v7440_v40  ;;  %2775 = vmatpush1.bf16.msra.mxu0 %v7516_v31  ;;  %v7533_v40 = vld [vmem:[#allocation5 + $0x5c4] ss:$8 sps:$4 sm:$0xff]  }
 0x21b   : > { %2776 = vmatprep.subr.bf16.mxu0 %v7524_v36 }
 0x21d   : > { %2428 = vmatpush1.bf16.msra.mxu1 %v7438_v21  ;;  %v7528_v21 = vld [vmem:[#allocation5 + $0x6e0] ss:$8 sps:$4 sm:$0xff]  }
 0x21e   : > { %2429 = vmatprep.subr.bf16.mxu1 %v7443_v41  ;;  %2777 = vmatpush2.bf16.msra.mxu0 %v7522_v35  ;;  %v7531_v41 = vld [vmem:[#allocation5 + $0x5c0] ss:$8 sps:$4 sm:$0xff]  }
 0x21f   : > { %2778 = vmatprep.subr.bf16.mxu0 %v7530_v11 }
 0x221   : > { %2430 = vmatpush1.bf16.msra.mxu1 %v7441_v43  ;;  %v7536_v43 = vld [vmem:[#allocation5 + $0x6d4] ss:$8 sps:$4 sm:$0xff]  }
 0x222   : > { %2431 = vmatprep.subr.bf16.mxu1 %v7446_v45  ;;  %v7539_v45 = vld [vmem:[#allocation5 + $0x5b4] ss:$8 sps:$4 sm:$0xff]   ;;  %2779 = vmatpush2.bf16.msra.mxu0 %v7528_v21 }
 0x223   : > { %2780 = vmatprep.subr.bf16.mxu0 %v7536_v43 }
 0x225   : > { %2432 = vmatpush2.bf16.msra.mxu1 %v7444_v46  ;;  %v7534_v46 = vld [vmem:[#allocation5 + $0x6d0] ss:$8 sps:$4 sm:$0xff]  }
 0x226   : > { %2433 = vmatprep.subr.bf16.mxu1 %v7449_v47  ;;  %v7537_v47 = vld [vmem:[#allocation5 + $0x5b0] ss:$8 sps:$4 sm:$0xff]   ;;  %2781 = vmatpush2.bf16.msra.mxu0 %v7534_v46 }
 0x229   : > { %2434 = vmatpush2.bf16.msra.mxu1 %v7447_v49  ;;  %v7542_v49 = vld [vmem:[#allocation5 + $0x6c4] ss:$8 sps:$4 sm:$0xff]  }
 0x22a   : > { %2435 = vmatprep.subr.bf16.mxu1 %v7452_v51  ;;  %v7545_v51 = vld [vmem:[#allocation5 + $0x5a4] ss:$8 sps:$4 sm:$0xff]   ;;  %2782 = vmatprep.subr.bf16.mxu0 %v7542_v49 }
 0x22d   : > { %2436 = vmatpush2.bf16.msra.mxu1 %v7450_v52  ;;  %v7540_v52 = vld [vmem:[#allocation5 + $0x6c0] ss:$8 sps:$4 sm:$0xff]  }
 0x22e   : > { %2437 = vmatprep.subr.bf16.mxu1 %v7455_v53  ;;  %v7543_v53 = vld [vmem:[#allocation5 + $0x5a0] ss:$8 sps:$4 sm:$0xff]   ;;  %2783 = vmatpush2.bf16.msra.mxu0 %v7540_v52 }
 0x231   : > { %2438 = vmatpush2.bf16.msra.mxu1 %v7453_v54  ;;  %v7548_v54 = vld [vmem:[#allocation5 + $0x6b4] ss:$8 sps:$4 sm:$0xff]  }
 0x232   : > { %2439 = vmatprep.subr.bf16.mxu1 %v7458_v55  ;;  %v7551_v55 = vld [vmem:[#allocation5 + $0x594] ss:$8 sps:$4 sm:$0xff]   ;;  %2784 = vmatprep.subr.bf16.mxu0 %v7548_v54 }
 0x235   : > { %2440 = vmatpush2.bf16.msra.mxu1 %v7456_v57  ;;  %v7546_v57 = vld [vmem:[#allocation5 + $0x6b0] ss:$8 sps:$4 sm:$0xff]  }
 0x236   : > { %2441 = vmatprep.subr.bf16.mxu1 %v7461_v58  ;;  %v7549_v58 = vld [vmem:[#allocation5 + $0x590] ss:$8 sps:$4 sm:$0xff]   ;;  %2785 = vmatpush2.bf16.msra.mxu0 %v7546_v57 }
 0x239   : > { %2442 = vmatpush2.bf16.msra.mxu1 %v7459_v59  ;;  %v7554_v59 = vld [vmem:[#allocation5 + $0x6a4] ss:$8 sps:$4 sm:$0xff]  }
 0x23a   : > { %2443 = vmatprep.subr.bf16.mxu1 %v7464_v60  ;;  %v7557_v60 = vld [vmem:[#allocation5 + $0x584] ss:$8 sps:$4 sm:$0xff]   ;;  %2786 = vmatprep.subr.bf16.mxu0 %v7554_v59 }
 0x23d   : > { %2444 = vmatpush2.bf16.msra.mxu1 %v7462_v61  ;;  %v7552_v61 = vld [vmem:[#allocation5 + $0x6a0] ss:$8 sps:$4 sm:$0xff]  }
 0x23e   : > { %2445 = vmatprep.subr.bf16.mxu1 %v7467_v62  ;;  %v7555_v62 = vld [vmem:[#allocation5 + $0x580] ss:$8 sps:$4 sm:$0xff]   ;;  %2787 = vmatpush2.bf16.msra.mxu0 %v7552_v61 }
 0x241   : > { %2446 = vmatpush2.bf16.msra.mxu1 %v7465_v63  ;;  %v7560_v63 = vld [vmem:[#allocation5 + $0x694] ss:$8 sps:$4 sm:$0xff]  }
 0x242   : > { %2963 = vmatprep.subr.bf16.mxu1 %v7470_v3  ;;  %v7558_v3 = vld [vmem:[#allocation5 + $0x690] ss:$8 sps:$4 sm:$0xff]   ;;  %2788 = vmatprep.subr.bf16.mxu0 %v7560_v63 }
 0x243   : > { %2789 = vmatpush2.bf16.msra.mxu0 %v7558_v3 }
 0x244   : > { %2448 = vmatmul.mubr.bf16.vlgmr.msra.gmra.mxu1 %v8611_v25  ;;  %v7485_v25 = vld [vmem:[#allocation5 + $0x544] ss:$8 sps:$4 sm:$0xff]  }
 0x245   : > { %2964 = vmatpush1.bf16.msra.mxu1 %v7468_v1  ;;  %v7563_v1 = vld [vmem:[#allocation5 + $0x874] ss:$8 sps:$4 sm:$0xff]  }
 0x246   : > { %2965 = vmatprep.subr.bf16.mxu1 %v7473_v4  ;;  %v7566_v4 = vld [vmem:[#allocation5 + $0x684] ss:$8 sps:$4 sm:$0xff]  }
 0x247   : > { %2790 = vmatprep.subr.bf16.mxu0 %v7566_v4  ;;  %v7561_v4 = vld [vmem:[#allocation5 + $0x870] ss:$8 sps:$4 sm:$0xff]  }
 0x248   : > { %2791 = vmatpush2.bf16.msra.mxu0 %v7564_v5 }
 0x249   : > { %2966 = vmatpush1.bf16.msra.mxu1 %v7471_v7  ;;  %3209 = vmatprep.subr.bf16.mxu0 %v7572_v6  ;;  %v7569_v6 = vld [vmem:[#allocation5 + $0x864] ss:$8 sps:$4 sm:$0xff]  }
 0x24a   : > { %2967 = vmatprep.subr.bf16.mxu1 %v7479_v9 }
 0x24d   : > { %2968 = vmatpush1.bf16.msra.mxu1 %v7477_v13 }
 0x24e   : > { %2969 = vmatprep.subr.bf16.mxu1 %v7485_v25 }
 0x251   : > { %2970 = vmatpush1.bf16.msra.mxu1 %v7483_v16 }
 0x252   : > { %2971 = vmatprep.subr.bf16.mxu1 %v7491_v17 }
 0x255   : > { %2972 = vmatpush1.bf16.msra.mxu1 %v7489_v20 }
 0x256   : > { %2973 = vmatprep.subr.bf16.mxu1 %v7497_v22 }
 0x259   : > { %2974 = vmatpush1.bf16.msra.mxu1 %v7495_v26 }
 0x25a   : > { %2975 = vmatprep.subr.bf16.mxu1 %v7503_v29 }
 0x25d   : > { %2976 = vmatpush1.bf16.msra.mxu1 %v7501_v50 }
 0x25e   : > { %2977 = vmatprep.subr.bf16.mxu1 %v7509_v42  ;;  %v1210_v42 = vld [vmem:[#allocation10 + $0x1] ss:$4 sm:$0x3] }
 0x25f   : > { %v2481_v35 = vrot.slane %v1210_v42, %v8562_v56  ;;  %v2485_v21 = vrot.slane %v1210_v42, %v8564_v2  ;;  %v7570_v42 = vld [vmem:[#allocation5 + $0x770] ss:$8 sps:$4 sm:$0xff]  }
 0x261   : > { %2978 = vmatpush1.bf16.msra.mxu1 %v7507_v44  ;;  %v2466_v44 = vrot.slane %v1208_v24, %v8562_v56 }
 0x262   : > { %2979 = vmatprep.subr.bf16.mxu1 %v7515_v48 }
 0x265   : > { %2980 = vmatpush2.bf16.msra.mxu1 %v7513_v28 }
 0x266   : > { %2981 = vmatprep.subr.bf16.mxu1 %v7521_v34  ;;  %v2470_v34 = vrot.slane %v1208_v24, %v8564_v2 }
 0x269   : > { %2982 = vmatpush2.bf16.msra.mxu1 %v7519_v33 }
 0x26a   : > { %2983 = vmatprep.subr.bf16.mxu1 %v7527_v38 }
 0x26d   : > { %2984 = vmatpush2.bf16.msra.mxu1 %v7525_v37 }
 0x26e   : > { %2985 = vmatprep.subr.bf16.mxu1 %v7533_v40 }
 0x271   : > { %2986 = vmatpush2.bf16.msra.mxu1 %v7531_v41 }
 0x272   : > { %2987 = vmatprep.subr.bf16.mxu1 %v7539_v45 }
 0x275   : > { %2988 = vmatpush2.bf16.msra.mxu1 %v7537_v47 }
 0x276   : > { %2989 = vmatprep.subr.bf16.mxu1 %v7545_v51 }
 0x279   : > { %2990 = vmatpush2.bf16.msra.mxu1 %v7543_v53 }
 0x27a   : > { %2991 = vmatprep.subr.bf16.mxu1 %v7551_v55 }
 0x27c   : > { %v1695_v9 = vpop.f32.mrf.mxu0 }
 0x27d   : > { %2992 = vmatpush2.bf16.msra.mxu1 %v7549_v58 }
 0x27e   : > { %2993 = vmatprep.subr.bf16.mxu1 %v7557_v60  ;;  %v1697_v12 = vpop.f32.mrf.mxu0 }
 0x280   : > { %v1699_v25 = vpop.f32.mrf.mxu0 }
 0x281   : > { %2994 = vmatpush2.bf16.msra.mxu1 %v7555_v62 }
 0x282   : > { %3469 = vmatprep.subr.bf16.mxu1 %v7563_v1  ;;  %v1701_v15 = vpop.f32.mrf.mxu0 }
 0x284   : > { %v1492_v7 = vpop.f32.mrf.mxu1 }
 0x285   : > { %v1696_v18 = vadd.f32 %v1695_v9, %v1492_v7 }
 0x286   : > { %v1494_v8 = vpop.f32.mrf.mxu1 }
 0x287   : > { %v1698_v20 = vadd.f32 %v1697_v12, %v1494_v8 }
 0x288   : > { %v1496_v10 = vpop.f32.mrf.mxu1 }
 0x289   : > { %v1700_v26 = vadd.f32 %v1699_v25, %v1496_v10 }
 0x28a   : > { %v1498_v13 = vpop.f32.mrf.mxu1 }
 0x28b   : > { %v1702_v27 = vadd.f32 %v1701_v15, %v1498_v13 }
 0x2bc   : > { %v2201_v17 = vpop.f32.mrf.mxu0 }
 0x2be   : > { %v2203_v23 = vpop.f32.mrf.mxu0 }
 0x2c0   : > { %v2205_v48 = vpop.f32.mrf.mxu0 }
 0x2c2   : > { %v2207_v40 = vpop.f32.mrf.mxu0 }
 0x2c4   : > { %v1941_v14 = vpop.f32.mrf.mxu1 }
 0x2c5   : > { %v1950_v22 = vadd.f32 %v1941_v14, %v1696_v18 }
 0x2c6   : > { %v1943_v16 = vpop.f32.mrf.mxu1 }
 0x2c7   : > { %v1951_v29 = vadd.f32 %v1943_v16, %v1698_v20  ;;  %v2210_v0 = vadd.f32 %v2201_v17, %v1950_v22  ;;  %v7567_v16 = vld [vmem:[#allocation5 + $0x860] ss:$8 sps:$4 sm:$0xff]  }
 0x2c8   : > { %v1945_v19 = vpop.f32.mrf.mxu1 }
 0x2c9   : > { %v1952_v50 = vadd.f32 %v1945_v19, %v1700_v26  ;;  %v2211_v33 = vadd.f32 %v2203_v23, %v1951_v29  ;;  %v7575_v23 = vld [vmem:[#allocation5 + $0x854] ss:$8 sps:$4 sm:$0xff]  }
 0x2ca   : > { %v1947_v30 = vpop.f32.mrf.mxu1 }
 0x2cb   : > { %v1953_v31 = vadd.f32 %v1947_v30, %v1702_v27  ;;  %v2212_v11 = vadd.f32 %v2205_v48, %v1952_v50  ;;  %v7573_v48 = vld [vmem:[#allocation5 + $0x850] ss:$8 sps:$4 sm:$0xff]  }
 0x2cd   : > { %v2213_v46 = vadd.f32 %v2207_v40, %v1953_v31  ;;  %v7581_v40 = vld [vmem:[#allocation5 + $0x844] ss:$8 sps:$4 sm:$0xff]  }
 0x304   : > { %v2449_v28 = vpop.f32.mrf.mxu1 }
 0x305   : > { %v2458_v32 = vadd.f32 %v2449_v28, %v2210_v0 }
 0x306   : > { %v2451_v36 = vpop.f32.mrf.mxu1 }
 0x307   : > { %v2473_v37 = vmul.f32 %v2466_v44, %v2458_v32  ;;  %v2459_v38 = vadd.f32 %v2451_v36, %v2211_v33  ;;  %v7578_v36 = vld [vmem:[#allocation5 + $0x764] ss:$8 sps:$4 sm:$0xff]  }
 0x308   : > { %v2453_v41 = vpop.f32.mrf.mxu1 }
 0x309   : > { %v2474_v43 = vmul.f32 %v2470_v34, %v2459_v38  ;;  %v2460_v45 = vadd.f32 %v2453_v41, %v2212_v11  ;;  %v2488_v47 = vadd.f32 %v2481_v35, %v2473_v37 }
 0x30a   : > { %v2455_v49 = vpop.f32.mrf.mxu1 }
 0x30b   : > { %v2475_v51 = vmul.f32 %v2466_v44, %v2460_v45  ;;  %v2461_v52 = vadd.f32 %v2455_v49, %v2213_v46  ;;  %v2489_v53 = vadd.f32 %v2485_v21, %v2474_v43  ;;  %8036 = vtanh.f32 %v2488_v47  ;;  %v7576_v45 = vld [vmem:[#allocation5 + $0x760] ss:$8 sps:$4 sm:$0xff]   ;;  %v7584_v49 = vld [vmem:[#allocation5 + $0x754] ss:$8 sps:$4 sm:$0xff]  }
 0x30c   : > { %v7579_v46 = vld [vmem:[#allocation5 + $0x840] ss:$8 sps:$4 sm:$0xff]  }
 0x30d   : > { %v2490_v54 = vadd.f32 %v2481_v35, %v2475_v51  ;;  %v2476_v55 = vmul.f32 %v2470_v34, %v2461_v52  ;;  %v7587_v51 = vld [vmem:[#allocation5 + $0x834] ss:$8 sps:$4 sm:$0xff]   ;;  %v7582_v52 = vld [vmem:[#allocation5 + $0x750] ss:$8 sps:$4 sm:$0xff]  }
 0x30f   : > { %8038 = vtanh.f32 %v2490_v54  ;;  %v2491_v57 = vadd.f32 %v2485_v21, %v2476_v55  ;;  %v7590_v54 = vld [vmem:[#allocation5 + $0x744] ss:$8 sps:$4 sm:$0xff]  }
 0x310   : > { %8040 = vtanh.f32 %v2489_v53  ;;  %v7585_v53 = vld [vmem:[#allocation5 + $0x830] ss:$8 sps:$4 sm:$0xff]   ;;  %v7593_v55 = vld [vmem:[#allocation5 + $0x824] ss:$8 sps:$4 sm:$0xff]  }
 0x311   : > { %8042 = vtanh.f32 %v2491_v57  ;;  %v7588_v57 = vld [vmem:[#allocation5 + $0x740] ss:$8 sps:$4 sm:$0xff]  }
 0x318   : > { %v8037_v58 = vpop.eup %8036 }
 0x31c   : > { %v8039_v59 = vpop.eup %8038 }
 0x31d   : > { %v8041_v60 = vpop.eup %8040  ;;  %v2496_v61 = vpack.c.bf16 %v8039_v59, %v8037_v58  ;;  %v7591_v58 = vld [vmem:[#allocation5 + $0x820] ss:$8 sps:$4 sm:$0xff]   ;;  %v7596_v59 = vld [vmem:[#allocation5 + $0x734] ss:$8 sps:$4 sm:$0xff]  }
 0x31e   : > { %v8043_v62 = vpop.eup %8042 }
 0x31f   : > { %v2497_v63 = vpack.c.bf16 %v8043_v62, %v8041_v60  ;;  %v8628_v1 = vrot.slane %v2496_v61, 6  ;;  %v7599_v60 = vld [vmem:[#allocation5 + $0x814] ss:$8 sps:$4 sm:$0xff]   ;;  %v7594_v61 = vld [vmem:[#allocation5 + $0x730] ss:$8 sps:$4 sm:$0xff]  }
 0x320   : > { %v7597_v62 = vld [vmem:[#allocation5 + $0x810] ss:$8 sps:$4 sm:$0xff]  }
 0x321   : > { %v2501_v3 = vrot.slane %v2497_v63, 6  ;;  %v8632_v5 = vsel %vm1199_vm4, 0, %v8628_v1  ;;  %v2584_v12 = vshll.u32 %v8628_v1, 16  ;;  %v3042_v20 = vrot.slane %v8628_v1, 1  ;;  %v7602_v63 = vld [vmem:[#allocation5 + $0x724] ss:$8 sps:$4 sm:$0xff]  }
 0x322   : > { %v2580_v7 = vshll.u32 %v8632_v5, 16  ;;  %v2578_v14 = vshrl.u32 %v8632_v5, 16  ;;  %v3041_v19 = vrot.slane %v8632_v5, 1  ;;  %v3549_v38 = vrot.slane %v8632_v5, 2 }
 0x323   : > { %6523 = vmatprep.mubr.msk.bf16.mxu1 %vm8571_vm5, %v2501_v3  ;;  %v2506_v8 = vsel %vm1199_vm4, 0, %v2501_v3  ;;  %v2594_v9 = vshll.u32 %v2501_v3, 16  ;;  %v3301_v10 = vshrl.u32 %v2501_v3, 16  ;;  %v2586_v44 = vrot.slane %v2584_v12, 1 }
 0x324   : > { %6525 = vmatmul.mubr.msk.bf16.vlgmr.msra.gmra.mxu1 %vm8571_vm5, %v8628_v1  ;;  %v2588_v13 = vshrl.u32 %v2506_v8, 16  ;;  %v2590_v25 = vshll.u32 %v2506_v8, 16  ;;  %v2582_v15 = vrot.slane %v2580_v7, 1  ;;  %v3044_v28 = vrot.slane %v2506_v8, 1 }
 0x325   : > { %3470 = vmatpush1.bf16.msra.mxu1 %v7561_v4  ;;  %v3303_v17 = vrot.slane %v3301_v10, 1  ;;  %v3304_v18 = vrot.slane %v2594_v9, 2  ;;  %v2596_v50 = vrot.slane %v2594_v9, 1  ;;  %v3045_v31 = vrot.slane %v2501_v3, 1  ;;  %v7600_v4 = vld [vmem:[#allocation5 + $0x720] ss:$8 sps:$4 sm:$0xff]  }
 0x326   : > { %3471 = vmatprep.subr.bf16.mxu1 %v7569_v6  ;;  %v2592_v22 = vrot.slane %v2590_v25, 1  ;;  %v3298_v24 = vrot.slane %v2588_v13, 1  ;;  %v3299_v26 = vrot.slane %v2590_v25, 2  ;;  %v2583_v30 = vor.u32 %v2582_v15, %v2578_v14  ;;  %v7603_v6 = vld [vmem:[#allocation5 + $0x800] ss:$8 sps:$4 sm:$0xff]  }
 0x327   : > { %v3305_v29 = vor.u32 %v3304_v18, %v3303_v17  ;;  %v8652_v32 = vsel %vm723_vm2, %v3041_v19, %v3042_v20  ;;  %v3552_v33 = vrot.slane %v2506_v8, 2  ;;  %v3553_v37 = vrot.slane %v2501_v3, 2  ;;  %v7605_v3 = vld [vmem:[#allocation5 + $0x804] ss:$8 sps:$4 sm:$0xff]   ;;  %v7608_v8 = vld [vmem:[#allocation5 + $0x714] ss:$8 sps:$4 sm:$0xff]  }
 0x328   : > { %v2593_v27 = vor.u32 %v2592_v22, %v2588_v13  ;;  %v3300_v0 = vor.u32 %v3299_v26, %v3298_v24  ;;  %v2587_v11 = vsel %vm445_vm0, %v2583_v30, %v2586_v44  ;;  %v3550_v21 = vrot.slane %v8628_v1, 2  ;;  %v7611_v9 = vld [vmem:[#allocation5 + $0x8f4] ss:$8 sps:$4 sm:$0xff]   ;;  %v7606_v10 = vld [vmem:[#allocation5 + $0x710] ss:$8 sps:$4 sm:$0xff]  }
 0x329   : > { %3472 = vmatpush1.bf16.msra.mxu1 %v7567_v16  ;;  %v8660_v41 = vsel %vm1027_vm1, %v3552_v33, %v3553_v37  ;;  %v3046_v43 = vsel %vm723_vm2, %v3044_v28, %v3045_v31  ;;  %v7609_v13 = vld [vmem:[#allocation5 + $0x8f0] ss:$8 sps:$4 sm:$0xff]   ;;  %v7614_v25 = vld [vmem:[#allocation5 + $0x704] ss:$8 sps:$4 sm:$0xff]   ;;  %v7612_v16 = vld [vmem:[#allocation5 + $0x700] ss:$8 sps:$4 sm:$0xff]  }
 0x32a   : > { %v2597_v34 = vsel %vm445_vm0, %v2593_v27, %v2596_v50  ;;  %3473 = vmatprep.subr.bf16.mxu1 %v7575_v23  ;;  %v3306_v35 = vsel %vm872_vm3, %v3300_v0, %v3305_v29  ;;  %v8664_v47 = vsel %vm1027_vm1, %v3549_v38, %v3550_v21  ;;  %v7617_v15 = vld [vmem:[#allocation5 + $0x8e4] ss:$8 sps:$4 sm:$0xff]   ;;  %v7615_v17 = vld [vmem:[#allocation5 + $0x8e0] ss:$8 sps:$4 sm:$0xff]   ;;  %v7620_v18 = vld [vmem:[#allocation5 + $0x7f4] ss:$8 sps:$4 sm:$0xff]  }
 0x32b   : > { %2792 = vmatprep.mubr.bf16.mxu0 %v2597_v34  ;;  %3501 = vmatprep.mubr.bf16.mxu1 %v3306_v35  ;;  %v7623_v19 = vld [vmem:[#allocation5 + $0x8d4] ss:$8 sps:$4 sm:$0xff]   ;;  %v7618_v20 = vld [vmem:[#allocation5 + $0x7f0] ss:$8 sps:$4 sm:$0xff]   ;;  %v7626_v23 = vld [vmem:[#allocation5 + $0x7e4] ss:$8 sps:$4 sm:$0xff]  }
 0x32c   : > { %2793 = vmatmul.mubr.bf16.vlgmr.msra.gmra.mxu0 %v2587_v11  ;;  %v7621_v22 = vld [vmem:[#allocation5 + $0x8d0] ss:$8 sps:$4 sm:$0xff]   ;;  %v7629_v24 = vld [vmem:[#allocation5 + $0x8c4] ss:$8 sps:$4 sm:$0xff]   ;;  %v7624_v26 = vld [vmem:[#allocation5 + $0x7e0] ss:$8 sps:$4 sm:$0xff]  }
 0x32d   : > { %3210 = vmatpush1.bf16.msra.mxu0 %v7570_v42  ;;  %3474 = vmatpush1.bf16.msra.mxu1 %v7573_v48  ;;  %v7627_v29 = vld [vmem:[#allocation5 + $0x8c0] ss:$8 sps:$4 sm:$0xff]   ;;  %v7632_v30 = vld [vmem:[#allocation5 + $0x7d4] ss:$8 sps:$4 sm:$0xff]   ;;  %v7630_v50 = vld [vmem:[#allocation5 + $0x7d0] ss:$8 sps:$4 sm:$0xff]  }
 0x32e   : > { %3241 = vmatprep.mubr.bf16.mxu0 %v3046_v43  ;;  %3211 = vmatprep.subr.bf16.mxu0 %v7578_v36  ;;  %v7635_v27 = vld [vmem:[#allocation5 + $0x8b4] ss:$8 sps:$4 sm:$0xff]   ;;  %v7633_v42 = vld [vmem:[#allocation5 + $0x8b0] ss:$8 sps:$4 sm:$0xff]   ;;  %v7638_v0 = vld [vmem:[#allocation5 + $0x7c4] ss:$8 sps:$4 sm:$0xff]  }
 0x32f   : > { %3475 = vmatprep.subr.bf16.mxu1 %v7581_v40  ;;  %v7641_v44 = vld [vmem:[#allocation5 + $0x8a4] ss:$8 sps:$4 sm:$0xff]   ;;  %v7636_v48 = vld [vmem:[#allocation5 + $0x7c0] ss:$8 sps:$4 sm:$0xff]   ;;  %v7644_v31 = vld [vmem:[#allocation5 + $0x7b4] ss:$8 sps:$4 sm:$0xff]  }
 0x330   : > { %v7639_v28 = vld [vmem:[#allocation5 + $0x8a0] ss:$8 sps:$4 sm:$0xff]   ;;  %v7647_v33 = vld [vmem:[#allocation5 + $0x894] ss:$8 sps:$4 sm:$0xff]   ;;  %v3292_v34 = vshrl.u32 %v8628_v1, 16  ;;  %v3289_v11 = vrot.slane %v2578_v14, 1 }
 0x331   : > { %3212 = vmatpush1.bf16.msra.mxu0 %v7576_v45  ;;  %3476 = vmatpush1.bf16.msra.mxu1 %v7579_v46  ;;  %v7642_v35 = vld [vmem:[#allocation5 + $0x7b0] ss:$8 sps:$4 sm:$0xff]   ;;  %v7650_v37 = vld [vmem:[#allocation5 + $0x7a4] ss:$8 sps:$4 sm:$0xff]   ;;  %v3290_v40 = vrot.slane %v2580_v7, 2  ;;  %v3295_v43 = vrot.slane %v2584_v12, 2 }
 0x332   : > { %3213 = vmatprep.subr.bf16.mxu0 %v7584_v49  ;;  %3477 = vmatprep.subr.bf16.mxu1 %v7587_v51  ;;  %v7645_v36 = vld [vmem:[#allocation5 + $0x890] ss:$8 sps:$4 sm:$0xff]   ;;  %v7653_v38 = vld [vmem:[#allocation5 + $0x884] ss:$8 sps:$4 sm:$0xff]   ;;  %v3294_v21 = vrot.slane %v3292_v34, 1 }
 0x333   : > { %v7648_v45 = vld [vmem:[#allocation5 + $0x7a0] ss:$8 sps:$4 sm:$0xff]   ;;  %v7656_v49 = vld [vmem:[#allocation5 + $0x794] ss:$8 sps:$4 sm:$0xff]   ;;  %v3291_v51 = vor.u32 %v3290_v40, %v3289_v11  ;;  %v7659_v14 = vld [vmem:[#allocation5 + $0x784] ss:$8 sps:$4 sm:$0xff]  }
 0x334   : > { %v7651_v46 = vld [vmem:[#allocation5 + $0x880] ss:$8 sps:$4 sm:$0xff]   ;;  %v7662_v7 = vld [vmem:[#allocation5 + $0x974] ss:$8 sps:$4 sm:$0xff]   ;;  %v7660_v12 = vld [vmem:[#allocation5 + $0x970] ss:$8 sps:$4 sm:$0xff]  }
 0x335   : > { %3214 = vmatpush1.bf16.msra.mxu0 %v7582_v52  ;;  %3478 = vmatpush1.bf16.msra.mxu1 %v7585_v53  ;;  %v3296_v52 = vor.u32 %v3295_v43, %v3294_v21  ;;  %v7654_v53 = vld [vmem:[#allocation5 + $0x790] ss:$8 sps:$4 sm:$0xff]   ;;  %v7657_v1 = vld [vmem:[#allocation5 + $0x780] ss:$8 sps:$4 sm:$0xff]   ;;  %v7740_v40 = vld [vmem:[#allocation5 + $0xb34] ss:$8 sps:$4 sm:$0xff]  }
 0x336   : > { %3215 = vmatprep.subr.bf16.mxu0 %v7590_v54  ;;  %3479 = vmatprep.subr.bf16.mxu1 %v7593_v55  ;;  %v7665_v54 = vld [vmem:[#allocation5 + $0x964] ss:$8 sps:$4 sm:$0xff]   ;;  %v7663_v55 = vld [vmem:[#allocation5 + $0x960] ss:$8 sps:$4 sm:$0xff]   ;;  %v7717_v34 = vld [vmem:[#allocation5 + $0xa50] ss:$8 sps:$4 sm:$0xff]  }
 0x337   : > { %v3297_v5 = vsel %vm872_vm3, %v3291_v51, %v3296_v52  ;;  %v7732_v11 = vld [vmem:[#allocation5 + $0xb40] ss:$8 sps:$4 sm:$0xff]   ;;  %v7729_v21 = vld [vmem:[#allocation5 + $0xa30] ss:$8 sps:$4 sm:$0xff]   ;;  %v7737_v43 = vld [vmem:[#allocation5 + $0xa24] ss:$8 sps:$4 sm:$0xff]  }
 0x338   : > { %v7743_v51 = vld [vmem:[#allocation5 + $0xa14] ss:$8 sps:$4 sm:$0xff]   ;;  %v7744_v52 = vld [vmem:[#allocation5 + $0xb20] ss:$8 sps:$4 sm:$0xff]  }
 0x339   : > { %3216 = vmatpush1.bf16.msra.mxu0 %v7588_v57  ;;  %3480 = vmatpush1.bf16.msra.mxu1 %v7591_v58  ;;  %v7668_v57 = vld [vmem:[#allocation5 + $0x954] ss:$8 sps:$4 sm:$0xff]   ;;  %v7666_v58 = vld [vmem:[#allocation5 + $0x950] ss:$8 sps:$4 sm:$0xff]  }
 0x33a   : > { %3217 = vmatprep.subr.bf16.mxu0 %v7596_v59  ;;  %3481 = vmatprep.subr.bf16.mxu1 %v7599_v60  ;;  %v7671_v59 = vld [vmem:[#allocation5 + $0x944] ss:$8 sps:$4 sm:$0xff]   ;;  %v7669_v60 = vld [vmem:[#allocation5 + $0x940] ss:$8 sps:$4 sm:$0xff]  }
 0x33d   : > { %3218 = vmatpush1.bf16.msra.mxu0 %v7594_v61  ;;  %3482 = vmatpush1.bf16.msra.mxu1 %v7597_v62  ;;  %v7674_v61 = vld [vmem:[#allocation5 + $0x934] ss:$8 sps:$4 sm:$0xff]   ;;  %v7672_v62 = vld [vmem:[#allocation5 + $0x930] ss:$8 sps:$4 sm:$0xff]  }
 0x33e   : > { %3219 = vmatprep.subr.bf16.mxu0 %v7602_v63  ;;  %3483 = vmatprep.subr.bf16.mxu1 %v7605_v3  ;;  %v7677_v63 = vld [vmem:[#allocation5 + $0x924] ss:$8 sps:$4 sm:$0xff]   ;;  %v7680_v3 = vld [vmem:[#allocation5 + $0x914] ss:$8 sps:$4 sm:$0xff]  }
 0x341   : > { %3220 = vmatpush1.bf16.msra.mxu0 %v7600_v4  ;;  %3484 = vmatpush1.bf16.msra.mxu1 %v7603_v6  ;;  %v7683_v4 = vld [vmem:[#allocation5 + $0x904] ss:$8 sps:$4 sm:$0xff]   ;;  %v7681_v6 = vld [vmem:[#allocation5 + $0x900] ss:$8 sps:$4 sm:$0xff]  }
 0x342   : > { %3221 = vmatprep.subr.bf16.mxu0 %v7608_v8  ;;  %3485 = vmatprep.subr.bf16.mxu1 %v7611_v9  ;;  %v7686_v8 = vld [vmem:[#allocation5 + $0x9f4] ss:$8 sps:$4 sm:$0xff]   ;;  %v7684_v9 = vld [vmem:[#allocation5 + $0x9f0] ss:$8 sps:$4 sm:$0xff]  }
 0x345   : > { %3222 = vmatpush1.bf16.msra.mxu0 %v7606_v10  ;;  %3486 = vmatpush2.bf16.msra.mxu1 %v7609_v13  ;;  %v7689_v10 = vld [vmem:[#allocation5 + $0x9e4] ss:$8 sps:$4 sm:$0xff]   ;;  %v7687_v13 = vld [vmem:[#allocation5 + $0x9e0] ss:$8 sps:$4 sm:$0xff]  }
 0x346   : > { %3223 = vmatprep.subr.bf16.mxu0 %v7614_v25  ;;  %3487 = vmatprep.subr.bf16.mxu1 %v7617_v15  ;;  %v7692_v25 = vld [vmem:[#allocation5 + $0x9d4] ss:$8 sps:$4 sm:$0xff]   ;;  %v7690_v15 = vld [vmem:[#allocation5 + $0x9d0] ss:$8 sps:$4 sm:$0xff]  }
 0x349   : > { %3224 = vmatpush1.bf16.msra.mxu0 %v7612_v16  ;;  %3488 = vmatpush2.bf16.msra.mxu1 %v7615_v17  ;;  %v7695_v16 = vld [vmem:[#allocation5 + $0x9c4] ss:$8 sps:$4 sm:$0xff]   ;;  %v7693_v17 = vld [vmem:[#allocation5 + $0x9c0] ss:$8 sps:$4 sm:$0xff]  }
 0x34a   : > { %3225 = vmatprep.subr.bf16.mxu0 %v7620_v18  ;;  %3489 = vmatprep.subr.bf16.mxu1 %v7623_v19  ;;  %v7698_v18 = vld [vmem:[#allocation5 + $0x9b4] ss:$8 sps:$4 sm:$0xff]   ;;  %v7696_v19 = vld [vmem:[#allocation5 + $0x9b0] ss:$8 sps:$4 sm:$0xff]  }
 0x34d   : > { %3226 = vmatpush2.bf16.msra.mxu0 %v7618_v20  ;;  %3490 = vmatpush2.bf16.msra.mxu1 %v7621_v22  ;;  %v7701_v20 = vld [vmem:[#allocation5 + $0x9a4] ss:$8 sps:$4 sm:$0xff]   ;;  %v7699_v22 = vld [vmem:[#allocation5 + $0x9a0] ss:$8 sps:$4 sm:$0xff]  }
 0x34e   : > { %3227 = vmatprep.subr.bf16.mxu0 %v7626_v23  ;;  %3491 = vmatprep.subr.bf16.mxu1 %v7629_v24  ;;  %v7704_v23 = vld [vmem:[#allocation5 + $0x994] ss:$8 sps:$4 sm:$0xff]   ;;  %v7702_v24 = vld [vmem:[#allocation5 + $0x990] ss:$8 sps:$4 sm:$0xff]  }
 0x351   : > { %3228 = vmatpush2.bf16.msra.mxu0 %v7624_v26  ;;  %3492 = vmatpush2.bf16.msra.mxu1 %v7627_v29  ;;  %v7707_v26 = vld [vmem:[#allocation5 + $0x984] ss:$8 sps:$4 sm:$0xff]   ;;  %v7705_v29 = vld [vmem:[#allocation5 + $0x980] ss:$8 sps:$4 sm:$0xff]  }
 0x352   : > { %3229 = vmatprep.subr.bf16.mxu0 %v7632_v30  ;;  %3493 = vmatprep.subr.bf16.mxu1 %v7635_v27  ;;  %v7708_v30 = vld [vmem:[#allocation5 + $0xa70] ss:$8 sps:$4 sm:$0xff]   ;;  %v7710_v27 = vld [vmem:[#allocation5 + $0xa74] ss:$8 sps:$4 sm:$0xff]  }
 0x355   : > { %3230 = vmatpush2.bf16.msra.mxu0 %v7630_v50  ;;  %3494 = vmatpush2.bf16.msra.mxu1 %v7633_v42  ;;  %v7713_v50 = vld [vmem:[#allocation5 + $0xa64] ss:$8 sps:$4 sm:$0xff]   ;;  %v7714_v42 = vld [vmem:[#allocation5 + $0xb70] ss:$8 sps:$4 sm:$0xff]  }
 0x356   : > { %3231 = vmatprep.subr.bf16.mxu0 %v7638_v0  ;;  %3495 = vmatprep.subr.bf16.mxu1 %v7641_v44  ;;  %v7716_v0 = vld [vmem:[#allocation5 + $0xb74] ss:$8 sps:$4 sm:$0xff]   ;;  %v7711_v44 = vld [vmem:[#allocation5 + $0xa60] ss:$8 sps:$4 sm:$0xff]  }
 0x359   : > { %3232 = vmatpush2.bf16.msra.mxu0 %v7636_v48  ;;  %3496 = vmatpush2.bf16.msra.mxu1 %v7639_v28  ;;  %v7722_v48 = vld [vmem:[#allocation5 + $0xb64] ss:$8 sps:$4 sm:$0xff]   ;;  %v7719_v28 = vld [vmem:[#allocation5 + $0xa54] ss:$8 sps:$4 sm:$0xff]  }
 0x35a   : > { %3233 = vmatprep.subr.bf16.mxu0 %v7644_v31  ;;  %3497 = vmatprep.subr.bf16.mxu1 %v7647_v33  ;;  %v7720_v31 = vld [vmem:[#allocation5 + $0xb60] ss:$8 sps:$4 sm:$0xff]   ;;  %v7728_v33 = vld [vmem:[#allocation5 + $0xb54] ss:$8 sps:$4 sm:$0xff]  }
 0x35d   : > { %3234 = vmatpush2.bf16.msra.mxu0 %v7642_v35  ;;  %3498 = vmatpush2.bf16.msra.mxu1 %v7645_v36  ;;  %v7726_v35 = vld [vmem:[#allocation5 + $0xb50] ss:$8 sps:$4 sm:$0xff]   ;;  %v7734_v36 = vld [vmem:[#allocation5 + $0xb44] ss:$8 sps:$4 sm:$0xff]  }
 0x35e   : > { %3235 = vmatprep.subr.bf16.mxu0 %v7650_v37  ;;  %3499 = vmatprep.subr.bf16.mxu1 %v7653_v38  ;;  %v7723_v37 = vld [vmem:[#allocation5 + $0xa40] ss:$8 sps:$4 sm:$0xff]   ;;  %v7731_v38 = vld [vmem:[#allocation5 + $0xa34] ss:$8 sps:$4 sm:$0xff]  }
 0x361   : > { %3236 = vmatpush2.bf16.msra.mxu0 %v7648_v45  ;;  %3500 = vmatpush2.bf16.msra.mxu1 %v7651_v46  ;;  %v7738_v45 = vld [vmem:[#allocation5 + $0xb30] ss:$8 sps:$4 sm:$0xff]   ;;  %v7746_v46 = vld [vmem:[#allocation5 + $0xb24] ss:$8 sps:$4 sm:$0xff]  }
 0x362   : > { %3237 = vmatprep.subr.bf16.mxu0 %v7656_v49  ;;  %4062 = vmatprep.subr.bf16.mxu1 %v7716_v0  ;;  %v7735_v49 = vld [vmem:[#allocation5 + $0xa20] ss:$8 sps:$4 sm:$0xff]   ;;  %v7812_v0 = vld [vmem:[#allocation5 + $0xc74] ss:$8 sps:$4 sm:$0xff]  }
 0x364   : > { %3502 = vmatmul.mubr.bf16.vlgmr.msra.gmra.mxu1 %v3297_v5  ;;  %v7749_v5 = vld [vmem:[#allocation5 + $0xa04] ss:$8 sps:$4 sm:$0xff]  }
 0x365   : > { %3238 = vmatpush2.bf16.msra.mxu0 %v7654_v53  ;;  %4063 = vmatpush1.bf16.msra.mxu1 %v7714_v42  ;;  %v7752_v53 = vld [vmem:[#allocation5 + $0xb14] ss:$8 sps:$4 sm:$0xff]   ;;  %v7804_v42 = vld [vmem:[#allocation5 + $0xb80] ss:$8 sps:$4 sm:$0xff]  }
 0x366   : > { %3239 = vmatprep.subr.bf16.mxu0 %v7659_v14  ;;  %4064 = vmatprep.subr.bf16.mxu1 %v7722_v48  ;;  %v7741_v14 = vld [vmem:[#allocation5 + $0xa10] ss:$8 sps:$4 sm:$0xff]  }
 0x369   : > { %3240 = vmatpush2.bf16.msra.mxu0 %v7657_v1  ;;  %4065 = vmatpush1.bf16.msra.mxu1 %v7720_v31  ;;  %v7750_v1 = vld [vmem:[#allocation5 + $0xb10] ss:$8 sps:$4 sm:$0xff]  }
 0x36a   : > { %3717 = vmatprep.subr.bf16.mxu0 %v7662_v7  ;;  %4066 = vmatprep.subr.bf16.mxu1 %v7728_v33  ;;  %v7747_v7 = vld [vmem:[#allocation5 + $0xa00] ss:$8 sps:$4 sm:$0xff]  }
 0x36c   : > { %3242 = vmatmul.mubr.bf16.vlgmr.msra.gmra.mxu0 %v8652_v32  ;;  %v7675_v32 = vld [vmem:[#allocation5 + $0x920] ss:$8 sps:$4 sm:$0xff]  }
 0x36d   : > { %3718 = vmatpush1.bf16.msra.mxu0 %v7660_v12  ;;  %3749 = vmatprep.mubr.bf16.mxu0 %v8660_v41  ;;  %v7678_v41 = vld [vmem:[#allocation5 + $0x910] ss:$8 sps:$4 sm:$0xff]   ;;  %v7755_v12 = vld [vmem:[#allocation5 + $0xaf4] ss:$8 sps:$4 sm:$0xff]  }
 0x36e   : > { %3719 = vmatprep.subr.bf16.mxu0 %v7665_v54  ;;  %4067 = vmatpush1.bf16.msra.mxu1 %v7726_v35  ;;  %v7753_v54 = vld [vmem:[#allocation5 + $0xaf0] ss:$8 sps:$4 sm:$0xff]  }
 0x36f   : > { %4068 = vmatprep.subr.bf16.mxu1 %v7734_v36 }
 0x371   : > { %3720 = vmatpush1.bf16.msra.mxu0 %v7663_v55  ;;  %v7756_v55 = vld [vmem:[#allocation5 + $0xb00] ss:$8 sps:$4 sm:$0xff]  }
 0x372   : > { %3721 = vmatprep.subr.bf16.mxu0 %v7668_v57  ;;  %4069 = vmatpush1.bf16.msra.mxu1 %v7732_v11  ;;  %v7758_v57 = vld [vmem:[#allocation5 + $0xb04] ss:$8 sps:$4 sm:$0xff]  }
 0x373   : > { %4070 = vmatprep.subr.bf16.mxu1 %v7740_v40 }
 0x375   : > { %3722 = vmatpush1.bf16.msra.mxu0 %v7666_v58  ;;  %v7759_v58 = vld [vmem:[#allocation5 + $0xae0] ss:$8 sps:$4 sm:$0xff]  }
 0x376   : > { %3723 = vmatprep.subr.bf16.mxu0 %v7671_v59  ;;  %4071 = vmatpush1.bf16.msra.mxu1 %v7738_v45  ;;  %v7761_v59 = vld [vmem:[#allocation5 + $0xae4] ss:$8 sps:$4 sm:$0xff]  }
 0x377   : > { %4072 = vmatprep.subr.bf16.mxu1 %v7746_v46  ;;  %v2509_v46 = vld [vmem:[#allocation8 + $0x2] ss:$4 sm:$0x3] }
 0x379   : > { %3724 = vmatpush1.bf16.msra.mxu0 %v7669_v60  ;;  %v7762_v60 = vld [vmem:[#allocation5 + $0xbf0] ss:$8 sps:$4 sm:$0xff]  }
 0x37a   : > { %3725 = vmatprep.subr.bf16.mxu0 %v7674_v61  ;;  %4073 = vmatpush1.bf16.msra.mxu1 %v7744_v52  ;;  %v7764_v61 = vld [vmem:[#allocation5 + $0xbf4] ss:$8 sps:$4 sm:$0xff]  }
 0x37b   : > { %4074 = vmatprep.subr.bf16.mxu1 %v7752_v53 }
 0x37d   : > { %3726 = vmatpush1.bf16.msra.mxu0 %v7672_v62  ;;  %v7765_v62 = vld [vmem:[#allocation5 + $0xad0] ss:$8 sps:$4 sm:$0xff]  }
 0x37e   : > { %3727 = vmatprep.subr.bf16.mxu0 %v7677_v63  ;;  %4075 = vmatpush1.bf16.msra.mxu1 %v7750_v1  ;;  %v7767_v63 = vld [vmem:[#allocation5 + $0xad4] ss:$8 sps:$4 sm:$0xff]  }
 0x37f   : > { %4076 = vmatprep.subr.bf16.mxu1 %v7758_v57 }
 0x381   : > { %3728 = vmatpush1.bf16.msra.mxu0 %v7675_v32  ;;  %v7770_v32 = vld [vmem:[#allocation5 + $0xbe4] ss:$8 sps:$4 sm:$0xff]  }
 0x382   : > { %3729 = vmatprep.subr.bf16.mxu0 %v7680_v3  ;;  %4077 = vmatpush1.bf16.msra.mxu1 %v7756_v55  ;;  %v7773_v3 = vld [vmem:[#allocation5 + $0xac4] ss:$8 sps:$4 sm:$0xff]  }
 0x383   : > { %4078 = vmatprep.subr.bf16.mxu1 %v7764_v61 }
 0x385   : > { %3730 = vmatpush1.bf16.msra.mxu0 %v7678_v41  ;;  %v7768_v41 = vld [vmem:[#allocation5 + $0xbe0] ss:$8 sps:$4 sm:$0xff]  }
 0x386   : > { %3731 = vmatprep.subr.bf16.mxu0 %v7683_v4  ;;  %4079 = vmatpush2.bf16.msra.mxu1 %v7762_v60  ;;  %v7771_v4 = vld [vmem:[#allocation5 + $0xac0] ss:$8 sps:$4 sm:$0xff]  }
 0x387   : > { %4080 = vmatprep.subr.bf16.mxu1 %v7770_v32 }
 0x389   : > { %3732 = vmatpush1.bf16.msra.mxu0 %v7681_v6  ;;  %v7776_v6 = vld [vmem:[#allocation5 + $0xbd4] ss:$8 sps:$4 sm:$0xff]  }
 0x38a   : > { %3733 = vmatprep.subr.bf16.mxu0 %v7686_v8  ;;  %v7779_v8 = vld [vmem:[#allocation5 + $0xab4] ss:$8 sps:$4 sm:$0xff]   ;;  %4081 = vmatpush2.bf16.msra.mxu1 %v7768_v41 }
 0x38b   : > { %4082 = vmatprep.subr.bf16.mxu1 %v7776_v6 }
 0x38d   : > { %3734 = vmatpush2.bf16.msra.mxu0 %v7684_v9  ;;  %v7774_v9 = vld [vmem:[#allocation5 + $0xbd0] ss:$8 sps:$4 sm:$0xff]  }
 0x38e   : > { %3735 = vmatprep.subr.bf16.mxu0 %v7689_v10  ;;  %v7777_v10 = vld [vmem:[#allocation5 + $0xab0] ss:$8 sps:$4 sm:$0xff]   ;;  %4083 = vmatpush2.bf16.msra.mxu1 %v7774_v9 }
 0x391   : > { %3736 = vmatpush2.bf16.msra.mxu0 %v7687_v13  ;;  %v7782_v13 = vld [vmem:[#allocation5 + $0xbc4] ss:$8 sps:$4 sm:$0xff]  }
 0x392   : > { %3737 = vmatprep.subr.bf16.mxu0 %v7692_v25  ;;  %v7785_v25 = vld [vmem:[#allocation5 + $0xaa4] ss:$8 sps:$4 sm:$0xff]   ;;  %4084 = vmatprep.subr.bf16.mxu1 %v7782_v13 }
 0x395   : > { %3738 = vmatpush2.bf16.msra.mxu0 %v7690_v15  ;;  %v7780_v15 = vld [vmem:[#allocation5 + $0xbc0] ss:$8 sps:$4 sm:$0xff]  }
 0x396   : > { %3739 = vmatprep.subr.bf16.mxu0 %v7695_v16  ;;  %v7783_v16 = vld [vmem:[#allocation5 + $0xaa0] ss:$8 sps:$4 sm:$0xff]   ;;  %4085 = vmatpush2.bf16.msra.mxu1 %v7780_v15 }
 0x399   : > { %3740 = vmatpush2.bf16.msra.mxu0 %v7693_v17  ;;  %v7788_v17 = vld [vmem:[#allocation5 + $0xbb4] ss:$8 sps:$4 sm:$0xff]  }
 0x39a   : > { %3741 = vmatprep.subr.bf16.mxu0 %v7698_v18  ;;  %v7791_v18 = vld [vmem:[#allocation5 + $0xa94] ss:$8 sps:$4 sm:$0xff]   ;;  %4086 = vmatprep.subr.bf16.mxu1 %v7788_v17 }
 0x39d   : > { %3742 = vmatpush2.bf16.msra.mxu0 %v7696_v19  ;;  %v7786_v19 = vld [vmem:[#allocation5 + $0xbb0] ss:$8 sps:$4 sm:$0xff]  }
 0x39e   : > { %3743 = vmatprep.subr.bf16.mxu0 %v7701_v20  ;;  %v7789_v20 = vld [vmem:[#allocation5 + $0xa90] ss:$8 sps:$4 sm:$0xff]   ;;  %4087 = vmatpush2.bf16.msra.mxu1 %v7786_v19 }
 0x3a1   : > { %3744 = vmatpush2.bf16.msra.mxu0 %v7699_v22  ;;  %v7794_v22 = vld [vmem:[#allocation5 + $0xba4] ss:$8 sps:$4 sm:$0xff]  }
 0x3a2   : > { %3745 = vmatprep.subr.bf16.mxu0 %v7704_v23  ;;  %v7797_v23 = vld [vmem:[#allocation5 + $0xa84] ss:$8 sps:$4 sm:$0xff]   ;;  %4088 = vmatprep.subr.bf16.mxu1 %v7794_v22 }
 0x3a5   : > { %3746 = vmatpush2.bf16.msra.mxu0 %v7702_v24  ;;  %v7792_v24 = vld [vmem:[#allocation5 + $0xba0] ss:$8 sps:$4 sm:$0xff]  }
 0x3a6   : > { %3747 = vmatprep.subr.bf16.mxu0 %v7707_v26  ;;  %v7795_v26 = vld [vmem:[#allocation5 + $0xa80] ss:$8 sps:$4 sm:$0xff]   ;;  %4089 = vmatpush2.bf16.msra.mxu1 %v7792_v24 }
 0x3a9   : > { %3748 = vmatpush2.bf16.msra.mxu0 %v7705_v29  ;;  %v7800_v29 = vld [vmem:[#allocation5 + $0xb94] ss:$8 sps:$4 sm:$0xff]  }
 0x3aa   : > { %4265 = vmatprep.subr.bf16.mxu0 %v7710_v27  ;;  %v7798_v27 = vld [vmem:[#allocation5 + $0xb90] ss:$8 sps:$4 sm:$0xff]   ;;  %4090 = vmatprep.subr.bf16.mxu1 %v7800_v29 }
 0x3ab   : > { %4091 = vmatpush2.bf16.msra.mxu1 %v7798_v27 }
 0x3ac   : > { %3750 = vmatmul.mubr.bf16.vlgmr.msra.gmra.mxu0 %v8664_v47  ;;  %v7725_v47 = vld [vmem:[#allocation5 + $0xa44] ss:$8 sps:$4 sm:$0xff]  }
 0x3ad   : > { %4266 = vmatpush1.bf16.msra.mxu0 %v7708_v30  ;;  %v7803_v30 = vld [vmem:[#allocation5 + $0xd74] ss:$8 sps:$4 sm:$0xff]  }
 0x3ae   : > { %4267 = vmatprep.subr.bf16.mxu0 %v7713_v50  ;;  %v7806_v50 = vld [vmem:[#allocation5 + $0xb84] ss:$8 sps:$4 sm:$0xff]  }
 0x3af   : > { %4092 = vmatprep.subr.bf16.mxu1 %v7806_v50  ;;  %v7801_v50 = vld [vmem:[#allocation5 + $0xd70] ss:$8 sps:$4 sm:$0xff]  }
 0x3b0   : > { %4093 = vmatpush2.bf16.msra.mxu1 %v7804_v42 }
 0x3b1   : > { %4268 = vmatpush1.bf16.msra.mxu0 %v7711_v44  ;;  %4511 = vmatprep.subr.bf16.mxu1 %v7812_v0  ;;  %v7809_v0 = vld [vmem:[#allocation5 + $0xd64] ss:$8 sps:$4 sm:$0xff]  }
 0x3b2   : > { %4269 = vmatprep.subr.bf16.mxu0 %v7719_v28 }
 0x3b5   : > { %4270 = vmatpush1.bf16.msra.mxu0 %v7717_v34 }
 0x3b6   : > { %4271 = vmatprep.subr.bf16.mxu0 %v7725_v47 }
 0x3b9   : > { %4272 = vmatpush1.bf16.msra.mxu0 %v7723_v37 }
 0x3ba   : > { %4273 = vmatprep.subr.bf16.mxu0 %v7731_v38 }
 0x3bd   : > { %4274 = vmatpush1.bf16.msra.mxu0 %v7729_v21 }
 0x3be   : > { %4275 = vmatprep.subr.bf16.mxu0 %v7737_v43 }
 0x3c1   : > { %4276 = vmatpush1.bf16.msra.mxu0 %v7735_v49 }
 0x3c2   : > { %4277 = vmatprep.subr.bf16.mxu0 %v7743_v51 }
 0x3c5   : > { %4278 = vmatpush1.bf16.msra.mxu0 %v7741_v14 }
 0x3c6   : > { %4279 = vmatprep.subr.bf16.mxu0 %v7749_v5  ;;  %v2511_v5 = vld [vmem:[#allocation10 + $0x2] ss:$4 sm:$0x3] }
 0x3c7   : > { %v3783_v60 = vrot.slane %v2511_v5, %v8562_v56  ;;  %v3787_v41 = vrot.slane %v2511_v5, %v8564_v2  ;;  %v7810_v5 = vld [vmem:[#allocation5 + $0xc70] ss:$8 sps:$4 sm:$0xff]  }
 0x3c9   : > { %4280 = vmatpush1.bf16.msra.mxu0 %v7747_v7  ;;  %v3768_v7 = vrot.slane %v2509_v46, %v8562_v56 }
 0x3ca   : > { %4281 = vmatprep.subr.bf16.mxu0 %v7755_v12 }
 0x3cd   : > { %4282 = vmatpush2.bf16.msra.mxu0 %v7753_v54 }
 0x3ce   : > { %4283 = vmatprep.subr.bf16.mxu0 %v7761_v59  ;;  %v3772_v59 = vrot.slane %v2509_v46, %v8564_v2 }
 0x3d1   : > { %4284 = vmatpush2.bf16.msra.mxu0 %v7759_v58 }
 0x3d2   : > { %4285 = vmatprep.subr.bf16.mxu0 %v7767_v63 }
 0x3d5   : > { %4286 = vmatpush2.bf16.msra.mxu0 %v7765_v62 }
 0x3d6   : > { %4287 = vmatprep.subr.bf16.mxu0 %v7773_v3 }
 0x3d9   : > { %4288 = vmatpush2.bf16.msra.mxu0 %v7771_v4 }
 0x3da   : > { %4289 = vmatprep.subr.bf16.mxu0 %v7779_v8 }
 0x3dd   : > { %4290 = vmatpush2.bf16.msra.mxu0 %v7777_v10 }
 0x3de   : > { %4291 = vmatprep.subr.bf16.mxu0 %v7785_v25 }
 0x3e1   : > { %4292 = vmatpush2.bf16.msra.mxu0 %v7783_v16 }
 0x3e2   : > { %4293 = vmatprep.subr.bf16.mxu0 %v7791_v18 }
 0x3e4   : > { %v2997_v28 = vpop.f32.mrf.mxu1 }
 0x3e5   : > { %4294 = vmatpush2.bf16.msra.mxu0 %v7789_v20 }
 0x3e6   : > { %4295 = vmatprep.subr.bf16.mxu0 %v7797_v23  ;;  %v2999_v33 = vpop.f32.mrf.mxu1 }
 0x3e8   : > { %v3001_v47 = vpop.f32.mrf.mxu1 }
 0x3e9   : > { %4296 = vmatpush2.bf16.msra.mxu0 %v7795_v26 }
 0x3ea   : > { %4771 = vmatprep.subr.bf16.mxu0 %v7803_v30  ;;  %v3003_v36 = vpop.f32.mrf.mxu1 }
 0x3ec   : > { %v2794_v44 = vpop.f32.mrf.mxu0 }
 0x3ed   : > { %v2998_v11 = vadd.f32 %v2997_v28, %v2794_v44 }
 0x3ee   : > { %v2796_v48 = vpop.f32.mrf.mxu0 }
 0x3ef   : > { %v3000_v21 = vadd.f32 %v2999_v33, %v2796_v48 }
 0x3f0   : > { %v2798_v31 = vpop.f32.mrf.mxu0 }
 0x3f1   : > { %v3002_v49 = vadd.f32 %v3001_v47, %v2798_v31 }
 0x3f2   : > { %v2800_v34 = vpop.f32.mrf.mxu0 }
 0x3f3   : > { %v3004_v53 = vadd.f32 %v3003_v36, %v2800_v34 }
 0x424   : > { %v3503_v38 = vpop.f32.mrf.mxu1 }
 0x426   : > { %v3505_v45 = vpop.f32.mrf.mxu1 }
 0x428   : > { %v3507_v12 = vpop.f32.mrf.mxu1 }
 0x42a   : > { %v3509_v3 = vpop.f32.mrf.mxu1 }
 0x42c   : > { %v3243_v35 = vpop.f32.mrf.mxu0 }
 0x42d   : > { %v3252_v43 = vadd.f32 %v3243_v35, %v2998_v11 }
 0x42e   : > { %v3245_v37 = vpop.f32.mrf.mxu0 }
 0x42f   : > { %v3253_v51 = vadd.f32 %v3245_v37, %v3000_v21  ;;  %v3512_v1 = vadd.f32 %v3503_v38, %v3252_v43  ;;  %v7807_v37 = vld [vmem:[#allocation5 + $0xd60] ss:$8 sps:$4 sm:$0xff]  }
 0x430   : > { %v3247_v40 = vpop.f32.mrf.mxu0 }
 0x431   : > { %v3254_v14 = vadd.f32 %v3247_v40, %v3002_v49  ;;  %v3513_v58 = vadd.f32 %v3505_v45, %v3253_v51  ;;  %v7815_v45 = vld [vmem:[#allocation5 + $0xd54] ss:$8 sps:$4 sm:$0xff]  }
 0x432   : > { %v3249_v52 = vpop.f32.mrf.mxu0 }
 0x433   : > { %v3255_v55 = vadd.f32 %v3249_v52, %v3004_v53  ;;  %v3514_v32 = vadd.f32 %v3507_v12, %v3254_v14  ;;  %v7813_v12 = vld [vmem:[#allocation5 + $0xd50] ss:$8 sps:$4 sm:$0xff]  }
 0x435   : > { %v3515_v9 = vadd.f32 %v3509_v3, %v3255_v55  ;;  %v7821_v3 = vld [vmem:[#allocation5 + $0xd44] ss:$8 sps:$4 sm:$0xff]  }
 0x46c   : > { %v3751_v54 = vpop.f32.mrf.mxu0 }
 0x46d   : > { %v3760_v57 = vadd.f32 %v3751_v54, %v3512_v1 }
 0x46e   : > { %v3753_v61 = vpop.f32.mrf.mxu0 }
 0x46f   : > { %v3775_v62 = vmul.f32 %v3768_v7, %v3760_v57  ;;  %v3761_v63 = vadd.f32 %v3753_v61, %v3513_v58  ;;  %v7818_v61 = vld [vmem:[#allocation5 + $0xc64] ss:$8 sps:$4 sm:$0xff]  }
 0x470   : > { %v3755_v4 = vpop.f32.mrf.mxu0 }
 0x471   : > { %v3776_v6 = vmul.f32 %v3772_v59, %v3761_v63  ;;  %v3762_v8 = vadd.f32 %v3755_v4, %v3514_v32  ;;  %v3790_v10 = vadd.f32 %v3783_v60, %v3775_v62 }
 0x472   : > { %v3757_v13 = vpop.f32.mrf.mxu0 }
 0x473   : > { %v3777_v25 = vmul.f32 %v3768_v7, %v3762_v8  ;;  %v3763_v15 = vadd.f32 %v3757_v13, %v3515_v9  ;;  %v3791_v16 = vadd.f32 %v3787_v41, %v3776_v6  ;;  %8044 = vtanh.f32 %v3790_v10  ;;  %v7816_v8 = vld [vmem:[#allocation5 + $0xc60] ss:$8 sps:$4 sm:$0xff]   ;;  %v7824_v13 = vld [vmem:[#allocation5 + $0xc54] ss:$8 sps:$4 sm:$0xff]  }
 0x474   : > { %v7819_v9 = vld [vmem:[#allocation5 + $0xd40] ss:$8 sps:$4 sm:$0xff]  }
 0x475   : > { %v3792_v17 = vadd.f32 %v3783_v60, %v3777_v25  ;;  %v3778_v18 = vmul.f32 %v3772_v59, %v3763_v15  ;;  %v7827_v25 = vld [vmem:[#allocation5 + $0xd34] ss:$8 sps:$4 sm:$0xff]   ;;  %v7822_v15 = vld [vmem:[#allocation5 + $0xc50] ss:$8 sps:$4 sm:$0xff]  }
 0x477   : > { %8046 = vtanh.f32 %v3792_v17  ;;  %v3793_v19 = vadd.f32 %v3787_v41, %v3778_v18  ;;  %v7830_v17 = vld [vmem:[#allocation5 + $0xc44] ss:$8 sps:$4 sm:$0xff]  }
 0x478   : > { %8048 = vtanh.f32 %v3791_v16  ;;  %v7825_v16 = vld [vmem:[#allocation5 + $0xd30] ss:$8 sps:$4 sm:$0xff]   ;;  %v7833_v18 = vld [vmem:[#allocation5 + $0xd24] ss:$8 sps:$4 sm:$0xff]  }
 0x479   : > { %8050 = vtanh.f32 %v3793_v19  ;;  %v7828_v19 = vld [vmem:[#allocation5 + $0xc40] ss:$8 sps:$4 sm:$0xff]  }
 0x480   : > { %v8045_v20 = vpop.eup %8044 }
 0x484   : > { %v8047_v22 = vpop.eup %8046 }
 0x485   : > { %v8049_v23 = vpop.eup %8048  ;;  %v3798_v24 = vpack.c.bf16 %v8047_v22, %v8045_v20  ;;  %v7831_v20 = vld [vmem:[#allocation5 + $0xd20] ss:$8 sps:$4 sm:$0xff]   ;;  %v7836_v22 = vld [vmem:[#allocation5 + $0xc34] ss:$8 sps:$4 sm:$0xff]  }
 0x486   : > { %v8051_v26 = vpop.eup %8050 }
 0x487   : > { %v3799_v29 = vpack.c.bf16 %v8051_v26, %v8049_v23  ;;  %v8681_v30 = vrot.slane %v3798_v24, 6  ;;  %v7839_v23 = vld [vmem:[#allocation5 + $0xd14] ss:$8 sps:$4 sm:$0xff]   ;;  %v7834_v24 = vld [vmem:[#allocation5 + $0xc30] ss:$8 sps:$4 sm:$0xff]  }
 0x488   : > { %v7837_v26 = vld [vmem:[#allocation5 + $0xd10] ss:$8 sps:$4 sm:$0xff]  }
 0x489   : > { %v3803_v27 = vrot.slane %v3799_v29, 6  ;;  %v8685_v42 = vsel %vm1199_vm4, 0, %v8681_v30  ;;  %v3886_v33 = vshll.u32 %v8681_v30, 16  ;;  %v4344_v21 = vrot.slane %v8681_v30, 1  ;;  %v7842_v29 = vld [vmem:[#allocation5 + $0xc24] ss:$8 sps:$4 sm:$0xff]  }
 0x48a   : > { %v3882_v44 = vshll.u32 %v8685_v42, 16  ;;  %v3880_v35 = vshrl.u32 %v8685_v42, 16  ;;  %v4343_v40 = vrot.slane %v8685_v42, 1  ;;  %v4851_v63 = vrot.slane %v8685_v42, 2 }
 0x48b   : > { %6687 = vmatprep.mubr.msk.bf16.mxu0 %vm8571_vm5, %v3803_v27  ;;  %v3808_v48 = vsel %vm1199_vm4, 0, %v3803_v27  ;;  %v3896_v28 = vshll.u32 %v3803_v27, 16  ;;  %v4603_v31 = vshrl.u32 %v3803_v27, 16  ;;  %v3888_v7 = vrot.slane %v3886_v33, 1 }
 0x48c   : > { %6689 = vmatmul.mubr.msk.bf16.vlgmr.msra.gmra.mxu0 %vm8571_vm5, %v8681_v30  ;;  %v3890_v34 = vshrl.u32 %v3808_v48, 16  ;;  %v3892_v47 = vshll.u32 %v3808_v48, 16  ;;  %v3884_v36 = vrot.slane %v3882_v44, 1  ;;  %v4346_v54 = vrot.slane %v3808_v48, 1 }
 0x48d   : > { %4772 = vmatpush1.bf16.msra.mxu0 %v7801_v50  ;;  %v4605_v38 = vrot.slane %v4603_v31, 1  ;;  %v4606_v11 = vrot.slane %v3896_v28, 2  ;;  %v3898_v14 = vrot.slane %v3896_v28, 1  ;;  %v4347_v55 = vrot.slane %v3803_v27, 1  ;;  %v7840_v50 = vld [vmem:[#allocation5 + $0xc20] ss:$8 sps:$4 sm:$0xff]  }
 0x48e   : > { %4773 = vmatprep.subr.bf16.mxu0 %v7809_v0  ;;  %v3894_v43 = vrot.slane %v3892_v47, 1  ;;  %v4600_v46 = vrot.slane %v3890_v34, 1  ;;  %v4601_v49 = vrot.slane %v3892_v47, 2  ;;  %v3885_v52 = vor.u32 %v3884_v36, %v3880_v35  ;;  %v7843_v0 = vld [vmem:[#allocation5 + $0xd00] ss:$8 sps:$4 sm:$0xff]  }
 0x48f   : > { %v4607_v51 = vor.u32 %v4606_v11, %v4605_v38  ;;  %v8705_v57 = vsel %vm723_vm2, %v4343_v40, %v4344_v21  ;;  %v4854_v58 = vrot.slane %v3808_v48, 2  ;;  %v4855_v62 = vrot.slane %v3803_v27, 2  ;;  %v7845_v27 = vld [vmem:[#allocation5 + $0xd04] ss:$8 sps:$4 sm:$0xff]   ;;  %v7848_v48 = vld [vmem:[#allocation5 + $0xc14] ss:$8 sps:$4 sm:$0xff]  }
 0x490   : > { %v3895_v53 = vor.u32 %v3894_v43, %v3890_v34  ;;  %v4602_v1 = vor.u32 %v4601_v49, %v4600_v46  ;;  %v3889_v32 = vsel %vm445_vm0, %v3885_v52, %v3888_v7  ;;  %v4852_v41 = vrot.slane %v8681_v30, 2  ;;  %v7851_v28 = vld [vmem:[#allocation5 + $0xdf4] ss:$8 sps:$4 sm:$0xff]   ;;  %v7846_v31 = vld [vmem:[#allocation5 + $0xc10] ss:$8 sps:$4 sm:$0xff]  }
 0x491   : > { %4774 = vmatpush1.bf16.msra.mxu0 %v7807_v37  ;;  %v8713_v4 = vsel %vm1027_vm1, %v4854_v58, %v4855_v62  ;;  %v4348_v6 = vsel %vm723_vm2, %v4346_v54, %v4347_v55  ;;  %v7849_v34 = vld [vmem:[#allocation5 + $0xdf0] ss:$8 sps:$4 sm:$0xff]   ;;  %v7854_v47 = vld [vmem:[#allocation5 + $0xc04] ss:$8 sps:$4 sm:$0xff]   ;;  %v7852_v37 = vld [vmem:[#allocation5 + $0xc00] ss:$8 sps:$4 sm:$0xff]  }
 0x492   : > { %v3899_v59 = vsel %vm445_vm0, %v3895_v53, %v3898_v14  ;;  %4775 = vmatprep.subr.bf16.mxu0 %v7815_v45  ;;  %v4608_v60 = vsel %vm872_vm3, %v4602_v1, %v4607_v51  ;;  %v8717_v10 = vsel %vm1027_vm1, %v4851_v63, %v4852_v41  ;;  %v7857_v36 = vld [vmem:[#allocation5 + $0xde4] ss:$8 sps:$4 sm:$0xff]   ;;  %v7855_v38 = vld [vmem:[#allocation5 + $0xde0] ss:$8 sps:$4 sm:$0xff]   ;;  %v7860_v11 = vld [vmem:[#allocation5 + $0xcf4] ss:$8 sps:$4 sm:$0xff]  }
 0x493   : > { %4094 = vmatprep.mubr.bf16.mxu1 %v3899_v59  ;;  %4803 = vmatprep.mubr.bf16.mxu0 %v4608_v60  ;;  %v7863_v40 = vld [vmem:[#allocation5 + $0xdd4] ss:$8 sps:$4 sm:$0xff]   ;;  %v7858_v21 = vld [vmem:[#allocation5 + $0xcf0] ss:$8 sps:$4 sm:$0xff]   ;;  %v7866_v45 = vld [vmem:[#allocation5 + $0xce4] ss:$8 sps:$4 sm:$0xff]  }
 0x494   : > { %4095 = vmatmul.mubr.bf16.vlgmr.msra.gmra.mxu1 %v3889_v32  ;;  %v7861_v43 = vld [vmem:[#allocation5 + $0xdd0] ss:$8 sps:$4 sm:$0xff]   ;;  %v7869_v46 = vld [vmem:[#allocation5 + $0xdc4] ss:$8 sps:$4 sm:$0xff]   ;;  %v7864_v49 = vld [vmem:[#allocation5 + $0xce0] ss:$8 sps:$4 sm:$0xff]  }
 0x495   : > { %4512 = vmatpush1.bf16.msra.mxu1 %v7810_v5  ;;  %4776 = vmatpush1.bf16.msra.mxu0 %v7813_v12  ;;  %v7867_v51 = vld [vmem:[#allocation5 + $0xdc0] ss:$8 sps:$4 sm:$0xff]   ;;  %v7872_v52 = vld [vmem:[#allocation5 + $0xcd4] ss:$8 sps:$4 sm:$0xff]   ;;  %v7870_v14 = vld [vmem:[#allocation5 + $0xcd0] ss:$8 sps:$4 sm:$0xff]  }
 0x496   : > { %4543 = vmatprep.mubr.bf16.mxu1 %v4348_v6  ;;  %4513 = vmatprep.subr.bf16.mxu1 %v7818_v61  ;;  %v7875_v53 = vld [vmem:[#allocation5 + $0xdb4] ss:$8 sps:$4 sm:$0xff]   ;;  %v7873_v5 = vld [vmem:[#allocation5 + $0xdb0] ss:$8 sps:$4 sm:$0xff]   ;;  %v7878_v1 = vld [vmem:[#allocation5 + $0xcc4] ss:$8 sps:$4 sm:$0xff]  }
 0x497   : > { %4777 = vmatprep.subr.bf16.mxu0 %v7821_v3  ;;  %v7881_v7 = vld [vmem:[#allocation5 + $0xda4] ss:$8 sps:$4 sm:$0xff]   ;;  %v7876_v12 = vld [vmem:[#allocation5 + $0xcc0] ss:$8 sps:$4 sm:$0xff]   ;;  %v7884_v55 = vld [vmem:[#allocation5 + $0xcb4] ss:$8 sps:$4 sm:$0xff]  }
 0x498   : > { %v7879_v54 = vld [vmem:[#allocation5 + $0xda0] ss:$8 sps:$4 sm:$0xff]   ;;  %v7887_v58 = vld [vmem:[#allocation5 + $0xd94] ss:$8 sps:$4 sm:$0xff]   ;;  %v4594_v59 = vshrl.u32 %v8681_v30, 16  ;;  %v4591_v32 = vrot.slane %v3880_v35, 1 }
 0x499   : > { %4514 = vmatpush1.bf16.msra.mxu1 %v7816_v8  ;;  %4778 = vmatpush1.bf16.msra.mxu0 %v7819_v9  ;;  %v7882_v60 = vld [vmem:[#allocation5 + $0xcb0] ss:$8 sps:$4 sm:$0xff]   ;;  %v7890_v62 = vld [vmem:[#allocation5 + $0xca4] ss:$8 sps:$4 sm:$0xff]   ;;  %v4592_v3 = vrot.slane %v3882_v44, 2  ;;  %v4597_v6 = vrot.slane %v3886_v33, 2 }
 0x49a   : > { %4515 = vmatprep.subr.bf16.mxu1 %v7824_v13  ;;  %4779 = vmatprep.subr.bf16.mxu0 %v7827_v25  ;;  %v7885_v61 = vld [vmem:[#allocation5 + $0xd90] ss:$8 sps:$4 sm:$0xff]   ;;  %v7893_v63 = vld [vmem:[#allocation5 + $0xd84] ss:$8 sps:$4 sm:$0xff]   ;;  %v4596_v41 = vrot.slane %v4594_v59, 1 }
 0x49b   : > { %v7888_v8 = vld [vmem:[#allocation5 + $0xca0] ss:$8 sps:$4 sm:$0xff]   ;;  %v7896_v13 = vld [vmem:[#allocation5 + $0xc94] ss:$8 sps:$4 sm:$0xff]   ;;  %v4593_v25 = vor.u32 %v4592_v3, %v4591_v32  ;;  %v7899_v35 = vld [vmem:[#allocation5 + $0xc84] ss:$8 sps:$4 sm:$0xff]  }
 0x49c   : > { %v7891_v9 = vld [vmem:[#allocation5 + $0xd80] ss:$8 sps:$4 sm:$0xff]   ;;  %v7902_v44 = vld [vmem:[#allocation5 + $0xe74] ss:$8 sps:$4 sm:$0xff]   ;;  %v7900_v33 = vld [vmem:[#allocation5 + $0xe70] ss:$8 sps:$4 sm:$0xff]  }
 0x49d   : > { %4516 = vmatpush1.bf16.msra.mxu1 %v7822_v15  ;;  %4780 = vmatpush1.bf16.msra.mxu0 %v7825_v16  ;;  %v4598_v15 = vor.u32 %v4597_v6, %v4596_v41  ;;  %v7894_v16 = vld [vmem:[#allocation5 + $0xc90] ss:$8 sps:$4 sm:$0xff]   ;;  %v7897_v30 = vld [vmem:[#allocation5 + $0xc80] ss:$8 sps:$4 sm:$0xff]  }
 0x49e   : > { %4517 = vmatprep.subr.bf16.mxu1 %v7830_v17  ;;  %4781 = vmatprep.subr.bf16.mxu0 %v7833_v18  ;;  %v7905_v17 = vld [vmem:[#allocation5 + $0xe64] ss:$8 sps:$4 sm:$0xff]   ;;  %v7903_v18 = vld [vmem:[#allocation5 + $0xe60] ss:$8 sps:$4 sm:$0xff]   ;;  %v7965_v3 = vld [vmem:[#allocation7 + $0x118] sm:$0xff]  }
 0x49f   : > { %v4599_v42 = vsel %vm872_vm3, %v4593_v25, %v4598_v15  ;;  %v7959_v59 = vld [vmem:[#allocation7 + $0x160] sm:$0xff]   ;;  %v7966_v41 = vld [vmem:[#allocation7 + $0xd8] sm:$0xff]   ;;  %v7967_v6 = vld [vmem:[#allocation7 + $0x150] sm:$0xff]  }
 0x4a0   : > { %v7964_v32 = vld [vmem:[#allocation7 + $0xa0] sm:$0xff]   ;;  %v7971_v25 = vld [vmem:[#allocation7 + $0x148] sm:$0xff]   ;;  %v7972_v15 = vld [vmem:[#allocation7 + $0x90] sm:$0xff]  }
 0x4a1   : > { %4518 = vmatpush1.bf16.msra.mxu1 %v7828_v19  ;;  %4782 = vmatpush1.bf16.msra.mxu0 %v7831_v20  ;;  %v7908_v19 = vld [vmem:[#allocation5 + $0xe54] ss:$8 sps:$4 sm:$0xff]   ;;  %v7906_v20 = vld [vmem:[#allocation5 + $0xe50] ss:$8 sps:$4 sm:$0xff]  }
 0x4a2   : > { %4519 = vmatprep.subr.bf16.mxu1 %v7836_v22  ;;  %4783 = vmatprep.subr.bf16.mxu0 %v7839_v23  ;;  %v7911_v22 = vld [vmem:[#allocation5 + $0xe44] ss:$8 sps:$4 sm:$0xff]   ;;  %v7909_v23 = vld [vmem:[#allocation5 + $0xe40] ss:$8 sps:$4 sm:$0xff]  }
 0x4a5   : > { %4520 = vmatpush1.bf16.msra.mxu1 %v7834_v24  ;;  %4784 = vmatpush1.bf16.msra.mxu0 %v7837_v26  ;;  %v7914_v24 = vld [vmem:[#allocation5 + $0xe34] ss:$8 sps:$4 sm:$0xff]   ;;  %v7912_v26 = vld [vmem:[#allocation5 + $0xe30] ss:$8 sps:$4 sm:$0xff]  }
 0x4a6   : > { %4521 = vmatprep.subr.bf16.mxu1 %v7842_v29  ;;  %4785 = vmatprep.subr.bf16.mxu0 %v7845_v27  ;;  %v7917_v29 = vld [vmem:[#allocation5 + $0xe24] ss:$8 sps:$4 sm:$0xff]   ;;  %v7920_v27 = vld [vmem:[#allocation5 + $0xe14] ss:$8 sps:$4 sm:$0xff]  }
 0x4a9   : > { %4522 = vmatpush1.bf16.msra.mxu1 %v7840_v50  ;;  %4786 = vmatpush1.bf16.msra.mxu0 %v7843_v0  ;;  %v7923_v50 = vld [vmem:[#allocation5 + $0xe04] ss:$8 sps:$4 sm:$0xff]   ;;  %v7921_v0 = vld [vmem:[#allocation5 + $0xe00] ss:$8 sps:$4 sm:$0xff]  }
 0x4aa   : > { %4523 = vmatprep.subr.bf16.mxu1 %v7848_v48  ;;  %4787 = vmatprep.subr.bf16.mxu0 %v7851_v28  ;;  %v7926_v48 = vld [vmem:[#allocation5 + $0xef4] ss:$8 sps:$4 sm:$0xff]   ;;  %v7924_v28 = vld [vmem:[#allocation5 + $0xef0] ss:$8 sps:$4 sm:$0xff]  }
 0x4ad   : > { %4524 = vmatpush1.bf16.msra.mxu1 %v7846_v31  ;;  %4788 = vmatpush2.bf16.msra.mxu0 %v7849_v34  ;;  %v7929_v31 = vld [vmem:[#allocation5 + $0xee4] ss:$8 sps:$4 sm:$0xff]   ;;  %v7927_v34 = vld [vmem:[#allocation5 + $0xee0] ss:$8 sps:$4 sm:$0xff]  }
 0x4ae   : > { %4525 = vmatprep.subr.bf16.mxu1 %v7854_v47  ;;  %4789 = vmatprep.subr.bf16.mxu0 %v7857_v36  ;;  %v7932_v47 = vld [vmem:[#allocation5 + $0xed4] ss:$8 sps:$4 sm:$0xff]   ;;  %v7930_v36 = vld [vmem:[#allocation5 + $0xed0] ss:$8 sps:$4 sm:$0xff]  }
 0x4b1   : > { %4526 = vmatpush1.bf16.msra.mxu1 %v7852_v37  ;;  %4790 = vmatpush2.bf16.msra.mxu0 %v7855_v38  ;;  %v7935_v37 = vld [vmem:[#allocation5 + $0xec4] ss:$8 sps:$4 sm:$0xff]   ;;  %v7933_v38 = vld [vmem:[#allocation5 + $0xec0] ss:$8 sps:$4 sm:$0xff]  }
 0x4b2   : > { %4527 = vmatprep.subr.bf16.mxu1 %v7860_v11  ;;  %4791 = vmatprep.subr.bf16.mxu0 %v7863_v40  ;;  %v7938_v11 = vld [vmem:[#allocation5 + $0xeb4] ss:$8 sps:$4 sm:$0xff]   ;;  %v7936_v40 = vld [vmem:[#allocation5 + $0xeb0] ss:$8 sps:$4 sm:$0xff]  }
 0x4b5   : > { %4528 = vmatpush2.bf16.msra.mxu1 %v7858_v21  ;;  %4792 = vmatpush2.bf16.msra.mxu0 %v7861_v43  ;;  %v7941_v21 = vld [vmem:[#allocation5 + $0xea4] ss:$8 sps:$4 sm:$0xff]   ;;  %v7939_v43 = vld [vmem:[#allocation5 + $0xea0] ss:$8 sps:$4 sm:$0xff]  }
 0x4b6   : > { %4529 = vmatprep.subr.bf16.mxu1 %v7866_v45  ;;  %4793 = vmatprep.subr.bf16.mxu0 %v7869_v46  ;;  %v7944_v45 = vld [vmem:[#allocation5 + $0xe94] ss:$8 sps:$4 sm:$0xff]   ;;  %v7942_v46 = vld [vmem:[#allocation5 + $0xe90] ss:$8 sps:$4 sm:$0xff]  }
 0x4b9   : > { %4530 = vmatpush2.bf16.msra.mxu1 %v7864_v49  ;;  %4794 = vmatpush2.bf16.msra.mxu0 %v7867_v51  ;;  %v7947_v49 = vld [vmem:[#allocation5 + $0xe84] ss:$8 sps:$4 sm:$0xff]   ;;  %v7945_v51 = vld [vmem:[#allocation5 + $0xe80] ss:$8 sps:$4 sm:$0xff]  }
 0x4ba   : > { %4531 = vmatprep.subr.bf16.mxu1 %v7872_v52  ;;  %4795 = vmatprep.subr.bf16.mxu0 %v7875_v53  ;;  %v7948_v52 = vld [vmem:[#allocation7 + $0x178] sm:$0xff]  }
 0x4bb   : > { %v7949_v53 = vld [vmem:[#allocation7 + $0x138] sm:$0xff]  }
 0x4bd   : > { %4532 = vmatpush2.bf16.msra.mxu1 %v7870_v14  ;;  %4796 = vmatpush2.bf16.msra.mxu0 %v7873_v5  ;;  %v7950_v14 = vld [vmem:[#allocation7 + $0xf8] sm:$0xff]   ;;  %v7951_v5 = vld [vmem:[#allocation7 + $0x170] sm:$0xff]  }
 0x4be   : > { %4533 = vmatprep.subr.bf16.mxu1 %v7878_v1  ;;  %4797 = vmatprep.subr.bf16.mxu0 %v7881_v7  ;;  %v7952_v1 = vld [vmem:[#allocation7 + $0xb8] sm:$0xff]   ;;  %v7953_v7 = vld [vmem:[#allocation7 + $0x130] sm:$0xff]  }
 0x4c1   : > { %4534 = vmatpush2.bf16.msra.mxu1 %v7876_v12  ;;  %4798 = vmatpush2.bf16.msra.mxu0 %v7879_v54  ;;  %v7954_v12 = vld [vmem:[#allocation7 + $0xf0] sm:$0xff]   ;;  %v7955_v54 = vld [vmem:[#allocation7 + $0x168] sm:$0xff]  }
 0x4c2   : > { %4535 = vmatprep.subr.bf16.mxu1 %v7884_v55  ;;  %4799 = vmatprep.subr.bf16.mxu0 %v7887_v58  ;;  %v7956_v55 = vld [vmem:[#allocation7 + $0xb0] sm:$0xff]   ;;  %v7957_v58 = vld [vmem:[#allocation7 + $0x128] sm:$0xff]  }
 0x4c5   : > { %4536 = vmatpush2.bf16.msra.mxu1 %v7882_v60  ;;  %4800 = vmatpush2.bf16.msra.mxu0 %v7885_v61  ;;  %v7960_v60 = vld [vmem:[#allocation7 + $0xa8] sm:$0xff]   ;;  %v7961_v61 = vld [vmem:[#allocation7 + $0x120] sm:$0xff]  }
 0x4c6   : > { %4537 = vmatprep.subr.bf16.mxu1 %v7890_v62  ;;  %4801 = vmatprep.subr.bf16.mxu0 %v7893_v63  ;;  %v7962_v62 = vld [vmem:[#allocation7 + $0xe0] sm:$0xff]   ;;  %v7963_v63 = vld [vmem:[#allocation7 + $0x158] sm:$0xff]  }
 0x4c9   : > { %4538 = vmatpush2.bf16.msra.mxu1 %v7888_v8  ;;  %4802 = vmatpush2.bf16.msra.mxu0 %v7891_v9  ;;  %v7968_v8 = vld [vmem:[#allocation7 + $0x98] sm:$0xff]   ;;  %v7969_v9 = vld [vmem:[#allocation7 + $0x110] sm:$0xff]  }
 0x4ca   : > { %4539 = vmatprep.subr.bf16.mxu1 %v7896_v13  ;;  %6878 = vmatprep.subr.bf16.mxu0 %v7950_v14  ;;  %v7970_v13 = vld [vmem:[#allocation7 + $0xd0] sm:$0xff]  }
 0x4cc   : > { %4804 = vmatmul.mubr.bf16.vlgmr.msra.gmra.mxu0 %v4599_v42  ;;  %v7975_v42 = vld [vmem:[#allocation7 + $0x140] sm:$0xff]  }
 0x4cd   : > { %4540 = vmatpush2.bf16.msra.mxu1 %v7894_v16  ;;  %6879 = vmatpush3.bf16.msra.mxu0 %v7952_v1  ;;  %v7973_v16 = vld [vmem:[#allocation7 + $0x108] sm:$0xff]  }
 0x4ce   : > { %4541 = vmatprep.subr.bf16.mxu1 %v7899_v35  ;;  %6880 = vmatprep.subr.bf16.mxu0 %v7954_v12  ;;  %v7974_v35 = vld [vmem:[#allocation7 + $0xc8] sm:$0xff]  }
 0x4d1   : > { %4542 = vmatpush2.bf16.msra.mxu1 %v7897_v30  ;;  %6881 = vmatpush3.bf16.msra.mxu0 %v7956_v55  ;;  %v7976_v30 = vld [vmem:[#allocation7 + $0x88] sm:$0xff]  }
 0x4d2   : > { %5019 = vmatprep.subr.bf16.mxu1 %v7902_v44  ;;  %v7977_v44 = vld [vmem:[#allocation7 + $0x100] sm:$0xff]  }
 0x4d4   : > { %4544 = vmatmul.mubr.bf16.vlgmr.msra.gmra.mxu1 %v8705_v57  ;;  %v7915_v57 = vld [vmem:[#allocation5 + $0xe20] ss:$8 sps:$4 sm:$0xff]  }
 0x4d5   : > { %5020 = vmatpush1.bf16.msra.mxu1 %v7900_v33  ;;  %5051 = vmatprep.mubr.bf16.mxu1 %v8713_v4  ;;  %v7918_v4 = vld [vmem:[#allocation5 + $0xe10] ss:$8 sps:$4 sm:$0xff]   ;;  %v7978_v33 = vld [vmem:[#allocation7 + $0xc0] sm:$0xff]  }
 0x4d6   : > { %5021 = vmatprep.subr.bf16.mxu1 %v7905_v17  ;;  %v7979_v17 = vld [vmem:[#allocation7 + $0x278] sm:$0xff]  }
 0x4d9   : > { %5022 = vmatpush1.bf16.msra.mxu1 %v7903_v18  ;;  %v7980_v18 = vld [vmem:[#allocation7 + $0x80] sm:$0xff]  }
 0x4da   : > { %5023 = vmatprep.subr.bf16.mxu1 %v7908_v19  ;;  %v7982_v19 = vld [vmem:[#allocation7 + $0x78] sm:$0xff]  }
 0x4dd   : > { %5024 = vmatpush1.bf16.msra.mxu1 %v7906_v20 }
 0x4de   : > { %5025 = vmatprep.subr.bf16.mxu1 %v7911_v22 }
 0x4e1   : > { %5026 = vmatpush1.bf16.msra.mxu1 %v7909_v23 }
 0x4e2   : > { %5027 = vmatprep.subr.bf16.mxu1 %v7914_v24 }
 0x4e5   : > { %5028 = vmatpush1.bf16.msra.mxu1 %v7912_v26 }
 0x4e6   : > { %5029 = vmatprep.subr.bf16.mxu1 %v7917_v29 }
 0x4e9   : > { %5030 = vmatpush1.bf16.msra.mxu1 %v7915_v57 }
 0x4ea   : > { %5031 = vmatprep.subr.bf16.mxu1 %v7920_v27 }
 0x4ed   : > { %5032 = vmatpush1.bf16.msra.mxu1 %v7918_v4 }
 0x4ee   : > { %5033 = vmatprep.subr.bf16.mxu1 %v7923_v50 }
 0x4f1   : > { %5034 = vmatpush1.bf16.msra.mxu1 %v7921_v0 }
 0x4f2   : > { %5035 = vmatprep.subr.bf16.mxu1 %v7926_v48 }
 0x4f5   : > { %5036 = vmatpush2.bf16.msra.mxu1 %v7924_v28 }
 0x4f6   : > { %5037 = vmatprep.subr.bf16.mxu1 %v7929_v31 }
 0x4f9   : > { %5038 = vmatpush2.bf16.msra.mxu1 %v7927_v34 }
 0x4fa   : > { %5039 = vmatprep.subr.bf16.mxu1 %v7932_v47 }
 0x4fd   : > { %5040 = vmatpush2.bf16.msra.mxu1 %v7930_v36  ;;  %v3811_v36 = vld [vmem:[#allocation8 + $0x3] ss:$4 sm:$0x3] }
 0x4fe   : > { %5041 = vmatprep.subr.bf16.mxu1 %v7935_v37 }
 0x501   : > { %5042 = vmatpush2.bf16.msra.mxu1 %v7933_v38 }
 0x502   : > { %5043 = vmatprep.subr.bf16.mxu1 %v7938_v11 }
 0x505   : > { %5044 = vmatpush2.bf16.msra.mxu1 %v7936_v40 }
 0x506   : > { %5045 = vmatprep.subr.bf16.mxu1 %v7941_v21 }
 0x509   : > { %5046 = vmatpush2.bf16.msra.mxu1 %v7939_v43  ;;  %v3813_v43 = vld [vmem:[#allocation10 + $0x3] ss:$4 sm:$0x3] }
 0x50a   : > { %5047 = vmatprep.subr.bf16.mxu1 %v7944_v45  ;;  %v5085_v1 = vrot.slane %v3813_v43, %v8562_v56 }
 0x50d   : > { %5048 = vmatpush2.bf16.msra.mxu1 %v7942_v46  ;;  %v5070_v46 = vrot.slane %v3811_v36, %v8562_v56 }
 0x50e   : > { %5049 = vmatprep.subr.bf16.mxu1 %v7947_v49 }
 0x511   : > { %5050 = vmatpush2.bf16.msra.mxu1 %v7945_v51 }
 0x512   : > { %6922 = vmatprep.subr.bf16.mxu1 %v7948_v52 }
 0x514   : > { %5052 = vmatmul.mubr.bf16.vlgmr.msra.gmra.mxu1 %v8717_v10  ;;  %v7958_v10 = vld [vmem:[#allocation7 + $0xe8] sm:$0xff]  }
 0x515   : > { %6923 = vmatpush3.bf16.msra.mxu1 %v7949_v53  ;;  %6882 = vmatprep.subr.bf16.mxu0 %v7958_v10  ;;  %v5089_v10 = vrot.slane %v3813_v43, %v8564_v2 }
 0x516   : > { %6924 = vmatprep.subr.bf16.mxu1 %v7951_v5  ;;  %6883 = vmatpush3.bf16.msra.mxu0 %v7960_v60  ;;  %v5074_v5 = vrot.slane %v3811_v36, %v8564_v2 }
 0x517   : > { %6884 = vmatprep.subr.bf16.mxu0 %v7962_v62 }
 0x519   : > { %6925 = vmatpush3.bf16.msra.mxu1 %v7953_v7 }
 0x51a   : > { %6926 = vmatprep.subr.bf16.mxu1 %v7955_v54  ;;  %6885 = vmatpush3.bf16.msra.mxu0 %v7964_v32 }
 0x51b   : > { %6886 = vmatprep.subr.bf16.mxu0 %v7966_v41 }
 0x51d   : > { %6927 = vmatpush3.bf16.msra.mxu1 %v7957_v58 }
 0x51e   : > { %6928 = vmatprep.subr.bf16.mxu1 %v7959_v59  ;;  %6887 = vmatpush3.bf16.msra.mxu0 %v7968_v8 }
 0x51f   : > { %6888 = vmatprep.subr.bf16.mxu0 %v7970_v13 }
 0x521   : > { %6929 = vmatpush3.bf16.msra.mxu1 %v7961_v61 }
 0x522   : > { %6930 = vmatprep.subr.bf16.mxu1 %v7963_v63  ;;  %6889 = vmatpush3.bf16.msra.mxu0 %v7972_v15 }
 0x523   : > { %6890 = vmatprep.subr.bf16.mxu0 %v7974_v35 }
 0x525   : > { %6931 = vmatpush3.bf16.msra.mxu1 %v7965_v3 }
 0x526   : > { %6932 = vmatprep.subr.bf16.mxu1 %v7967_v6  ;;  %6891 = vmatpush3.bf16.msra.mxu0 %v7976_v30 }
 0x527   : > { %6892 = vmatprep.subr.bf16.mxu0 %v7978_v33 }
 0x529   : > { %6933 = vmatpush3.bf16.msra.mxu1 %v7969_v9 }
 0x52a   : > { %6934 = vmatprep.subr.bf16.mxu1 %v7971_v25  ;;  %6893 = vmatpush3.bf16.msra.mxu0 %v7980_v18 }
 0x52b   : > { %6900 = vmatprep.subr.bf16.mxu0 %v7982_v19 }
 0x52d   : > { %6935 = vmatpush3.bf16.msra.mxu1 %v7973_v16 }
 0x52e   : > { %6936 = vmatprep.subr.bf16.mxu1 %v7975_v42 }
 0x531   : > { %6937 = vmatpush3.bf16.msra.mxu1 %v7977_v44 }
 0x532   : > { %6966 = vmatprep.subr.bf16.mxu1 %v7979_v17 }
 0x54c   : > { %v4299_v23 = vpop.f32.mrf.mxu0 }
 0x54e   : > { %v4301_v26 = vpop.f32.mrf.mxu0 }
 0x550   : > { %v4303_v57 = vpop.f32.mrf.mxu0 }
 0x552   : > { %v4305_v4 = vpop.f32.mrf.mxu0 }
 0x554   : > { %v4096_v20 = vpop.f32.mrf.mxu1 }
 0x555   : > { %v4300_v48 = vadd.f32 %v4299_v23, %v4096_v20 }
 0x556   : > { %v4098_v22 = vpop.f32.mrf.mxu1 }
 0x557   : > { %v4302_v31 = vadd.f32 %v4301_v26, %v4098_v22 }
 0x558   : > { %v4100_v24 = vpop.f32.mrf.mxu1 }
 0x559   : > { %v4304_v37 = vadd.f32 %v4303_v57, %v4100_v24 }
 0x55a   : > { %v4102_v29 = vpop.f32.mrf.mxu1 }
 0x55b   : > { %v4306_v40 = vadd.f32 %v4305_v4, %v4102_v29  ;;  %v7981_v29 = vld [vmem:[#allocation7 + $0x238] sm:$0xff]  }
 0x58c   : > { %v4805_v0 = vpop.f32.mrf.mxu0 }
 0x58e   : > { %v4807_v47 = vpop.f32.mrf.mxu0 }
 0x590   : > { %v4809_v49 = vpop.f32.mrf.mxu0 }
 0x592   : > { %v4811_v58 = vpop.f32.mrf.mxu0 }
 0x594   : > { %v4545_v27 = vpop.f32.mrf.mxu1 }
 0x595   : > { %v4554_v34 = vadd.f32 %v4545_v27, %v4300_v48 }
 0x596   : > { %v4547_v50 = vpop.f32.mrf.mxu1 }
 0x597   : > { %v4555_v38 = vadd.f32 %v4547_v50, %v4302_v31  ;;  %v4814_v45 = vadd.f32 %v4805_v0, %v4554_v34  ;;  %v7983_v0 = vld [vmem:[#allocation7 + $0x270] sm:$0xff]  }
 0x598   : > { %v4549_v28 = vpop.f32.mrf.mxu1 }
 0x599   : > { %v4556_v21 = vadd.f32 %v4549_v28, %v4304_v37  ;;  %v4815_v14 = vadd.f32 %v4807_v47, %v4555_v38 }
 0x59a   : > { %v4551_v11 = vpop.f32.mrf.mxu1 }
 0x59b   : > { %v4557_v52 = vadd.f32 %v4551_v11, %v4306_v40  ;;  %v4816_v55 = vadd.f32 %v4809_v49, %v4556_v21  ;;  %v7985_v21 = vld [vmem:[#allocation7 + $0x230] sm:$0xff]  }
 0x59d   : > { %v4817_v62 = vadd.f32 %v4811_v58, %v4557_v52  ;;  %v7986_v52 = vld [vmem:[#allocation7 + $0x70] sm:$0xff]   ;;  %v7990_v58 = vld [vmem:[#allocation7 + $0x68] sm:$0xff]  }
 0x5d4   : > { %v5053_v51 = vpop.f32.mrf.mxu1 }
 0x5d5   : > { %v5062_v53 = vadd.f32 %v5053_v51, %v4814_v45  ;;  %v7984_v45 = vld [vmem:[#allocation7 + $0x38] sm:$0xff]  }
 0x5d6   : > { %v5055_v7 = vpop.f32.mrf.mxu1 }
 0x5d7   : > { %v5077_v12 = vmul.f32 %v5070_v46, %v5062_v53  ;;  %v5063_v54 = vadd.f32 %v5055_v7, %v4815_v14  ;;  %v7987_v53 = vld [vmem:[#allocation7 + $0x268] sm:$0xff]  }
 0x5d8   : > { %v5057_v59 = vpop.f32.mrf.mxu1  ;;  %v7989_v7 = vld [vmem:[#allocation7 + $0x228] sm:$0xff]  }
 0x5d9   : > { %v5078_v60 = vmul.f32 %v5074_v5, %v5063_v54  ;;  %v5064_v61 = vadd.f32 %v5057_v59, %v4816_v55  ;;  %v5092_v63 = vadd.f32 %v5085_v1, %v5077_v12  ;;  %v7988_v12 = vld [vmem:[#allocation7 + $0x30] sm:$0xff]   ;;  %v7991_v54 = vld [vmem:[#allocation7 + $0x260] sm:$0xff]  }
 0x5da   : > { %v5059_v32 = vpop.f32.mrf.mxu1  ;;  %v7993_v59 = vld [vmem:[#allocation7 + $0x220] sm:$0xff]  }
 0x5db   : > { %v5079_v3 = vmul.f32 %v5070_v46, %v5064_v61  ;;  %v5065_v41 = vadd.f32 %v5059_v32, %v4817_v62  ;;  %v5093_v6 = vadd.f32 %v5089_v10, %v5078_v60  ;;  %8052 = vtanh.f32 %v5092_v63  ;;  %v7992_v60 = vld [vmem:[#allocation7 + $0x28] sm:$0xff]   ;;  %v7995_v61 = vld [vmem:[#allocation7 + $0x258] sm:$0xff]   ;;  %v7994_v62 = vld [vmem:[#allocation7 + $0x60] sm:$0xff]  }
 0x5dc   : > { %v7997_v63 = vld [vmem:[#allocation7 + $0x218] sm:$0xff]   ;;  %v7996_v32 = vld [vmem:[#allocation7 + $0x20] sm:$0xff]  }
 0x5dd   : > { %v5094_v8 = vadd.f32 %v5085_v1, %v5079_v3  ;;  %v5080_v9 = vmul.f32 %v5074_v5, %v5065_v41  ;;  %v7999_v3 = vld [vmem:[#allocation7 + $0x250] sm:$0xff]   ;;  %v7998_v41 = vld [vmem:[#allocation7 + $0x58] sm:$0xff]  }
 0x5df   : > { %8054 = vtanh.f32 %v5094_v8  ;;  %v5095_v56 = vadd.f32 %v5089_v10, %v5080_v9  ;;  %v8000_v8 = vld [vmem:[#allocation7 + $0x18] sm:$0xff]   ;;  %v8003_v9 = vld [vmem:[#allocation7 + $0x248] sm:$0xff]  }
 0x5e0   : > { %8056 = vtanh.f32 %v5093_v6  ;;  %v8001_v6 = vld [vmem:[#allocation7 + $0x210] sm:$0xff]  }
 0x5e1   : > { %8058 = vtanh.f32 %v5095_v56  ;;  %v8002_v56 = vld [vmem:[#allocation7 + $0x50] sm:$0xff]  }
 0x5e8   : > { %v8053_v13 = vpop.eup %8052 }
 0x5ec   : > { %v8055_v25 = vpop.eup %8054 }
 0x5ed   : > { %v8057_v15 = vpop.eup %8056  ;;  %v5100_v2 = vpack.c.bf16 %v8055_v25, %v8053_v13  ;;  %v8005_v13 = vld [vmem:[#allocation7 + $0x208] sm:$0xff]   ;;  %v8004_v25 = vld [vmem:[#allocation7 + $0x10] sm:$0xff]  }
 0x5ee   : > { %v8059_v16 = vpop.eup %8058 }
 0x5ef   : > { %v8734_v35 = vrot.slane %v5100_v2, 6  ;;  %v5101_v42 = vpack.c.bf16 %v8059_v16, %v8057_v15  ;;  %v8007_v15 = vld [vmem:[#allocation7 + $0x240] sm:$0xff]   ;;  %v8006_v2 = vld [vmem:[#allocation7 + $0x48] sm:$0xff]  }
 0x5f0   : > { %v8009_v16 = vld [vmem:[#allocation7 + $0x200] sm:$0xff]  }
 0x5f1   : > { %v8736_v30 = vrot.slane %v5101_v42, 6  ;;  %v8740_v44 = vsel %vm1199_vm4, 0, %v8734_v35  ;;  %v5511_v20 = vrot.slane %v8734_v35, 1  ;;  %v5185_v48 = vshll.u32 %v8734_v35, 16 }
 0x5f2   : > { %v5181_v33 = vshll.u32 %v8740_v44, 16  ;;  %v5510_v19 = vrot.slane %v8740_v44, 1  ;;  %v5179_v26 = vshrl.u32 %v8740_v44, 16  ;;  %v5693_v46 = vshrl.u32 %v8734_v35, 16 }
 0x5f3   : > { %v8745_v17 = vsel %vm1199_vm4, 0, %v8736_v30  ;;  %v5514_v18 = vrot.slane %v8736_v30, 1  ;;  %v5886_v24 = vrot.slane %v8736_v30, 2  ;;  %v5195_v27 = vshll.u32 %v8736_v30, 16 }
 0x5f4   : > { %v5513_v22 = vrot.slane %v8745_v17, 1  ;;  %v5885_v23 = vrot.slane %v8745_v17, 2  ;;  %v5191_v57 = vshll.u32 %v8745_v17, 16  ;;  %v5183_v4 = vrot.slane %v5181_v33, 1 }
 0x5f5   : > { %v5512_v28 = vsel %vm723_vm2, %v5510_v19, %v5511_v20  ;;  %v5189_v31 = vshrl.u32 %v8745_v17, 16  ;;  %v5690_v37 = vrot.slane %v5179_v26, 1  ;;  %v5691_v38 = vrot.slane %v5181_v33, 2  ;;  %v8008_v33 = vld [vmem:[#allocation7 + $0x8] sm:$0xff]   ;;  %v8015_v17 = vld [vmem:[#allocation7 + $0x1b0] sm:$0xff]  }
 0x5f6   : > { %v5515_v50 = vsel %vm723_vm2, %v5513_v22, %v5514_v18  ;;  %v5193_v34 = vrot.slane %v5191_v57, 1  ;;  %v5887_v47 = vsel %vm1027_vm1, %v5885_v23, %v5886_v24  ;;  %v5184_v36 = vor.u32 %v5183_v4, %v5179_v26  ;;  %v8010_v18 = vld [vmem:[#allocation7 + $0x40] sm:$0xff]  }
 0x5f7   : > { %5646 = vmatprep.mubr.bf16.mxu1 %v5515_v50  ;;  %v5197_v40 = vrot.slane %v5195_v27, 1  ;;  %v5187_v43 = vrot.slane %v5185_v48, 1  ;;  %v5696_v49 = vrot.slane %v5185_v48, 2  ;;  %v5692_v5 = vor.u32 %v5691_v38, %v5690_v37  ;;  %v8012_v50 = vld [vmem:[#allocation7 + $0x1f8] sm:$0xff]   ;;  %v8024_v37 = vld [vmem:[#allocation7 + $0x1c8] sm:$0xff]  }
 0x5f8   : > { %5647 = vmatmul.mubr.bf16.vlgmr.msra.gmra.mxu1 %v5512_v28  ;;  %v5194_v11 = vor.u32 %v5193_v34, %v5189_v31  ;;  %v5695_v1 = vrot.slane %v5693_v46, 1  ;;  %v5702_v42 = vshrl.u32 %v8736_v30, 16  ;;  %v5882_v19 = vrot.slane %v8740_v44, 2  ;;  %v8013_v48 = vld [vmem:[#allocation7 + $0x1b8] sm:$0xff]   ;;  %v8014_v28 = vld [vmem:[#allocation7 + $0x1f0] sm:$0xff]   ;;  %v8019_v34 = vld [vmem:[#allocation7 + $0x1a0] sm:$0xff]  }
 0x5f9   : > { %6967 = vmatpush3.bf16.msra.mxu1 %v7981_v29  ;;  %6018 = vmatprep.mubr.bf16.mxu1 %v5887_v47  ;;  %v5188_v14 = vsel %vm445_vm0, %v5184_v36, %v5187_v43  ;;  %v5883_v20 = vrot.slane %v8734_v35, 2  ;;  %v5699_v22 = vrot.slane %v5189_v31, 1  ;;  %v5700_v23 = vrot.slane %v5191_v57, 2  ;;  %v8011_v29 = vld [vmem:[#allocation7] sm:$0xff]   ;;  %v8016_v57 = vld [vmem:[#allocation7 + $0x1e8] sm:$0xff]   ;;  %v8020_v47 = vld [vmem:[#allocation7 + $0x1d8] sm:$0xff]  }
 0x5fa   : > { %6968 = vmatprep.subr.bf16.mxu1 %v7983_v0  ;;  %v5198_v51 = vsel %vm445_vm0, %v5194_v11, %v5197_v40  ;;  %v5697_v55 = vor.u32 %v5696_v49, %v5695_v1  ;;  %v5704_v24 = vrot.slane %v5702_v42, 1  ;;  %v5705_v26 = vrot.slane %v5195_v27, 2  ;;  %v8017_v27 = vld [vmem:[#allocation7 + $0x1a8] sm:$0xff]   ;;  %v8018_v31 = vld [vmem:[#allocation7 + $0x1e0] sm:$0xff]   ;;  %v8021_v36 = vld [vmem:[#allocation7 + $0x198] sm:$0xff]  }
 0x5fb   : > { %5329 = vmatprep.mubr.bf16.mxu0 %v5198_v51  ;;  %v5884_v4 = vsel %vm1027_vm1, %v5882_v19, %v5883_v20  ;;  %v5701_v44 = vor.u32 %v5700_v23, %v5699_v22  ;;  %v8025_v38 = vld [vmem:[#allocation7 + $0x188] sm:$0xff]   ;;  %v8026_v11 = vld [vmem:[#allocation7 + $0x1c0] sm:$0xff]  }
 0x5fc   : > { %5330 = vmatmul.mubr.bf16.vlgmr.msra.gmra.mxu0 %v5188_v14  ;;  %v8774_v10 = vsel %vm872_vm3, %v5692_v5, %v5697_v55  ;;  %v5706_v0 = vor.u32 %v5705_v26, %v5704_v24  ;;  %v8027_v40 = vld [vmem:[#allocation7 + $0x180] sm:$0xff]  }
 0x5fd   : > { %6969 = vmatpush3.bf16.msra.mxu1 %v7985_v21  ;;  %6901 = vmatpush3.bf16.msra.mxu0 %v7984_v45 }
 0x5fe   : > { %6819 = vmatprep.mubr.msk.bf16.mxu0 %vm8571_vm5, %v8736_v30  ;;  %6902 = vmatprep.subr.bf16.mxu0 %v7986_v52  ;;  %v5707_v30 = vsel %vm872_vm3, %v5701_v44, %v5706_v0 }
 0x5ff   : > { %6970 = vmatprep.subr.bf16.mxu1 %v7987_v53 }
 0x601   : > { %6971 = vmatpush3.bf16.msra.mxu1 %v7989_v7  ;;  %6903 = vmatpush3.bf16.msra.mxu0 %v7988_v12 }
 0x602   : > { %6972 = vmatprep.subr.bf16.mxu1 %v7991_v54  ;;  %6904 = vmatprep.subr.bf16.mxu0 %v7990_v58 }
 0x605   : > { %6973 = vmatpush3.bf16.msra.mxu1 %v7993_v59  ;;  %6905 = vmatpush3.bf16.msra.mxu0 %v7992_v60 }
 0x606   : > { %6974 = vmatprep.subr.bf16.mxu1 %v7995_v61  ;;  %6906 = vmatprep.subr.bf16.mxu0 %v7994_v62 }
 0x609   : > { %6975 = vmatpush3.bf16.msra.mxu1 %v7997_v63  ;;  %6907 = vmatpush3.bf16.msra.mxu0 %v7996_v32 }
 0x60a   : > { %6976 = vmatprep.subr.bf16.mxu1 %v7999_v3  ;;  %6908 = vmatprep.subr.bf16.mxu0 %v7998_v41 }
 0x60d   : > { %6977 = vmatpush3.bf16.msra.mxu1 %v8001_v6  ;;  %6909 = vmatpush3.bf16.msra.mxu0 %v8000_v8 }
 0x60e   : > { %6978 = vmatprep.subr.bf16.mxu1 %v8003_v9  ;;  %6910 = vmatprep.subr.bf16.mxu0 %v8002_v56 }
 0x611   : > { %6979 = vmatpush3.bf16.msra.mxu1 %v8005_v13  ;;  %6911 = vmatpush3.bf16.msra.mxu0 %v8004_v25 }
 0x612   : > { %6980 = vmatprep.subr.bf16.mxu1 %v8007_v15  ;;  %6912 = vmatprep.subr.bf16.mxu0 %v8006_v2  ;;  %v6870_v15 = vld [vmem:[#allocation11] ss:$0 sm:$0xff] }
 0x615   : > { %6981 = vmatpush3.bf16.msra.mxu1 %v8009_v16  ;;  %6913 = vmatpush3.bf16.msra.mxu0 %v8008_v33 }
 0x616   : > { %6914 = vmatprep.subr.bf16.mxu0 %v8010_v18  ;;  %v6871_v18 = vld [vmem:[#allocation13] ss:$0 sm:$0xff] }
 0x618   : > { %6019 = vmatmul.mubr.bf16.vlgmr.msra.gmra.mxu1 %v5884_v4 }
 0x619   : > { %6915 = vmatpush3.bf16.msra.mxu0 %v8011_v29 }
 0x61a   : > { %6944 = vmatprep.subr.bf16.mxu0 %v8012_v50 }
 0x61c   : > { %6821 = vmatmul.mubr.msk.bf16.vlgmr.msra.gmra.mxu0 %vm8571_vm5, %v8734_v35  ;;  %v8023_v35 = vld [vmem:[#allocation7 + $0x190] sm:$0xff]  }
 0x61d   : > { %6945 = vmatpush3.bf16.msra.mxu0 %v8013_v48  ;;  %5838 = vmatprep.mubr.bf16.mxu0 %v5707_v30 }
 0x61e   : > { %6946 = vmatprep.subr.bf16.mxu0 %v8014_v28 }
 0x621   : > { %6947 = vmatpush3.bf16.msra.mxu0 %v8015_v17 }
 0x622   : > { %6948 = vmatprep.subr.bf16.mxu0 %v8016_v57 }
 0x625   : > { %6949 = vmatpush3.bf16.msra.mxu0 %v8017_v27 }
 0x626   : > { %6950 = vmatprep.subr.bf16.mxu0 %v8018_v31 }
 0x629   : > { %6951 = vmatpush3.bf16.msra.mxu0 %v8019_v34 }
 0x62a   : > { %6952 = vmatprep.subr.bf16.mxu0 %v8020_v47 }
 0x62d   : > { %6953 = vmatpush3.bf16.msra.mxu0 %v8021_v36 }
 0x62e   : > { %6954 = vmatprep.subr.bf16.mxu0 %v8022_v39 }
 0x631   : > { %6955 = vmatpush3.bf16.msra.mxu0 %v8023_v35 }
 0x632   : > { %6956 = vmatprep.subr.bf16.mxu0 %v8024_v37 }
 0x635   : > { %6957 = vmatpush3.bf16.msra.mxu0 %v8025_v38 }
 0x636   : > { %6958 = vmatprep.subr.bf16.mxu0 %v8026_v11 }
 0x639   : > { %6959 = vmatpush3.bf16.msra.mxu0 %v8027_v40 }
 0x63c   : > { %5839 = vmatmul.mubr.bf16.vlgmr.msra.gmra.mxu0 %v8774_v10 }
 0x6b8   : > { %v6938_v46 = vpop.f32.mrf.mxu1 }
 0x6ba   : > { %v6939_v51 = vpop.f32.mrf.mxu1 }
 0x6bb   : > { %v6940_v61 = vadd.f32 %v6939_v51, %v6938_v46 }
 0x6bc   : > { %v6894_v21 = vpop.f32.mrf.mxu0  ;;  %v6941_v53 = vpop.f32.mrf.mxu1 }
 0x6be   : > { %v6895_v43 = vpop.f32.mrf.mxu0  ;;  %v6942_v5 = vpop.f32.mrf.mxu1 }
 0x6bf   : > { %v6896_v55 = vadd.f32 %v6895_v43, %v6894_v21  ;;  %v6943_v9 = vadd.f32 %v6942_v5, %v6941_v53 }
 0x6c0   : > { %v6897_v45 = vpop.f32.mrf.mxu0 }
 0x6c2   : > { %v6898_v49 = vpop.f32.mrf.mxu0 }
 0x6c3   : > { %v6899_v62 = vadd.f32 %v6898_v49, %v6897_v45 }
 0x6d8   : > { %v6982_v7 = vpop.f32.mrf.mxu1 }
 0x6da   : > { %v6983_v58 = vpop.f32.mrf.mxu1 }
 0x6db   : > { %v6984_v56 = vadd.f32 %v6983_v58, %v6982_v7 }
 0x6dc   : > { %v6916_v52 = vpop.f32.mrf.mxu0  ;;  %v6985_v63 = vpop.f32.mrf.mxu1 }
 0x6de   : > { %v6917_v14 = vpop.f32.mrf.mxu0  ;;  %v6986_v25 = vpop.f32.mrf.mxu1 }
 0x6df   : > { %v6918_v12 = vadd.f32 %v6917_v14, %v6916_v52  ;;  %v6987_v19 = vadd.f32 %v6986_v25, %v6985_v63 }
 0x6e0   : > { %v6919_v1 = vpop.f32.mrf.mxu0 }
 0x6e1   : > { %v5469_v59 = vadd.f32 %v6918_v12, %v6896_v55 }
 0x6e2   : > { %v6920_v54 = vpop.f32.mrf.mxu0 }
 0x6e3   : > { %v6921_v60 = vadd.f32 %v6920_v54, %v6919_v1  ;;  %v5655_v41 = vadd.f32 %v6940_v61, %v5469_v59 }
 0x6e5   : > { %v5472_v3 = vadd.f32 %v6921_v60, %v6899_v62 }
 0x6e7   : > { %v5656_v42 = vadd.f32 %v6943_v9, %v5472_v3 }
 0x6fc   : > { %v6960_v10 = vpop.f32.mrf.mxu0 }
 0x6fe   : > { %v6961_v32 = vpop.f32.mrf.mxu0 }
 0x6ff   : > { %v6962_v6 = vadd.f32 %v6961_v32, %v6960_v10 }
 0x700   : > { %v6963_v8 = vpop.f32.mrf.mxu0 }
 0x701   : > { %v5847_v13 = vadd.f32 %v6962_v6, %v5655_v41 }
 0x702   : > { %v6964_v2 = vpop.f32.mrf.mxu0 }
 0x703   : > { %v6027_v16 = vadd.f32 %v6984_v56, %v5847_v13  ;;  %v6965_v33 = vadd.f32 %v6964_v2, %v6963_v8 }
 0x705   : > { %v6035_v20 = vmul.f32 %v6870_v15, %v6027_v16  ;;  %v5848_v22 = vadd.f32 %v6965_v33, %v5656_v42 }
 0x707   : > { %v6043_v23 = vadd.f32 %v6871_v18, %v6035_v20  ;;  %v6028_v24 = vadd.f32 %v6987_v19, %v5848_v22 }
 0x709   : > { %6045 = vst [vmem:[%s392_s21] sm:$0xff] %v6043_v23  ;;  %v6036_v26 = vmul.f32 %v6870_v15, %v6028_v24 }
 0x70b   : > { %v6044_v29 = vadd.f32 %v6871_v18, %v6036_v26 }
 0x70d   : > { %6046 = vst [vmem:[%s392_s21 + $0x8] sm:$0xff] %v6044_v29 }
 0x70e   : > { %8255 = shalt.err (!%p8252_p8)
}
 0x70f   : > { %s8256_s24 = scalar_lea.hbm %s8796_s1, 256  ;;  %s8260_s19 = scalar_lea.hbm %s8848_s8, 512 }
 0x710   : > { %p8257_p11 = scmp.ne.s32.totalorder %s8796_s1, %s8256_s24  ;;  %p8261_p10 = scmp.lt.s32.totalorder %s8796_s1, %s8848_s8 }
 0x711   : > { %p8262_p3 = scmp.lt.s32.totalorder %s8260_s19, %s8256_s24 }
 0x712   : > { %p8258_p0 = pnand %p8257_p11, %p8872_p2 }
 0x713   : > { %p8263_p9 = por %p8262_p3, %p8261_p10 }
 0x714   : > { %p8259_p12 = pneg %p8258_p0 }
 0x716   : > { %p8264_p1 = pnand %p8263_p9, %p8259_p12 }
 0x718   : > { %8267 = shalt.err (!%p8264_p1)
}
 0x719   : > { %s8333_s10 = smov 128   ;;  %s8334_s12 = smov 8  }
 0x71a   : > { %7017 = dma.vmem_to_hbm [thread:$0]  (%p8872_p2), %s8798_s26, 256, %s8796_s1, %s8800_s22, %s8333_s10, %s8333_s10, %s8334_s12  }
 0x71b PF: > { %p7059_p4 = scmp.ge.s32.totalorder %s8318_s30, 2  ;;  %s6076_s17 = sand.u32 1, %s8306_s27  }
 0x71c   : > { %p8873_p5 = scmp.ne.s32.totalorder %s8855_s16, 0  ;;  %s6077_s9 = scalar_lea.sflag [#allocation4], %s6076_s17 }
 0x71e   : > { %p7042_p7 = pnand %p7059_p4, %p8873_p5 }
 0x720   : > { %p7043_p6 = pneg %p7042_p7 }
 0x722   : > { %8301 = dma.done.wait (%p7043_p6), %s6077_s9, 256  }
 0x723   : > { %8303 = vsyncadd (%p7043_p6), %s6077_s9, 4294967040  ;;  %p22_p13 = scmp.ge.s32.totalorder %s8405_s11, 4   ;;  %s8874_s27 = smov %s8310_s28 }
 0x724   : > { %s8875_s28 = smov %s8314_s29  ;;  %s8876_s29 = smov %s8416_s14 }
 0x725   : > { %s8877_s30 = smov %s8405_s11  ;;  %24 = sbr.rel (!%p22_p13) target bundleno = 9 (0x9), region = 144 }
 0x72a   :  { %6082 = vsyncpa [#allocation3], 1 }
 0x72b   :  { %6084 = vsyncpa [#allocation3 + $0x1], 1 }
 0x72c   :  { %6085 = vsyncpa [#allocation6], 1 }
 0x72d   :  { %6086 = vsyncpa [#allocation9], 1 }
 0x72e   :  { %6087 = vsyncpa [#allocation12], 1 }
 0x72f   :  { %6088 = vsyncpa [#allocation4], 1 }
 0x730   :  { %6090 = vsyncpa [#allocation4 + $0x1], 1 }

</bundles_post_ra>
